<compile_context>
chip_gen: v5e
topology: v5e:2x2
jax: 0.10.0
libtpu: 0.0.40
codegen_flags: <defaults>
</compile_context>

<pallas_src>
import functools
import math

import jax
import jax.numpy as jnp
from jax import lax
from jax.experimental import pallas as pl
from jax.experimental.pallas import tpu as pltpu

LANE = 128


def _rup(n, m=LANE):
    return ((n + m - 1) // m) * m


def _pad2(a, rows, cols):
    r, c = a.shape
    if r == rows and c == cols:
        return a
    return jnp.pad(a, ((0, rows - r), (0, cols - c)))


def _nbytes(*arrs):
    return int(sum(math.prod(a.shape) * jnp.dtype(a.dtype).itemsize for a in arrs))


def _vmem_limit(blocks):
    """blocks: list of (shape, dtype) per-grid-step VMEM blocks."""
    b = sum(math.prod(s) * jnp.dtype(d).itemsize for s, d in blocks)
    # double-buffered blocks + compiler scratch margin; stay well below v7x's 64 MiB.
    return int(min(max(2 * b + (8 << 20), 16 << 20), 48 << 20))


def _pick_tk(np_):
    """Contraction tile for adj @ support; multiple of 128 dividing the padded node count."""
    for tk in (2048, 1024, 512, 256, 128):
        if tk <= np_ and np_ % tk == 0:
            return tk
    return np_


# ---------------------------------------------------------------------------
# Kernel A: AE encoder/decoder + Student-t q + first GNN support (x @ g1).
# Entirely row-wise -> tiled over node rows; all weights stay resident in VMEM.
# ---------------------------------------------------------------------------
def _ae_kernel(x_ref,
               we1, be1, we2, be2, we3, be3, wz, bz,
               wd1, bd1, wd2, bd2, wd3, bd3, wxb, bxb,
               g1, clu_t_ref,
               xbar_ref, z_ref, q_ref, t1_ref, t2_ref, t3_ref, sup1_ref,
               *, v, n_clusters):
    bf16 = jnp.bfloat16

    def linear(h_bf, w_ref, b_ref, act=True):
        y = jnp.dot(h_bf, w_ref[...], preferred_element_type=jnp.float32) + b_ref[...]
        return jnp.maximum(y, 0.0) if act else y

    xb = x_ref[...].astype(bf16)

    # ---- AE encoder ----
    tra1 = linear(xb, we1, be1)
    tra2 = linear(tra1.astype(bf16), we2, be2)
    tra3 = linear(tra2.astype(bf16), we3, be3)
    z = linear(tra3.astype(bf16), wz, bz, act=False)
    zb = z.astype(bf16)

    # ---- AE decoder ----
    dec1 = linear(zb, wd1, bd1)
    dec2 = linear(dec1.astype(bf16), wd2, bd2)
    dec3 = linear(dec2.astype(bf16), wd3, bd3)
    x_bar = linear(dec3.astype(bf16), wxb, bxb, act=False)

    # ---- first GNN support (adj matmul happens in the tiled GNN kernels) ----
    sup1 = jnp.dot(xb, g1[...], preferred_element_type=jnp.float32)

    # ---- Student-t soft assignment, MXU form: d2 = ||z||^2 + ||c||^2 - 2 z c^T ----
    clu_t = clu_t_ref[...]                                       # (nz_p, K_p) f32
    zc = jnp.dot(zb, clu_t.astype(bf16), preferred_element_type=jnp.float32)
    z2 = jnp.sum(z * z, axis=1, keepdims=True)
    c2 = jnp.sum(clu_t * clu_t, axis=0, keepdims=True)
    dist2 = jnp.maximum(z2 + c2 - 2.0 * zc, 0.0)                 # clamp cancellation
    if v != 1.0:
        dist2 = dist2 / v
    q = 1.0 / (1.0 + dist2)
    exponent = (v + 1.0) / 2.0
    if exponent != 1.0:                                          # skip pow when v == 1
        q = q ** exponent
    col = lax.broadcasted_iota(jnp.int32, q.shape, 1)
    q = jnp.where(col < n_clusters, q, 0.0)                      # mask padded clusters
    q = q / jnp.sum(q, axis=1, keepdims=True)

    xbar_ref[...] = x_bar
    z_ref[...] = z
    q_ref[...] = q
    t1_ref[...] = tra1.astype(bf16)
    t2_ref[...] = tra2.astype(bf16)
    t3_ref[...] = tra3.astype(bf16)
    sup1_ref[...] = sup1.astype(bf16)


# ---------------------------------------------------------------------------
# Kernel B: one intermediate GNN layer.
#   grid = (row tiles "parallel", adj-contraction tiles "arbitrary")
#   acc  += adj[i, k] @ sup[k]        (f32 VMEM accumulator)
#   at last k:  out[i] = ((1-sigma)*relu(acc) + sigma*mix[i]) @ W
# ---------------------------------------------------------------------------
def _gnn_mid_kernel(adj_ref, sup_ref, mix_ref, w_ref, out_ref, acc_ref, *, sigma):
    @pl.when(pl.program_id(1) == 0)
    def _():
        acc_ref[...] = jnp.zeros_like(acc_ref)

    acc_ref[...] += jnp.dot(adj_ref[...], sup_ref[...],
                            preferred_element_type=jnp.float32)

    @pl.when(pl.program_id(1) == pl.num_programs(1) - 1)
    def _():
        h = jnp.maximum(acc_ref[...], 0.0)
        mixed = (1.0 - sigma) * h + sigma * mix_ref[...].astype(jnp.float32)
        out_ref[...] = jnp.dot(mixed.astype(jnp.bfloat16), w_ref[...],
                               preferred_element_type=jnp.float32).astype(out_ref.dtype)


# ---------------------------------------------------------------------------
# Kernel C: final GNN layer (no relu) + masked softmax over real clusters.
# ---------------------------------------------------------------------------
def _gnn_final_kernel(adj_ref, sup_ref, pred_ref, acc_ref, *, n_clusters):
    @pl.when(pl.program_id(1) == 0)
    def _():
        acc_ref[...] = jnp.zeros_like(acc_ref)

    acc_ref[...] += jnp.dot(adj_ref[...], sup_ref[...],
                            preferred_element_type=jnp.float32)

    @pl.when(pl.program_id(1) == pl.num_programs(1) - 1)
    def _():
        h = acc_ref[...]
        col = lax.broadcasted_iota(jnp.int32, h.shape, 1)
        h = jnp.where(col < n_clusters, h, -1e30)                # mask padded clusters
        m = jnp.max(h, axis=1, keepdims=True)
        e = jnp.exp(h - m)
        pred_ref[...] = e / jnp.sum(e, axis=1, keepdims=True)


def _gnn_mid_call(adj_p, sup, mix, w, *, sigma, tm, tk):
    np_ = adj_p.shape[0]
    din, dout = w.shape
    out_shape = jax.ShapeDtypeStruct((np_, dout), jnp.bfloat16)
    blocks = [((tm, tk), adj_p.dtype), ((tk, din), sup.dtype),
              ((tm, din), mix.dtype), ((din, dout), w.dtype),
              ((tm, dout), out_shape.dtype), ((tm, din), jnp.float32)]
    flops = 2 * np_ * np_ * din + 2 * np_ * din * dout
    bytes_acc = (_nbytes(adj_p, mix, w, out_shape)
                 + (np_ // tm) * _nbytes(sup))          # support re-read per row tile
    return pl.pallas_call(
        functools.partial(_gnn_mid_kernel, sigma=sigma),
        grid=(np_ // tm, np_ // tk),
        in_specs=[
            pl.BlockSpec((tm, tk), lambda i, k: (i, k)),    # adj tile
            pl.BlockSpec((tk, din), lambda i, k: (k, 0)),   # support contraction tile
            pl.BlockSpec((tm, din), lambda i, k: (i, 0)),   # mix partner row tile
            pl.BlockSpec((din, dout), lambda i, k: (0, 0)),  # GNN weight: resident
        ],
        out_specs=pl.BlockSpec((tm, dout), lambda i, k: (i, 0)),
        out_shape=out_shape,
        scratch_shapes=[pltpu.VMEM((tm, din), jnp.float32)],
        compiler_params=pltpu.CompilerParams(
            dimension_semantics=("parallel", "arbitrary"),
            vmem_limit_bytes=_vmem_limit(blocks)),
        cost_estimate=pl.CostEstimate(
            flops=flops, transcendentals=0, bytes_accessed=bytes_acc),
    )(adj_p, sup, mix, w)


def _gnn_final_call(adj_p, sup, *, n_clusters, tm, tk):
    np_ = adj_p.shape[0]
    kp = sup.shape[1]
    out_shape = jax.ShapeDtypeStruct((np_, kp), jnp.float32)
    blocks = [((tm, tk), adj_p.dtype), ((tk, kp), sup.dtype),
              ((tm, kp), jnp.float32), ((tm, kp), jnp.float32)]
    bytes_acc = _nbytes(adj_p, out_shape) + (np_ // tm) * _nbytes(sup)
    return pl.pallas_call(
        functools.partial(_gnn_final_kernel, n_clusters=n_clusters),
        grid=(np_ // tm, np_ // tk),
        in_specs=[
            pl.BlockSpec((tm, tk), lambda i, k: (i, k)),
            pl.BlockSpec((tk, kp), lambda i, k: (k, 0)),
        ],
        out_specs=pl.BlockSpec((tm, kp), lambda i, k: (i, 0)),
        out_shape=out_shape,
        scratch_shapes=[pltpu.VMEM((tm, kp), jnp.float32)],
        compiler_params=pltpu.CompilerParams(
            dimension_semantics=("parallel", "arbitrary"),
            vmem_limit_bytes=_vmem_limit(blocks)),
        cost_estimate=pl.CostEstimate(
            flops=2 * np_ * np_ * kp, transcendentals=np_ * kp,
            bytes_accessed=bytes_acc),
    )(adj_p, sup)


@functools.partial(jax.jit, static_argnames=("v",))
def sdcn_forward(x, adj, params, *, v=1.0):
    """SDCN forward; returns (x_bar, q, predict, z) like the PyTorch module."""
    n, n_input = x.shape
    n_z = params["wz"].shape[1]
    n_clusters = params["cluster"].shape[0]

    f32, bf16 = jnp.float32, jnp.bfloat16
    sigma = 0.5

    # node-row tile (lane-multiple), padded node count, adj contraction tile
    tm = min(256, _rup(n, LANE))
    np_ = _rup(n, tm)
    tk = _pick_tk(np_)

    def padw(a):  # weight (in, out) -> bf16, both dims lane-padded
        return _pad2(a, _rup(a.shape[0]), _rup(a.shape[1])).astype(bf16)

    def padb(a):  # bias (1, out) -> f32, lane-padded
        return _pad2(a, 1, _rup(a.shape[1])).astype(f32)

    x_p = _pad2(x.astype(f32), np_, _rup(n_input)).astype(bf16)
    adj_p = _pad2(adj.astype(f32), np_, np_).astype(bf16)
    clu_t = _pad2(params["cluster"].T.astype(f32), _rup(n_z), _rup(n_clusters))

    ae_inputs = [
        x_p,
        padw(params["we1"]), padb(params["be1"]),
        padw(params["we2"]), padb(params["be2"]),
        padw(params["we3"]), padb(params["be3"]),
        padw(params["wz"]), padb(params["bz"]),
        padw(params["wd1"]), padb(params["bd1"]),
        padw(params["wd2"]), padb(params["bd2"]),
        padw(params["wd3"]), padb(params["bd3"]),
        padw(params["wxb"]), padb(params["bxb"]),
        padw(params["g1"]), clu_t,
    ]

    n_in_p = x_p.shape[1]
    e1p = ae_inputs[1].shape[1]
    e2p = ae_inputs[3].shape[1]
    e3p = ae_inputs[5].shape[1]
    nzp = ae_inputs[7].shape[1]
    d1p = ae_inputs[9].shape[1]
    d2p = ae_inputs[11].shape[1]
    d3p = ae_inputs[13].shape[1]
    kp = clu_t.shape[1]

    ae_out_shape = (
        jax.ShapeDtypeStruct((np_, n_in_p), f32),   # x_bar
        jax.ShapeDtypeStruct((np_, nzp), f32),      # z
        jax.ShapeDtypeStruct((np_, kp), f32),       # q
        jax.ShapeDtypeStruct((np_, e1p), bf16),     # tra1
        jax.ShapeDtypeStruct((np_, e2p), bf16),     # tra2
        jax.ShapeDtypeStruct((np_, e3p), bf16),     # tra3
        jax.ShapeDtypeStruct((np_, e1p), bf16),     # support_1 = x @ g1
    )

    def tile_spec(last):
        return pl.BlockSpec((tm, last), lambda i: (i, 0))

    def full_spec(a):
        return pl.BlockSpec(a.shape, lambda i: (0, 0))

    ae_in_specs = [tile_spec(n_in_p)] + [full_spec(a) for a in ae_inputs[1:]]
    ae_out_specs = tuple(tile_spec(s.shape[1]) for s in ae_out_shape)

    ae_blocks = ([((tm, n_in_p), x_p.dtype)]
                 + [(a.shape, a.dtype) for a in ae_inputs[1:]]
                 + [((tm, s.shape[1]), s.dtype) for s in ae_out_shape])
    ae_flops = 2 * np_ * (2 * n_in_p * e1p + e1p * e2p + e2p * e3p + e3p * nzp
                          + nzp * d1p + d1p * d2p + d2p * d3p + d3p * n_in_p
                          + nzp * kp)
    ae_trans = 0 if (v + 1.0) / 2.0 == 1.0 else np_ * kp

    x_bar_p, z_p, q_p, tra1, tra2, tra3, sup = pl.pallas_call(
        functools.partial(_ae_kernel, v=float(v), n_clusters=n_clusters),
        grid=(np_ // tm,),
        in_specs=ae_in_specs,
        out_specs=ae_out_specs,
        out_shape=ae_out_shape,
        compiler_params=pltpu.CompilerParams(
            dimension_semantics=("parallel",),
            vmem_limit_bytes=_vmem_limit(ae_blocks)),
        cost_estimate=pl.CostEstimate(
            flops=ae_flops, transcendentals=ae_trans,
            bytes_accessed=_nbytes(*ae_inputs) + _nbytes(*ae_out_shape)),
    )(*ae_inputs)

    # GNN stack: each layer is a (row, contraction)-tiled pallas_call over adj.
    sup = _gnn_mid_call(adj_p, sup, tra1, padw(params["g2"]), sigma=sigma, tm=tm, tk=tk)
    sup = _gnn_mid_call(adj_p, sup, tra2, padw(params["g3"]), sigma=sigma, tm=tm, tk=tk)
    sup = _gnn_mid_call(adj_p, sup, tra3, padw(params["g4"]), sigma=sigma, tm=tm, tk=tk)
    sup = _gnn_mid_call(adj_p, sup, z_p, padw(params["g5"]), sigma=sigma, tm=tm, tk=tk)
    pred_p = _gnn_final_call(adj_p, sup, n_clusters=n_clusters, tm=tm, tk=tk)

    return (x_bar_p[:n, :n_input], q_p[:n, :n_clusters],
            pred_p[:n, :n_clusters], z_p[:n, :n_z])


def init_params(key, n_enc_1, n_enc_2, n_enc_3, n_dec_1, n_dec_2, n_dec_3,
                n_input, n_z, n_clusters):
    """Deterministic synthetic init. Linear weights stored as (in, out); biases as (1, out)."""
    ks = jax.random.split(key, 16)

    def w(k, din, dout, scale=0.1):
        return (scale * jax.random.normal(k, (din, dout))).astype(jnp.float32)

    def b(dout):
        return jnp.zeros((1, dout), jnp.float32)

    return {
        # AE encoder
        "we1": w(ks[0], n_input, n_enc_1), "be1": b(n_enc_1),
        "we2": w(ks[1], n_enc_1, n_enc_2), "be2": b(n_enc_2),
        "we3": w(ks[2], n_enc_2, n_enc_3), "be3": b(n_enc_3),
        "wz":  w(ks[3], n_enc_3, n_z),     "bz":  b(n_z),
        # AE decoder
        "wd1": w(ks[4], n_z, n_dec_1),     "bd1": b(n_dec_1),
        "wd2": w(ks[5], n_dec_1, n_dec_2), "bd2": b(n_dec_2),
        "wd3": w(ks[6], n_dec_2, n_dec_3), "bd3": b(n_dec_3),
        "wxb": w(ks[7], n_dec_3, n_input), "bxb": b(n_input),
        # GNN layers (GNNLayer: out = relu(adj @ (h @ W)))
        "g1": w(ks[8], n_input, n_enc_1),
        "g2": w(ks[9], n_enc_1, n_enc_2),
        "g3": w(ks[10], n_enc_2, n_enc_3),
        "g4": w(ks[11], n_enc_3, n_z),
        "g5": w(ks[12], n_z, n_clusters),
        # cluster centers (xavier-normal-ish)
        "cluster": w(ks[13], n_clusters, n_z, scale=0.2),
    }


if __name__ == "__main__":
    N = 64            # number of graph nodes
    n_input = 32
    n_enc_1, n_enc_2, n_enc_3 = 64, 64, 32
    n_dec_1, n_dec_2, n_dec_3 = 32, 64, 64
    n_z = 16
    n_clusters = 8

    key = jax.random.PRNGKey(0)
    kx, ka, kp = jax.random.split(key, 3)

    x = jax.random.normal(kx, (N, n_input), dtype=jnp.float32)

    # Dense, row-normalized adjacency with self-loops (stands in for torch.spmm's sparse adj).
    a = (jax.random.uniform(ka, (N, N)) < 0.1).astype(jnp.float32)
    a = jnp.maximum(a, a.T) + jnp.eye(N, dtype=jnp.float32)
    adj = a / jnp.sum(a, axis=1, keepdims=True)

    params = init_params(kp, n_enc_1, n_enc_2, n_enc_3, n_dec_1, n_dec_2, n_dec_3,
                         n_input, n_z, n_clusters)

    x_bar, q, predict, z = sdcn_forward(x, adj, params, v=1.0)
    jax.block_until_ready((x_bar, q, predict, z))

    assert x_bar.shape == (N, n_input)
    assert q.shape == (N, n_clusters)
    assert predict.shape == (N, n_clusters)
    assert z.shape == (N, n_z)
    # structural sanity: everything finite, soft assignments / softmax rows sum to 1
    assert bool(jnp.all(jnp.isfinite(x_bar))) and bool(jnp.all(jnp.isfinite(z)))
    assert bool(jnp.allclose(jnp.sum(q, axis=1), 1.0, atol=1e-3))
    assert bool(jnp.allclose(jnp.sum(predict, axis=1), 1.0, atol=1e-3))

    print("KERNEL_OK")
</pallas_src>

<mosaic_0001>
module attributes {stable_mosaic.version = 11 : i64} {
  func.func @_gnn_mid_kernel(%arg0: i32, %arg1: i32, %arg2: memref<128x128xbf16, #tpu.memory_space<vmem>>, %arg3: memref<128x128xbf16, #tpu.memory_space<vmem>>, %arg4: memref<128x128xbf16, #tpu.memory_space<vmem>>, %arg5: memref<128x128xbf16, #tpu.memory_space<vmem>>, %arg6: memref<128x128xbf16, #tpu.memory_space<vmem>>, %arg7: memref<128x128xf32, #tpu.memory_space<vmem>>) attributes {dimension_semantics = [#tpu.dimension_semantics<parallel>, #tpu.dimension_semantics<arbitrary>], iteration_bounds = array<i64: 1, 1>, scalar_prefetch = 0 : i64, scratch_operands = 1 : i64, tpu.core_type = #tpu.core_type<tc>, window_params = [{transform_indices = @transform_0, window_bounds = array<i64: 128, 128>}, {transform_indices = @transform_1, window_bounds = array<i64: 128, 128>}, {transform_indices = @transform_2, window_bounds = array<i64: 128, 128>}, {pipeline_mode = #tpu.pipeline_mode<synchronous>, transform_indices = @transform_3, window_bounds = array<i64: 128, 128>}, {transform_indices = @transform_4, window_bounds = array<i64: 128, 128>}]} {
    %c0_i32 = arith.constant 0 : i32
    %0 = arith.cmpi eq, %arg1, %c0_i32 : i32
    %1 = arith.extui %0 : i1 to i32
    %c0_i32_0 = arith.constant 0 : i32
    %2 = arith.cmpi ne, %1, %c0_i32_0 : i32
    scf.if %2 {
      %cst_10 = arith.constant 0.000000e+00 : f32
      %12 = vector.broadcast %cst_10 : f32 to vector<128x128xf32>
      %c0_11 = arith.constant 0 : index
      %c0_12 = arith.constant 0 : index
      %13 = vector.load %arg7[%c0_11, %c0_12] : memref<128x128xf32, #tpu.memory_space<vmem>>, vector<128x128xf32>
      tpu.vector_store %arg7[%c0_11, %c0_12], %12 {strides = array<i32>} : memref<128x128xf32, #tpu.memory_space<vmem>>, vector<128x128xf32>,
    } else {
    }
    %c0 = arith.constant 0 : index
    %c0_1 = arith.constant 0 : index
    %3 = vector.load %arg7[%c0, %c0_1] : memref<128x128xf32, #tpu.memory_space<vmem>>, vector<128x128xf32>
    %c0_2 = arith.constant 0 : index
    %c0_3 = arith.constant 0 : index
    %4 = vector.load %arg2[%c0_2, %c0_3] : memref<128x128xbf16, #tpu.memory_space<vmem>>, vector<128x128xbf16>
    %c0_4 = arith.constant 0 : index
    %c0_5 = arith.constant 0 : index
    %5 = vector.load %arg3[%c0_4, %c0_5] : memref<128x128xbf16, #tpu.memory_space<vmem>>, vector<128x128xbf16>
    %cst = arith.constant dense<0.000000e+00> : vector<128x128xf32>
    %6 = tpu.matmul %4, %5, %cst {dimension_numbers = #tpu.dot_dimension_numbers<[1], [0], [0], [1], [0, 0, 1, 1], [], []>} : vector<128x128xbf16>, vector<128x128xbf16>, vector<128x128xf32> -> vector<128x128xf32>
    %7 = arith.addf %3, %6 : vector<128x128xf32>
    %c0_6 = arith.constant 0 : index
    %c0_7 = arith.constant 0 : index
    %8 = vector.load %arg7[%c0_6, %c0_7] : memref<128x128xf32, #tpu.memory_space<vmem>>, vector<128x128xf32>
    tpu.vector_store %arg7[%c0_6, %c0_7], %7 {strides = array<i32>} : memref<128x128xf32, #tpu.memory_space<vmem>>, vector<128x128xf32>,
    %c0_i32_8 = arith.constant 0 : i32
    %9 = arith.cmpi eq, %arg1, %c0_i32_8 : i32
    %10 = arith.extui %9 : i1 to i32
    %c0_i32_9 = arith.constant 0 : i32
    %11 = arith.cmpi ne, %10, %c0_i32_9 : i32
    scf.if %11 {
      %c0_10 = arith.constant 0 : index
      %c0_11 = arith.constant 0 : index
      %12 = vector.load %arg7[%c0_10, %c0_11] : memref<128x128xf32, #tpu.memory_space<vmem>>, vector<128x128xf32>
      %cst_12 = arith.constant 0.000000e+00 : f32
      %13 = vector.broadcast %cst_12 : f32 to vector<128x128xf32>
      %14 = arith.maximumf %12, %13 : vector<128x128xf32>
      %cst_13 = arith.constant 5.000000e-01 : f32
      %15 = vector.broadcast %cst_13 : f32 to vector<128x128xf32>
      %16 = arith.mulf %15, %14 : vector<128x128xf32>
      %c0_14 = arith.constant 0 : index
      %c0_15 = arith.constant 0 : index
      %17 = vector.load %arg4[%c0_14, %c0_15] : memref<128x128xbf16, #tpu.memory_space<vmem>>, vector<128x128xbf16>
      %18 = arith.extf %17 : vector<128x128xbf16> to vector<128x128xf32>
      %cst_16 = arith.constant 5.000000e-01 : f32
      %19 = vector.broadcast %cst_16 : f32 to vector<128x128xf32>
      %20 = arith.mulf %19, %18 : vector<128x128xf32>
      %21 = arith.addf %16, %20 : vector<128x128xf32>
      %22 = arith.truncf %21 : vector<128x128xf32> to vector<128x128xbf16>
      %c0_17 = arith.constant 0 : index
      %c0_18 = arith.constant 0 : index
      %23 = vector.load %arg5[%c0_17, %c0_18] : memref<128x128xbf16, #tpu.memory_space<vmem>>, vector<128x128xbf16>
      %cst_19 = arith.constant dense<0.000000e+00> : vector<128x128xf32>
      %24 = tpu.matmul %22, %23, %cst_19 {dimension_numbers = #tpu.dot_dimension_numbers<[1], [0], [0], [1], [0, 0, 1, 1], [], []>} : vector<128x128xbf16>, vector<128x128xbf16>, vector<128x128xf32> -> vector<128x128xf32>
      %25 = arith.truncf %24 : vector<128x128xf32> to vector<128x128xbf16>
      %c0_20 = arith.constant 0 : index
      %c0_21 = arith.constant 0 : index
      %26 = vector.load %arg6[%c0_20, %c0_21] : memref<128x128xbf16, #tpu.memory_space<vmem>>, vector<128x128xbf16>
      tpu.vector_store %arg6[%c0_20, %c0_21], %25 {strides = array<i32>} : memref<128x128xbf16, #tpu.memory_space<vmem>>, vector<128x128xbf16>,
    } else {
    }
    return
  }
  func.func @transform_0(%arg0: i32, %arg1: i32) -> (i32, i32) {
    %c0_i32 = arith.constant 0 : i32
    return %arg0, %arg1 : i32, i32
  }
  func.func @transform_1(%arg0: i32, %arg1: i32) -> (i32, i32) {
    %c0_i32 = arith.constant 0 : i32
    %c0_i32_0 = arith.constant 0 : i32
    return %arg1, %c0_i32 : i32, i32
  }
  func.func @transform_2(%arg0: i32, %arg1: i32) -> (i32, i32) {
    %c0_i32 = arith.constant 0 : i32
    %c0_i32_0 = arith.constant 0 : i32
    return %arg0, %c0_i32 : i32, i32
  }
  func.func @transform_3(%arg0: i32, %arg1: i32) -> (i32, i32) {
    %c0_i32 = arith.constant 0 : i32
    %c0_i32_0 = arith.constant 0 : i32
    %c0_i32_1 = arith.constant 0 : i32
    return %c0_i32, %c0_i32_0 : i32, i32
  }
  func.func @transform_4(%arg0: i32, %arg1: i32) -> (i32, i32) {
    %c0_i32 = arith.constant 0 : i32
    %c0_i32_0 = arith.constant 0 : i32
    return %arg0, %c0_i32 : i32, i32
  }
}

module attributes {stable_mosaic.version = 11 : i64} {
  func.func @_gnn_mid_kernel(%arg0: i32, %arg1: i32, %arg2: memref<128x128xbf16, #tpu.memory_space<vmem>>, %arg3: memref<128x128xbf16, #tpu.memory_space<vmem>>, %arg4: memref<128x128xf32, #tpu.memory_space<vmem>>, %arg5: memref<128x128xbf16, #tpu.memory_space<vmem>>, %arg6: memref<128x128xbf16, #tpu.memory_space<vmem>>, %arg7: memref<128x128xf32, #tpu.memory_space<vmem>>) attributes {dimension_semantics = [#tpu.dimension_semantics<parallel>, #tpu.dimension_semantics<arbitrary>], iteration_bounds = array<i64: 1, 1>, scalar_prefetch = 0 : i64, scratch_operands = 1 : i64, tpu.core_type = #tpu.core_type<tc>, window_params = [{transform_indices = @transform_0, window_bounds = array<i64: 128, 128>}, {transform_indices = @transform_1, window_bounds = array<i64: 128, 128>}, {transform_indices = @transform_2, window_bounds = array<i64: 128, 128>}, {pipeline_mode = #tpu.pipeline_mode<synchronous>, transform_indices = @transform_3, window_bounds = array<i64: 128, 128>}, {transform_indices = @transform_4, window_bounds = array<i64: 128, 128>}]} {
    %c0_i32 = arith.constant 0 : i32
    %0 = arith.cmpi eq, %arg1, %c0_i32 : i32
    %1 = arith.extui %0 : i1 to i32
    %c0_i32_0 = arith.constant 0 : i32
    %2 = arith.cmpi ne, %1, %c0_i32_0 : i32
    scf.if %2 {
      %cst_10 = arith.constant 0.000000e+00 : f32
      %12 = vector.broadcast %cst_10 : f32 to vector<128x128xf32>
      %c0_11 = arith.constant 0 : index
      %c0_12 = arith.constant 0 : index
      %13 = vector.load %arg7[%c0_11, %c0_12] : memref<128x128xf32, #tpu.memory_space<vmem>>, vector<128x128xf32>
      tpu.vector_store %arg7[%c0_11, %c0_12], %12 {strides = array<i32>} : memref<128x128xf32, #tpu.memory_space<vmem>>, vector<128x128xf32>,
    } else {
    }
    %c0 = arith.constant 0 : index
    %c0_1 = arith.constant 0 : index
    %3 = vector.load %arg7[%c0, %c0_1] : memref<128x128xf32, #tpu.memory_space<vmem>>, vector<128x128xf32>
    %c0_2 = arith.constant 0 : index
    %c0_3 = arith.constant 0 : index
    %4 = vector.load %arg2[%c0_2, %c0_3] : memref<128x128xbf16, #tpu.memory_space<vmem>>, vector<128x128xbf16>
    %c0_4 = arith.constant 0 : index
    %c0_5 = arith.constant 0 : index
    %5 = vector.load %arg3[%c0_4, %c0_5] : memref<128x128xbf16, #tpu.memory_space<vmem>>, vector<128x128xbf16>
    %cst = arith.constant dense<0.000000e+00> : vector<128x128xf32>
    %6 = tpu.matmul %4, %5, %cst {dimension_numbers = #tpu.dot_dimension_numbers<[1], [0], [0], [1], [0, 0, 1, 1], [], []>} : vector<128x128xbf16>, vector<128x128xbf16>, vector<128x128xf32> -> vector<128x128xf32>
    %7 = arith.addf %3, %6 : vector<128x128xf32>
    %c0_6 = arith.constant 0 : index
    %c0_7 = arith.constant 0 : index
    %8 = vector.load %arg7[%c0_6, %c0_7] : memref<128x128xf32, #tpu.memory_space<vmem>>, vector<128x128xf32>
    tpu.vector_store %arg7[%c0_6, %c0_7], %7 {strides = array<i32>} : memref<128x128xf32, #tpu.memory_space<vmem>>, vector<128x128xf32>,
    %c0_i32_8 = arith.constant 0 : i32
    %9 = arith.cmpi eq, %arg1, %c0_i32_8 : i32
    %10 = arith.extui %9 : i1 to i32
    %c0_i32_9 = arith.constant 0 : i32
    %11 = arith.cmpi ne, %10, %c0_i32_9 : i32
    scf.if %11 {
      %c0_10 = arith.constant 0 : index
      %c0_11 = arith.constant 0 : index
      %12 = vector.load %arg7[%c0_10, %c0_11] : memref<128x128xf32, #tpu.memory_space<vmem>>, vector<128x128xf32>
      %cst_12 = arith.constant 0.000000e+00 : f32
      %13 = vector.broadcast %cst_12 : f32 to vector<128x128xf32>
      %14 = arith.maximumf %12, %13 : vector<128x128xf32>
      %cst_13 = arith.constant 5.000000e-01 : f32
      %15 = vector.broadcast %cst_13 : f32 to vector<128x128xf32>
      %16 = arith.mulf %15, %14 : vector<128x128xf32>
      %c0_14 = arith.constant 0 : index
      %c0_15 = arith.constant 0 : index
      %17 = vector.load %arg4[%c0_14, %c0_15] : memref<128x128xf32, #tpu.memory_space<vmem>>, vector<128x128xf32>
      %cst_16 = arith.constant 5.000000e-01 : f32
      %18 = vector.broadcast %cst_16 : f32 to vector<128x128xf32>
      %19 = arith.mulf %18, %17 : vector<128x128xf32>
      %20 = arith.addf %16, %19 : vector<128x128xf32>
      %21 = arith.truncf %20 : vector<128x128xf32> to vector<128x128xbf16>
      %c0_17 = arith.constant 0 : index
      %c0_18 = arith.constant 0 : index
      %22 = vector.load %arg5[%c0_17, %c0_18] : memref<128x128xbf16, #tpu.memory_space<vmem>>, vector<128x128xbf16>
      %cst_19 = arith.constant dense<0.000000e+00> : vector<128x128xf32>
      %23 = tpu.matmul %21, %22, %cst_19 {dimension_numbers = #tpu.dot_dimension_numbers<[1], [0], [0], [1], [0, 0, 1, 1], [], []>} : vector<128x128xbf16>, vector<128x128xbf16>, vector<128x128xf32> -> vector<128x128xf32>
      %24 = arith.truncf %23 : vector<128x128xf32> to vector<128x128xbf16>
      %c0_20 = arith.constant 0 : index
      %c0_21 = arith.constant 0 : index
      %25 = vector.load %arg6[%c0_20, %c0_21] : memref<128x128xbf16, #tpu.memory_space<vmem>>, vector<128x128xbf16>
      tpu.vector_store %arg6[%c0_20, %c0_21], %24 {strides = array<i32>} : memref<128x128xbf16, #tpu.memory_space<vmem>>, vector<128x128xbf16>,
    } else {
    }
    return
  }
  func.func @transform_0(%arg0: i32, %arg1: i32) -> (i32, i32) {
    %c0_i32 = arith.constant 0 : i32
    return %arg0, %arg1 : i32, i32
  }
  func.func @transform_1(%arg0: i32, %arg1: i32) -> (i32, i32) {
    %c0_i32 = arith.constant 0 : i32
    %c0_i32_0 = arith.constant 0 : i32
    return %arg1, %c0_i32 : i32, i32
  }
  func.func @transform_2(%arg0: i32, %arg1: i32) -> (i32, i32) {
    %c0_i32 = arith.constant 0 : i32
    %c0_i32_0 = arith.constant 0 : i32
    return %arg0, %c0_i32 : i32, i32
  }
  func.func @transform_3(%arg0: i32, %arg1: i32) -> (i32, i32) {
    %c0_i32 = arith.constant 0 : i32
    %c0_i32_0 = arith.constant 0 : i32
    %c0_i32_1 = arith.constant 0 : i32
    return %c0_i32, %c0_i32_0 : i32, i32
  }
  func.func @transform_4(%arg0: i32, %arg1: i32) -> (i32, i32) {
    %c0_i32 = arith.constant 0 : i32
    %c0_i32_0 = arith.constant 0 : i32
    return %arg0, %c0_i32 : i32, i32
  }
}

module attributes {stable_mosaic.version = 11 : i64} {
  func.func @_gnn_final_kernel(%arg0: i32, %arg1: i32, %arg2: memref<128x128xbf16, #tpu.memory_space<vmem>>, %arg3: memref<128x128xbf16, #tpu.memory_space<vmem>>, %arg4: memref<128x128xf32, #tpu.memory_space<vmem>>, %arg5: memref<128x128xf32, #tpu.memory_space<vmem>>) attributes {dimension_semantics = [#tpu.dimension_semantics<parallel>, #tpu.dimension_semantics<arbitrary>], iteration_bounds = array<i64: 1, 1>, scalar_prefetch = 0 : i64, scratch_operands = 1 : i64, tpu.core_type = #tpu.core_type<tc>, window_params = [{transform_indices = @transform_0, window_bounds = array<i64: 128, 128>}, {transform_indices = @transform_1, window_bounds = array<i64: 128, 128>}, {transform_indices = @transform_2, window_bounds = array<i64: 128, 128>}]} {
    %c0_i32 = arith.constant 0 : i32
    %0 = arith.cmpi eq, %arg1, %c0_i32 : i32
    %1 = arith.extui %0 : i1 to i32
    %c0_i32_0 = arith.constant 0 : i32
    %2 = arith.cmpi ne, %1, %c0_i32_0 : i32
    scf.if %2 {
      %cst_10 = arith.constant 0.000000e+00 : f32
      %12 = vector.broadcast %cst_10 : f32 to vector<128x128xf32>
      %c0_11 = arith.constant 0 : index
      %c0_12 = arith.constant 0 : index
      %13 = vector.load %arg5[%c0_11, %c0_12] : memref<128x128xf32, #tpu.memory_space<vmem>>, vector<128x128xf32>
      tpu.vector_store %arg5[%c0_11, %c0_12], %12 {strides = array<i32>} : memref<128x128xf32, #tpu.memory_space<vmem>>, vector<128x128xf32>,
    } else {
    }
    %c0 = arith.constant 0 : index
    %c0_1 = arith.constant 0 : index
    %3 = vector.load %arg5[%c0, %c0_1] : memref<128x128xf32, #tpu.memory_space<vmem>>, vector<128x128xf32>
    %c0_2 = arith.constant 0 : index
    %c0_3 = arith.constant 0 : index
    %4 = vector.load %arg2[%c0_2, %c0_3] : memref<128x128xbf16, #tpu.memory_space<vmem>>, vector<128x128xbf16>
    %c0_4 = arith.constant 0 : index
    %c0_5 = arith.constant 0 : index
    %5 = vector.load %arg3[%c0_4, %c0_5] : memref<128x128xbf16, #tpu.memory_space<vmem>>, vector<128x128xbf16>
    %cst = arith.constant dense<0.000000e+00> : vector<128x128xf32>
    %6 = tpu.matmul %4, %5, %cst {dimension_numbers = #tpu.dot_dimension_numbers<[1], [0], [0], [1], [0, 0, 1, 1], [], []>} : vector<128x128xbf16>, vector<128x128xbf16>, vector<128x128xf32> -> vector<128x128xf32>
    %7 = arith.addf %3, %6 : vector<128x128xf32>
    %c0_6 = arith.constant 0 : index
    %c0_7 = arith.constant 0 : index
    %8 = vector.load %arg5[%c0_6, %c0_7] : memref<128x128xf32, #tpu.memory_space<vmem>>, vector<128x128xf32>
    tpu.vector_store %arg5[%c0_6, %c0_7], %7 {strides = array<i32>} : memref<128x128xf32, #tpu.memory_space<vmem>>, vector<128x128xf32>,
    %c0_i32_8 = arith.constant 0 : i32
    %9 = arith.cmpi eq, %arg1, %c0_i32_8 : i32
    %10 = arith.extui %9 : i1 to i32
    %c0_i32_9 = arith.constant 0 : i32
    %11 = arith.cmpi ne, %10, %c0_i32_9 : i32
    scf.if %11 {
      %c0_10 = arith.constant 0 : index
      %c0_11 = arith.constant 0 : index
      %12 = vector.load %arg5[%c0_10, %c0_11] : memref<128x128xf32, #tpu.memory_space<vmem>>, vector<128x128xf32>
      %13 = tpu.iota {dimensions = array<i32: 1>} : vector<128x128xi32>
      %c8_i32 = arith.constant 8 : i32
      %14 = vector.broadcast %c8_i32 : i32 to vector<128x128xi32>
      %15 = arith.cmpi slt, %13, %14 : vector<128x128xi32>
      %cst_12 = arith.constant -1.000000e+30 : f32
      %16 = vector.broadcast %cst_12 : f32 to vector<128x128xf32>
      %17 = arith.select %15, %12, %16 : vector<128x128xi1>, vector<128x128xf32>
      %cst_13 = arith.constant dense<0xFF800000> : vector<128xf32>
      %18 = vector.multi_reduction <maximumf>, %17, %cst_13 [1] : vector<128x128xf32> to vector<128xf32>
      %19 = vector.shape_cast %18 : vector<128xf32> to vector<128x1xf32>
      %20 = vector.broadcast %19 : vector<128x1xf32> to vector<128x128xf32>
      %21 = arith.subf %17, %20 : vector<128x128xf32>
      %22 = math.exp %21 : vector<128x128xf32>
      %cst_14 = arith.constant dense<0.000000e+00> : vector<128xf32>
      %23 = vector.multi_reduction <add>, %22, %cst_14 [1] : vector<128x128xf32> to vector<128xf32>
      %24 = vector.shape_cast %23 : vector<128xf32> to vector<128x1xf32>
      %25 = vector.broadcast %24 : vector<128x1xf32> to vector<128x128xf32>
      %26 = arith.divf %22, %25 : vector<128x128xf32>
      %c0_15 = arith.constant 0 : index
      %c0_16 = arith.constant 0 : index
      %27 = vector.load %arg4[%c0_15, %c0_16] : memref<128x128xf32, #tpu.memory_space<vmem>>, vector<128x128xf32>
      tpu.vector_store %arg4[%c0_15, %c0_16], %26 {strides = array<i32>} : memref<128x128xf32, #tpu.memory_space<vmem>>, vector<128x128xf32>,
    } else {
    }
    return
  }
  func.func @transform_0(%arg0: i32, %arg1: i32) -> (i32, i32) {
    %c0_i32 = arith.constant 0 : i32
    return %arg0, %arg1 : i32, i32
  }
  func.func @transform_1(%arg0: i32, %arg1: i32) -> (i32, i32) {
    %c0_i32 = arith.constant 0 : i32
    %c0_i32_0 = arith.constant 0 : i32
    return %arg1, %c0_i32 : i32, i32
  }
  func.func @transform_2(%arg0: i32, %arg1: i32) -> (i32, i32) {
    %c0_i32 = arith.constant 0 : i32
    %c0_i32_0 = arith.constant 0 : i32
    return %arg0, %c0_i32 : i32, i32
  }
}

module attributes {stable_mosaic.version = 11 : i64} {
  func.func @_ae_kernel(%arg0: i32, %arg1: memref<128x128xbf16, #tpu.memory_space<vmem>>, %arg2: memref<128x128xbf16, #tpu.memory_space<vmem>>, %arg3: memref<1x128xf32, #tpu.memory_space<vmem>>, %arg4: memref<128x128xbf16, #tpu.memory_space<vmem>>, %arg5: memref<1x128xf32, #tpu.memory_space<vmem>>, %arg6: memref<128x128xbf16, #tpu.memory_space<vmem>>, %arg7: memref<1x128xf32, #tpu.memory_space<vmem>>, %arg8: memref<128x128xbf16, #tpu.memory_space<vmem>>, %arg9: memref<1x128xf32, #tpu.memory_space<vmem>>, %arg10: memref<128x128xbf16, #tpu.memory_space<vmem>>, %arg11: memref<1x128xf32, #tpu.memory_space<vmem>>, %arg12: memref<128x128xbf16, #tpu.memory_space<vmem>>, %arg13: memref<1x128xf32, #tpu.memory_space<vmem>>, %arg14: memref<128x128xbf16, #tpu.memory_space<vmem>>, %arg15: memref<1x128xf32, #tpu.memory_space<vmem>>, %arg16: memref<128x128xbf16, #tpu.memory_space<vmem>>, %arg17: memref<1x128xf32, #tpu.memory_space<vmem>>, %arg18: memref<128x128xbf16, #tpu.memory_space<vmem>>, %arg19: memref<128x128xf32, #tpu.memory_space<vmem>>, %arg20: memref<128x128xf32, #tpu.memory_space<vmem>>, %arg21: memref<128x128xf32, #tpu.memory_space<vmem>>, %arg22: memref<128x128xf32, #tpu.memory_space<vmem>>, %arg23: memref<128x128xbf16, #tpu.memory_space<vmem>>, %arg24: memref<128x128xbf16, #tpu.memory_space<vmem>>, %arg25: memref<128x128xbf16, #tpu.memory_space<vmem>>, %arg26: memref<128x128xbf16, #tpu.memory_space<vmem>>) attributes {dimension_semantics = [#tpu.dimension_semantics<parallel>], iteration_bounds = array<i64: 1>, scalar_prefetch = 0 : i64, scratch_operands = 0 : i64, tpu.core_type = #tpu.core_type<tc>, window_params = [{transform_indices = @transform_0, window_bounds = array<i64: 128, 128>}, {pipeline_mode = #tpu.pipeline_mode<synchronous>, transform_indices = @transform_1, window_bounds = array<i64: 128, 128>}, {pipeline_mode = #tpu.pipeline_mode<synchronous>, transform_indices = @transform_2, window_bounds = array<i64: 1, 128>}, {pipeline_mode = #tpu.pipeline_mode<synchronous>, transform_indices = @transform_3, window_bounds = array<i64: 128, 128>}, {pipeline_mode = #tpu.pipeline_mode<synchronous>, transform_indices = @transform_4, window_bounds = array<i64: 1, 128>}, {pipeline_mode = #tpu.pipeline_mode<synchronous>, transform_indices = @transform_5, window_bounds = array<i64: 128, 128>}, {pipeline_mode = #tpu.pipeline_mode<synchronous>, transform_indices = @transform_6, window_bounds = array<i64: 1, 128>}, {pipeline_mode = #tpu.pipeline_mode<synchronous>, transform_indices = @transform_7, window_bounds = array<i64: 128, 128>}, {pipeline_mode = #tpu.pipeline_mode<synchronous>, transform_indices = @transform_8, window_bounds = array<i64: 1, 128>}, {pipeline_mode = #tpu.pipeline_mode<synchronous>, transform_indices = @transform_9, window_bounds = array<i64: 128, 128>}, {pipeline_mode = #tpu.pipeline_mode<synchronous>, transform_indices = @transform_10, window_bounds = array<i64: 1, 128>}, {pipeline_mode = #tpu.pipeline_mode<synchronous>, transform_indices = @transform_11, window_bounds = array<i64: 128, 128>}, {pipeline_mode = #tpu.pipeline_mode<synchronous>, transform_indices = @transform_12, window_bounds = array<i64: 1, 128>}, {pipeline_mode = #tpu.pipeline_mode<synchronous>, transform_indices = @transform_13, window_bounds = array<i64: 128, 128>}, {pipeline_mode = #tpu.pipeline_mode<synchronous>, transform_indices = @transform_14, window_bounds = array<i64: 1, 128>}, {pipeline_mode = #tpu.pipeline_mode<synchronous>, transform_indices = @transform_15, window_bounds = array<i64: 128, 128>}, {pipeline_mode = #tpu.pipeline_mode<synchronous>, transform_indices = @transform_16, window_bounds = array<i64: 1, 128>}, {pipeline_mode = #tpu.pipeline_mode<synchronous>, transform_indices = @transform_17, window_bounds = array<i64: 128, 128>}, {pipeline_mode = #tpu.pipeline_mode<synchronous>, transform_indices = @transform_18, window_bounds = array<i64: 128, 128>}, {transform_indices = @transform_19, window_bounds = array<i64: 128, 128>}, {transform_indices = @transform_20, window_bounds = array<i64: 128, 128>}, {transform_indices = @transform_21, window_bounds = array<i64: 128, 128>}, {transform_indices = @transform_22, window_bounds = array<i64: 128, 128>}, {transform_indices = @transform_23, window_bounds = array<i64: 128, 128>}, {transform_indices = @transform_24, window_bounds = array<i64: 128, 128>}, {transform_indices = @transform_25, window_bounds = array<i64: 128, 128>}]} {
    %c0 = arith.constant 0 : index
    %c0_0 = arith.constant 0 : index
    %0 = vector.load %arg1[%c0, %c0_0] : memref<128x128xbf16, #tpu.memory_space<vmem>>, vector<128x128xbf16>
    %c0_1 = arith.constant 0 : index
    %c0_2 = arith.constant 0 : index
    %1 = vector.load %arg2[%c0_1, %c0_2] : memref<128x128xbf16, #tpu.memory_space<vmem>>, vector<128x128xbf16>
    %cst = arith.constant dense<0.000000e+00> : vector<128x128xf32>
    %2 = tpu.matmul %0, %1, %cst {dimension_numbers = #tpu.dot_dimension_numbers<[1], [0], [0], [1], [0, 0, 1, 1], [], []>} : vector<128x128xbf16>, vector<128x128xbf16>, vector<128x128xf32> -> vector<128x128xf32>
    %c0_3 = arith.constant 0 : index
    %c0_4 = arith.constant 0 : index
    %3 = vector.load %arg3[%c0_3, %c0_4] : memref<1x128xf32, #tpu.memory_space<vmem>>, vector<1x128xf32>
    %4 = vector.broadcast %3 : vector<1x128xf32> to vector<128x128xf32>
    %5 = arith.addf %2, %4 : vector<128x128xf32>
    %cst_5 = arith.constant 0.000000e+00 : f32
    %6 = vector.broadcast %cst_5 : f32 to vector<128x128xf32>
    %7 = arith.maximumf %5, %6 : vector<128x128xf32>
    %8 = arith.truncf %7 : vector<128x128xf32> to vector<128x128xbf16>
    %c0_6 = arith.constant 0 : index
    %c0_7 = arith.constant 0 : index
    %9 = vector.load %arg4[%c0_6, %c0_7] : memref<128x128xbf16, #tpu.memory_space<vmem>>, vector<128x128xbf16>
    %cst_8 = arith.constant dense<0.000000e+00> : vector<128x128xf32>
    %10 = tpu.matmul %8, %9, %cst_8 {dimension_numbers = #tpu.dot_dimension_numbers<[1], [0], [0], [1], [0, 0, 1, 1], [], []>} : vector<128x128xbf16>, vector<128x128xbf16>, vector<128x128xf32> -> vector<128x128xf32>
    %c0_9 = arith.constant 0 : index
    %c0_10 = arith.constant 0 : index
    %11 = vector.load %arg5[%c0_9, %c0_10] : memref<1x128xf32, #tpu.memory_space<vmem>>, vector<1x128xf32>
    %12 = vector.broadcast %11 : vector<1x128xf32> to vector<128x128xf32>
    %13 = arith.addf %10, %12 : vector<128x128xf32>
    %cst_11 = arith.constant 0.000000e+00 : f32
    %14 = vector.broadcast %cst_11 : f32 to vector<128x128xf32>
    %15 = arith.maximumf %13, %14 : vector<128x128xf32>
    %16 = arith.truncf %15 : vector<128x128xf32> to vector<128x128xbf16>
    %c0_12 = arith.constant 0 : index
    %c0_13 = arith.constant 0 : index
    %17 = vector.load %arg6[%c0_12, %c0_13] : memref<128x128xbf16, #tpu.memory_space<vmem>>, vector<128x128xbf16>
    %cst_14 = arith.constant dense<0.000000e+00> : vector<128x128xf32>
    %18 = tpu.matmul %16, %17, %cst_14 {dimension_numbers = #tpu.dot_dimension_numbers<[1], [0], [0], [1], [0, 0, 1, 1], [], []>} : vector<128x128xbf16>, vector<128x128xbf16>, vector<128x128xf32> -> vector<128x128xf32>
    %c0_15 = arith.constant 0 : index
    %c0_16 = arith.constant 0 : index
    %19 = vector.load %arg7[%c0_15, %c0_16] : memref<1x128xf32, #tpu.memory_space<vmem>>, vector<1x128xf32>
    %20 = vector.broadcast %19 : vector<1x128xf32> to vector<128x128xf32>
    %21 = arith.addf %18, %20 : vector<128x128xf32>
    %cst_17 = arith.constant 0.000000e+00 : f32
    %22 = vector.broadcast %cst_17 : f32 to vector<128x128xf32>
    %23 = arith.maximumf %21, %22 : vector<128x128xf32>
    %24 = arith.truncf %23 : vector<128x128xf32> to vector<128x128xbf16>
    %c0_18 = arith.constant 0 : index
    %c0_19 = arith.constant 0 : index
    %25 = vector.load %arg8[%c0_18, %c0_19] : memref<128x128xbf16, #tpu.memory_space<vmem>>, vector<128x128xbf16>
    %cst_20 = arith.constant dense<0.000000e+00> : vector<128x128xf32>
    %26 = tpu.matmul %24, %25, %cst_20 {dimension_numbers = #tpu.dot_dimension_numbers<[1], [0], [0], [1], [0, 0, 1, 1], [], []>} : vector<128x128xbf16>, vector<128x128xbf16>, vector<128x128xf32> -> vector<128x128xf32>
    %c0_21 = arith.constant 0 : index
    %c0_22 = arith.constant 0 : index
    %27 = vector.load %arg9[%c0_21, %c0_22] : memref<1x128xf32, #tpu.memory_space<vmem>>, vector<1x128xf32>
    %28 = vector.broadcast %27 : vector<1x128xf32> to vector<128x128xf32>
    %29 = arith.addf %26, %28 : vector<128x128xf32>
    %30 = arith.truncf %29 : vector<128x128xf32> to vector<128x128xbf16>
    %c0_23 = arith.constant 0 : index
    %c0_24 = arith.constant 0 : index
    %31 = vector.load %arg10[%c0_23, %c0_24] : memref<128x128xbf16, #tpu.memory_space<vmem>>, vector<128x128xbf16>
    %cst_25 = arith.constant dense<0.000000e+00> : vector<128x128xf32>
    %32 = tpu.matmul %30, %31, %cst_25 {dimension_numbers = #tpu.dot_dimension_numbers<[1], [0], [0], [1], [0, 0, 1, 1], [], []>} : vector<128x128xbf16>, vector<128x128xbf16>, vector<128x128xf32> -> vector<128x128xf32>
    %c0_26 = arith.constant 0 : index
    %c0_27 = arith.constant 0 : index
    %33 = vector.load %arg11[%c0_26, %c0_27] : memref<1x128xf32, #tpu.memory_space<vmem>>, vector<1x128xf32>
    %34 = vector.broadcast %33 : vector<1x128xf32> to vector<128x128xf32>
    %35 = arith.addf %32, %34 : vector<128x128xf32>
    %cst_28 = arith.constant 0.000000e+00 : f32
    %36 = vector.broadcast %cst_28 : f32 to vector<128x128xf32>
    %37 = arith.maximumf %35, %36 : vector<128x128xf32>
    %38 = arith.truncf %37 : vector<128x128xf32> to vector<128x128xbf16>
    %c0_29 = arith.constant 0 : index
    %c0_30 = arith.constant 0 : index
    %39 = vector.load %arg12[%c0_29, %c0_30] : memref<128x128xbf16, #tpu.memory_space<vmem>>, vector<128x128xbf16>
    %cst_31 = arith.constant dense<0.000000e+00> : vector<128x128xf32>
    %40 = tpu.matmul %38, %39, %cst_31 {dimension_numbers = #tpu.dot_dimension_numbers<[1], [0], [0], [1], [0, 0, 1, 1], [], []>} : vector<128x128xbf16>, vector<128x128xbf16>, vector<128x128xf32> -> vector<128x128xf32>
    %c0_32 = arith.constant 0 : index
    %c0_33 = arith.constant 0 : index
    %41 = vector.load %arg13[%c0_32, %c0_33] : memref<1x128xf32, #tpu.memory_space<vmem>>, vector<1x128xf32>
    %42 = vector.broadcast %41 : vector<1x128xf32> to vector<128x128xf32>
    %43 = arith.addf %40, %42 : vector<128x128xf32>
    %cst_34 = arith.constant 0.000000e+00 : f32
    %44 = vector.broadcast %cst_34 : f32 to vector<128x128xf32>
    %45 = arith.maximumf %43, %44 : vector<128x128xf32>
    %46 = arith.truncf %45 : vector<128x128xf32> to vector<128x128xbf16>
    %c0_35 = arith.constant 0 : index
    %c0_36 = arith.constant 0 : index
    %47 = vector.load %arg14[%c0_35, %c0_36] : memref<128x128xbf16, #tpu.memory_space<vmem>>, vector<128x128xbf16>
    %cst_37 = arith.constant dense<0.000000e+00> : vector<128x128xf32>
    %48 = tpu.matmul %46, %47, %cst_37 {dimension_numbers = #tpu.dot_dimension_numbers<[1], [0], [0], [1], [0, 0, 1, 1], [], []>} : vector<128x128xbf16>, vector<128x128xbf16>, vector<128x128xf32> -> vector<128x128xf32>
    %c0_38 = arith.constant 0 : index
    %c0_39 = arith.constant 0 : index
    %49 = vector.load %arg15[%c0_38, %c0_39] : memref<1x128xf32, #tpu.memory_space<vmem>>, vector<1x128xf32>
    %50 = vector.broadcast %49 : vector<1x128xf32> to vector<128x128xf32>
    %51 = arith.addf %48, %50 : vector<128x128xf32>
    %cst_40 = arith.constant 0.000000e+00 : f32
    %52 = vector.broadcast %cst_40 : f32 to vector<128x128xf32>
    %53 = arith.maximumf %51, %52 : vector<128x128xf32>
    %54 = arith.truncf %53 : vector<128x128xf32> to vector<128x128xbf16>
    %c0_41 = arith.constant 0 : index
    %c0_42 = arith.constant 0 : index
    %55 = vector.load %arg16[%c0_41, %c0_42] : memref<128x128xbf16, #tpu.memory_space<vmem>>, vector<128x128xbf16>
    %cst_43 = arith.constant dense<0.000000e+00> : vector<128x128xf32>
    %56 = tpu.matmul %54, %55, %cst_43 {dimension_numbers = #tpu.dot_dimension_numbers<[1], [0], [0], [1], [0, 0, 1, 1], [], []>} : vector<128x128xbf16>, vector<128x128xbf16>, vector<128x128xf32> -> vector<128x128xf32>
    %c0_44 = arith.constant 0 : index
    %c0_45 = arith.constant 0 : index
    %57 = vector.load %arg17[%c0_44, %c0_45] : memref<1x128xf32, #tpu.memory_space<vmem>>, vector<1x128xf32>
    %58 = vector.broadcast %57 : vector<1x128xf32> to vector<128x128xf32>
    %59 = arith.addf %56, %58 : vector<128x128xf32>
    %c0_46 = arith.constant 0 : index
    %c0_47 = arith.constant 0 : index
    %60 = vector.load %arg18[%c0_46, %c0_47] : memref<128x128xbf16, #tpu.memory_space<vmem>>, vector<128x128xbf16>
    %cst_48 = arith.constant dense<0.000000e+00> : vector<128x128xf32>
    %61 = tpu.matmul %0, %60, %cst_48 {dimension_numbers = #tpu.dot_dimension_numbers<[1], [0], [0], [1], [0, 0, 1, 1], [], []>} : vector<128x128xbf16>, vector<128x128xbf16>, vector<128x128xf32> -> vector<128x128xf32>
    %c0_49 = arith.constant 0 : index
    %c0_50 = arith.constant 0 : index
    %62 = vector.load %arg19[%c0_49, %c0_50] : memref<128x128xf32, #tpu.memory_space<vmem>>, vector<128x128xf32>
    %63 = arith.truncf %62 : vector<128x128xf32> to vector<128x128xbf16>
    %cst_51 = arith.constant dense<0.000000e+00> : vector<128x128xf32>
    %64 = tpu.matmul %30, %63, %cst_51 {dimension_numbers = #tpu.dot_dimension_numbers<[1], [0], [0], [1], [0, 0, 1, 1], [], []>} : vector<128x128xbf16>, vector<128x128xbf16>, vector<128x128xf32> -> vector<128x128xf32>
    %65 = arith.mulf %29, %29 : vector<128x128xf32>
    %cst_52 = arith.constant dense<0.000000e+00> : vector<128xf32>
    %66 = vector.multi_reduction <add>, %65, %cst_52 [1] : vector<128x128xf32> to vector<128xf32>
    %67 = vector.shape_cast %66 : vector<128xf32> to vector<128x1xf32>
    %68 = arith.mulf %62, %62 : vector<128x128xf32>
    %cst_53 = arith.constant dense<0.000000e+00> : vector<128xf32>
    %69 = vector.multi_reduction <add>, %68, %cst_53 [0] : vector<128x128xf32> to vector<128xf32>
    %70 = vector.shape_cast %69 : vector<128xf32> to vector<1x128xf32>
    %71 = vector.broadcast %67 : vector<128x1xf32> to vector<128x128xf32>
    %72 = vector.broadcast %70 : vector<1x128xf32> to vector<128x128xf32>
    %73 = arith.addf %71, %72 : vector<128x128xf32>
    %cst_54 = arith.constant 2.000000e+00 : f32
    %74 = vector.broadcast %cst_54 : f32 to vector<128x128xf32>
    %75 = arith.mulf %74, %64 : vector<128x128xf32>
    %76 = arith.subf %73, %75 : vector<128x128xf32>
    %cst_55 = arith.constant 0.000000e+00 : f32
    %77 = vector.broadcast %cst_55 : f32 to vector<128x128xf32>
    %78 = arith.maximumf %76, %77 : vector<128x128xf32>
    %cst_56 = arith.constant 1.000000e+00 : f32
    %79 = vector.broadcast %cst_56 : f32 to vector<128x128xf32>
    %80 = arith.addf %79, %78 : vector<128x128xf32>
    %cst_57 = arith.constant 1.000000e+00 : f32
    %81 = vector.broadcast %cst_57 : f32 to vector<128x128xf32>
    %82 = arith.divf %81, %80 : vector<128x128xf32>
    %83 = tpu.iota {dimensions = array<i32: 1>} : vector<128x128xi32>
    %c8_i32 = arith.constant 8 : i32
    %84 = vector.broadcast %c8_i32 : i32 to vector<128x128xi32>
    %85 = arith.cmpi slt, %83, %84 : vector<128x128xi32>
    %cst_58 = arith.constant 0.000000e+00 : f32
    %86 = vector.broadcast %cst_58 : f32 to vector<128x128xf32>
    %87 = arith.select %85, %82, %86 : vector<128x128xi1>, vector<128x128xf32>
    %cst_59 = arith.constant dense<0.000000e+00> : vector<128xf32>
    %88 = vector.multi_reduction <add>, %87, %cst_59 [1] : vector<128x128xf32> to vector<128xf32>
    %89 = vector.shape_cast %88 : vector<128xf32> to vector<128x1xf32>
    %90 = vector.broadcast %89 : vector<128x1xf32> to vector<128x128xf32>
    %91 = arith.divf %87, %90 : vector<128x128xf32>
    %c0_60 = arith.constant 0 : index
    %c0_61 = arith.constant 0 : index
    %92 = vector.load %arg20[%c0_60, %c0_61] : memref<128x128xf32, #tpu.memory_space<vmem>>, vector<128x128xf32>
    tpu.vector_store %arg20[%c0_60, %c0_61], %59 {strides = array<i32>} : memref<128x128xf32, #tpu.memory_space<vmem>>, vector<128x128xf32>,
    %c0_62 = arith.constant 0 : index
    %c0_63 = arith.constant 0 : index
    %93 = vector.load %arg21[%c0_62, %c0_63] : memref<128x128xf32, #tpu.memory_space<vmem>>, vector<128x128xf32>
    tpu.vector_store %arg21[%c0_62, %c0_63], %29 {strides = array<i32>} : memref<128x128xf32, #tpu.memory_space<vmem>>, vector<128x128xf32>,
    %c0_64 = arith.constant 0 : index
    %c0_65 = arith.constant 0 : index
    %94 = vector.load %arg22[%c0_64, %c0_65] : memref<128x128xf32, #tpu.memory_space<vmem>>, vector<128x128xf32>
    tpu.vector_store %arg22[%c0_64, %c0_65], %91 {strides = array<i32>} : memref<128x128xf32, #tpu.memory_space<vmem>>, vector<128x128xf32>,
    %95 = arith.truncf %7 : vector<128x128xf32> to vector<128x128xbf16>
    %c0_66 = arith.constant 0 : index
    %c0_67 = arith.constant 0 : index
    %96 = vector.load %arg23[%c0_66, %c0_67] : memref<128x128xbf16, #tpu.memory_space<vmem>>, vector<128x128xbf16>
    tpu.vector_store %arg23[%c0_66, %c0_67], %95 {strides = array<i32>} : memref<128x128xbf16, #tpu.memory_space<vmem>>, vector<128x128xbf16>,
    %97 = arith.truncf %15 : vector<128x128xf32> to vector<128x128xbf16>
    %c0_68 = arith.constant 0 : index
    %c0_69 = arith.constant 0 : index
    %98 = vector.load %arg24[%c0_68, %c0_69] : memref<128x128xbf16, #tpu.memory_space<vmem>>, vector<128x128xbf16>
    tpu.vector_store %arg24[%c0_68, %c0_69], %97 {strides = array<i32>} : memref<128x128xbf16, #tpu.memory_space<vmem>>, vector<128x128xbf16>,
    %99 = arith.truncf %23 : vector<128x128xf32> to vector<128x128xbf16>
    %c0_70 = arith.constant 0 : index
    %c0_71 = arith.constant 0 : index
    %100 = vector.load %arg25[%c0_70, %c0_71] : memref<128x128xbf16, #tpu.memory_space<vmem>>, vector<128x128xbf16>
    tpu.vector_store %arg25[%c0_70, %c0_71], %99 {strides = array<i32>} : memref<128x128xbf16, #tpu.memory_space<vmem>>, vector<128x128xbf16>,
    %101 = arith.truncf %61 : vector<128x128xf32> to vector<128x128xbf16>
    %c0_72 = arith.constant 0 : index
    %c0_73 = arith.constant 0 : index
    %102 = vector.load %arg26[%c0_72, %c0_73] : memref<128x128xbf16, #tpu.memory_space<vmem>>, vector<128x128xbf16>
    tpu.vector_store %arg26[%c0_72, %c0_73], %101 {strides = array<i32>} : memref<128x128xbf16, #tpu.memory_space<vmem>>, vector<128x128xbf16>,
    return
  }
  func.func @transform_0(%arg0: i32) -> (i32, i32) {
    %c0_i32 = arith.constant 0 : i32
    %c0_i32_0 = arith.constant 0 : i32
    return %arg0, %c0_i32 : i32, i32
  }
  func.func @transform_1(%arg0: i32) -> (i32, i32) {
    %c0_i32 = arith.constant 0 : i32
    %c0_i32_0 = arith.constant 0 : i32
    %c0_i32_1 = arith.constant 0 : i32
    return %c0_i32, %c0_i32_0 : i32, i32
  }
  func.func @transform_2(%arg0: i32) -> (i32, i32) {
    %c0_i32 = arith.constant 0 : i32
    %c0_i32_0 = arith.constant 0 : i32
    %c0_i32_1 = arith.constant 0 : i32
    return %c0_i32, %c0_i32_0 : i32, i32
  }
  func.func @transform_3(%arg0: i32) -> (i32, i32) {
    %c0_i32 = arith.constant 0 : i32
    %c0_i32_0 = arith.constant 0 : i32
    %c0_i32_1 = arith.constant 0 : i32
    return %c0_i32, %c0_i32_0 : i32, i32
  }
  func.func @transform_4(%arg0: i32) -> (i32, i32) {
    %c0_i32 = arith.constant 0 : i32
    %c0_i32_0 = arith.constant 0 : i32
    %c0_i32_1 = arith.constant 0 : i32
    return %c0_i32, %c0_i32_0 : i32, i32
  }
  func.func @transform_5(%arg0: i32) -> (i32, i32) {
    %c0_i32 = arith.constant 0 : i32
    %c0_i32_0 = arith.constant 0 : i32
    %c0_i32_1 = arith.constant 0 : i32
    return %c0_i32, %c0_i32_0 : i32, i32
  }
  func.func @transform_6(%arg0: i32) -> (i32, i32) {
    %c0_i32 = arith.constant 0 : i32
    %c0_i32_0 = arith.constant 0 : i32
    %c0_i32_1 = arith.constant 0 : i32
    return %c0_i32, %c0_i32_0 : i32, i32
  }
  func.func @transform_7(%arg0: i32) -> (i32, i32) {
    %c0_i32 = arith.constant 0 : i32
    %c0_i32_0 = arith.constant 0 : i32
    %c0_i32_1 = arith.constant 0 : i32
    return %c0_i32, %c0_i32_0 : i32, i32
  }
  func.func @transform_8(%arg0: i32) -> (i32, i32) {
    %c0_i32 = arith.constant 0 : i32
    %c0_i32_0 = arith.constant 0 : i32
    %c0_i32_1 = arith.constant 0 : i32
    return %c0_i32, %c0_i32_0 : i32, i32
  }
  func.func @transform_9(%arg0: i32) -> (i32, i32) {
    %c0_i32 = arith.constant 0 : i32
    %c0_i32_0 = arith.constant 0 : i32
    %c0_i32_1 = arith.constant 0 : i32
    return %c0_i32, %c0_i32_0 : i32, i32
  }
  func.func @transform_10(%arg0: i32) -> (i32, i32) {
    %c0_i32 = arith.constant 0 : i32
    %c0_i32_0 = arith.constant 0 : i32
    %c0_i32_1 = arith.constant 0 : i32
    return %c0_i32, %c0_i32_0 : i32, i32
  }
  func.func @transform_11(%arg0: i32) -> (i32, i32) {
    %c0_i32 = arith.constant 0 : i32
    %c0_i32_0 = arith.constant 0 : i32
    %c0_i32_1 = arith.constant 0 : i32
    return %c0_i32, %c0_i32_0 : i32, i32
  }
  func.func @transform_12(%arg0: i32) -> (i32, i32) {
    %c0_i32 = arith.constant 0 : i32
    %c0_i32_0 = arith.constant 0 : i32
    %c0_i32_1 = arith.constant 0 : i32
    return %c0_i32, %c0_i32_0 : i32, i32
  }
  func.func @transform_13(%arg0: i32) -> (i32, i32) {
    %c0_i32 = arith.constant 0 : i32
    %c0_i32_0 = arith.constant 0 : i32
    %c0_i32_1 = arith.constant 0 : i32
    return %c0_i32, %c0_i32_0 : i32, i32
  }
  func.func @transform_14(%arg0: i32) -> (i32, i32) {
    %c0_i32 = arith.constant 0 : i32
    %c0_i32_0 = arith.constant 0 : i32
    %c0_i32_1 = arith.constant 0 : i32
    return %c0_i32, %c0_i32_0 : i32, i32
  }
  func.func @transform_15(%arg0: i32) -> (i32, i32) {
    %c0_i32 = arith.constant 0 : i32
    %c0_i32_0 = arith.constant 0 : i32
    %c0_i32_1 = arith.constant 0 : i32
    return %c0_i32, %c0_i32_0 : i32, i32
  }
  func.func @transform_16(%arg0: i32) -> (i32, i32) {
    %c0_i32 = arith.constant 0 : i32
    %c0_i32_0 = arith.constant 0 : i32
    %c0_i32_1 = arith.constant 0 : i32
    return %c0_i32, %c0_i32_0 : i32, i32
  }
  func.func @transform_17(%arg0: i32) -> (i32, i32) {
    %c0_i32 = arith.constant 0 : i32
    %c0_i32_0 = arith.constant 0 : i32
    %c0_i32_1 = arith.constant 0 : i32
    return %c0_i32, %c0_i32_0 : i32, i32
  }
  func.func @transform_18(%arg0: i32) -> (i32, i32) {
    %c0_i32 = arith.constant 0 : i32
    %c0_i32_0 = arith.constant 0 : i32
    %c0_i32_1 = arith.constant 0 : i32
    return %c0_i32, %c0_i32_0 : i32, i32
  }
  func.func @transform_19(%arg0: i32) -> (i32, i32) {
    %c0_i32 = arith.constant 0 : i32
    %c0_i32_0 = arith.constant 0 : i32
    return %arg0, %c0_i32 : i32, i32
  }
  func.func @transform_20(%arg0: i32) -> (i32, i32) {
    %c0_i32 = arith.constant 0 : i32
    %c0_i32_0 = arith.constant 0 : i32
    return %arg0, %c0_i32 : i32, i32
  }
  func.func @transform_21(%arg0: i32) -> (i32, i32) {
    %c0_i32 = arith.constant 0 : i32
    %c0_i32_0 = arith.constant 0 : i32
    return %arg0, %c0_i32 : i32, i32
  }
  func.func @transform_22(%arg0: i32) -> (i32, i32) {
    %c0_i32 = arith.constant 0 : i32
    %c0_i32_0 = arith.constant 0 : i32
    return %arg0, %c0_i32 : i32, i32
  }
  func.func @transform_23(%arg0: i32) -> (i32, i32) {
    %c0_i32 = arith.constant 0 : i32
    %c0_i32_0 = arith.constant 0 : i32
    return %arg0, %c0_i32 : i32, i32
  }
  func.func @transform_24(%arg0: i32) -> (i32, i32) {
    %c0_i32 = arith.constant 0 : i32
    %c0_i32_0 = arith.constant 0 : i32
    return %arg0, %c0_i32 : i32, i32
  }
  func.func @transform_25(%arg0: i32) -> (i32, i32) {
    %c0_i32 = arith.constant 0 : i32
    %c0_i32_0 = arith.constant 0 : i32
    return %arg0, %c0_i32 : i32, i32
  }
}

</mosaic_0001>

<bundles_post_ra>
// kernel: sdcn_forward.11
= control target key start
LH: loop header
LB: loop body
LE: loop exit
PB: predicated region body
PF: predicated region fallthrough
CT: control target
= control target key end

     0   :  { %v275_v16 = vlaneseq  ;;  %s1210_s1 = inlined_call_operand.vmem [shape: bf16[128,128], index: 1, kind: input, shape index: {}]   ;;  %s1211_s0 = inlined_call_operand.vmem [shape: bf16[128,128], index: 0, kind: input, shape index: {}]   ;;  %s1212_s2 = inlined_call_operand.vmem [shape: f32[128,128], index: 2, kind: output, shape index: {}]  }
   0x1   :  { %v745_v0 = vld [vmem:[%s1210_s1 + $0x38] sm:$0xff]  ;;  %v744_v1 = vld [vmem:[%s1210_s1 + $0x30] sm:$0xff]  ;;  %v743_v2 = vld [vmem:[%s1210_s1 + $0x28] sm:$0xff] }
   0x2   :  { %175 = vmatpush.bf16.msra.mxu0 %v745_v0  ;;  %746 = vmatpush.bf16.msra.mxu1 %v745_v0  ;;  %v742_v3 = vld [vmem:[%s1210_s1 + $0x20] sm:$0xff]  ;;  %v741_v4 = vld [vmem:[%s1210_s1 + $0x18] sm:$0xff]  ;;  %v740_v5 = vld [vmem:[%s1210_s1 + $0x10] sm:$0xff]  ;;  %v276_v17 = vand.u32 127, %v275_v16 }
   0x3   :  { %747 = vmatpush.bf16.msra.mxu2 %v745_v0  ;;  %748 = vmatpush.bf16.msra.mxu3 %v745_v0  ;;  %v739_v6 = vld [vmem:[%s1210_s1 + $0x8] sm:$0xff]  ;;  %v738_v7 = vld [vmem:[%s1210_s1] sm:$0xff]  ;;  %v732_v9 = vld [vmem:[%s1211_s0 + $0x10] sm:$0xff] }
   0x4   :  { %v730_v8 = vld [vmem:[%s1211_s0] sm:$0xff]  ;;  %v736_v11 = vld [vmem:[%s1211_s0 + $0x30] sm:$0xff]  ;;  %v731_v12 = vld [vmem:[%s1211_s0 + $0x8] sm:$0xff]  ;;  %vm277_vm0 = vcmp.lt.s32.totalorder %v276_v17, 8 }
   0x5   :  { %v734_v10 = vld [vmem:[%s1211_s0 + $0x20] sm:$0xff]  ;;  %v733_v13 = vld [vmem:[%s1211_s0 + $0x18] sm:$0xff]  ;;  %v735_v14 = vld [vmem:[%s1211_s0 + $0x28] sm:$0xff] }
   0x6   :  { %176 = vmatpush.bf16.msra.mxu0 %v744_v1  ;;  %749 = vmatpush.bf16.msra.mxu1 %v744_v1  ;;  %v737_v15 = vld [vmem:[%s1211_s0 + $0x38] sm:$0xff] }
   0x7   :  { %750 = vmatpush.bf16.msra.mxu2 %v744_v1  ;;  %751 = vmatpush.bf16.msra.mxu3 %v744_v1 }
   0xa   :  { %177 = vmatpush.bf16.msra.mxu0 %v743_v2  ;;  %752 = vmatpush.bf16.msra.mxu1 %v743_v2 }
   0xb   :  { %753 = vmatpush.bf16.msra.mxu2 %v743_v2  ;;  %754 = vmatpush.bf16.msra.mxu3 %v743_v2 }
   0xe   :  { %178 = vmatpush.bf16.msra.mxu0 %v742_v3  ;;  %755 = vmatpush.bf16.msra.mxu1 %v742_v3 }
   0xf   :  { %756 = vmatpush.bf16.msra.mxu2 %v742_v3  ;;  %757 = vmatpush.bf16.msra.mxu3 %v742_v3 }
  0x12   :  { %179 = vmatpush.bf16.msra.mxu0 %v741_v4  ;;  %758 = vmatpush.bf16.msra.mxu1 %v741_v4 }
  0x13   :  { %759 = vmatpush.bf16.msra.mxu2 %v741_v4  ;;  %760 = vmatpush.bf16.msra.mxu3 %v741_v4 }
  0x16   :  { %180 = vmatpush.bf16.msra.mxu0 %v740_v5  ;;  %761 = vmatpush.bf16.msra.mxu1 %v740_v5 }
  0x17   :  { %762 = vmatpush.bf16.msra.mxu2 %v740_v5  ;;  %763 = vmatpush.bf16.msra.mxu3 %v740_v5 }
  0x1a   :  { %181 = vmatpush.bf16.msra.mxu0 %v739_v6  ;;  %764 = vmatpush.bf16.msra.mxu1 %v739_v6 }
  0x1b   :  { %765 = vmatpush.bf16.msra.mxu2 %v739_v6  ;;  %766 = vmatpush.bf16.msra.mxu3 %v739_v6 }
  0x1e   :  { %182 = vmatpush.bf16.msra.mxu0 %v738_v7  ;;  %767 = vmatpush.bf16.msra.mxu1 %v738_v7 }
  0x1f   :  { %768 = vmatpush.bf16.msra.mxu2 %v738_v7  ;;  %769 = vmatpush.bf16.msra.mxu3 %v738_v7 }
  0x21   :  { %183 = vmatmul.bf16.vlgmr.msra.gmra.mxu0 %v730_v8  ;;  %193 = vmatmul.bf16.vlgmr.msra.gmra.mxu1 %v732_v9 }
  0x22   :  { %203 = vmatmul.bf16.vlgmr.msra.gmra.mxu2 %v734_v10  ;;  %213 = vmatmul.bf16.vlgmr.msra.gmra.mxu3 %v736_v11 }
  0x31   :  { %188 = vmatmul.bf16.gmra.mxu0 %v731_v12  ;;  %198 = vmatmul.bf16.gmra.mxu1 %v733_v13 }
  0x32   :  { %208 = vmatmul.bf16.gmra.mxu2 %v735_v14  ;;  %218 = vmatmul.bf16.gmra.mxu3 %v737_v15 }
  0x9e   :  { %v184_v18 = vpop.f32.mrf.mxu0  ;;  %v194_v19 = vpop.f32.mrf.mxu1 }
  0x9f   :  { %v282_v20 = vsel %vm277_vm0, %v194_v19, -1e+30  ;;  %v278_v21 = vsel %vm277_vm0, %v184_v18, -1e+30 }
  0xa0   :  { %302 = vmax.xlane.f32.xlu2 %v282_v20  ;;  %294 = vmax.xlane.f32.xlu0 %v278_v21 }
  0xa5   :  { %v204_v22 = vpop.f32.mrf.mxu2  ;;  %v214_v23 = vpop.f32.mrf.mxu3 }
  0xa6   :  { %v186_v24 = vpop.f32.mrf.mxu0  ;;  %v286_v25 = vsel %vm277_vm0, %v204_v22, -1e+30  ;;  %v290_v26 = vsel %vm277_vm0, %v214_v23, -1e+30  ;;  %v196_v27 = vpop.f32.mrf.mxu1 }
  0xa7   :  { %v283_v30 = vsel %vm277_vm0, %v196_v27, -1e+30  ;;  %v279_v31 = vsel %vm277_vm0, %v186_v24, -1e+30 }
  0xa8   :  { %310 = vmax.xlane.f32.xlu2 %v286_v25  ;;  %318 = vmax.xlane.f32.xlu0 %v290_v26 }
  0xad   :  { %v206_v28 = vpop.f32.mrf.mxu2  ;;  %v216_v33 = vpop.f32.mrf.mxu3 }
  0xae   :  { %v189_v29 = vpop.f32.mrf.mxu0  ;;  %v911_v36 = vsel %vm277_vm0, %v206_v28, -1e+30  ;;  %v199_v38 = vpop.f32.mrf.mxu1  ;;  %v940_v49 = vsel %vm277_vm0, %v216_v33, -1e+30 }
  0xaf   :  { %v904_v32 = vsel %vm277_vm0, %v189_v29, -1e+30  ;;  %v916_v41 = vsel %vm277_vm0, %v199_v38, -1e+30 }
  0xb0   :  { %304 = vmax.xlane.f32.xlu2 %v283_v30  ;;  %296 = vmax.xlane.f32.xlu0 %v279_v31 }
  0xb1   :  { %298 = vmax.xlane.f32.xlu1 %v904_v32 }
  0xb5   :  { %v209_v34 = vpop.f32.mrf.mxu2  ;;  %v219_v37 = vpop.f32.mrf.mxu3 }
  0xb6   :  { %v908_v35 = vsel %vm277_vm0, %v209_v34, -1e+30  ;;  %v191_v39 = vpop.f32.mrf.mxu0  ;;  %v928_v45 = vsel %vm277_vm0, %v219_v37, -1e+30  ;;  %v201_v46 = vpop.f32.mrf.mxu1 }
  0xb7   :  { %v924_v43 = vsel %vm277_vm0, %v191_v39, -1e+30  ;;  %v936_v48 = vsel %vm277_vm0, %v201_v46, -1e+30 }
  0xb8   :  { %312 = vmax.xlane.f32.xlu0 %v911_v36 }
  0xb9   :  { %314 = vmax.xlane.f32.xlu1 %v908_v35 }
  0xbd   :  { %v211_v40 = vpop.f32.mrf.mxu2  ;;  %v221_v44 = vpop.f32.mrf.mxu3 }
  0xbe   :  { %v919_v42 = vsel %vm277_vm0, %v211_v40, -1e+30  ;;  %v931_v47 = vsel %vm277_vm0, %v221_v44, -1e+30 }
  0xbf   :  { %316 = vmax.xlane.f32.xlu2 %v919_v42 }
  0xc0   :  { %306 = vmax.xlane.f32.xlu0 %v916_v41 }
  0xc1   :  { %300 = vmax.xlane.f32.xlu1 %v924_v43 }
  0xc7   :  { %322 = vmax.xlane.f32.xlu2 %v928_v45 }
  0xc8   :  { %324 = vmax.xlane.f32.xlu0 %v931_v47 }
  0xc9   :  { %308 = vmax.xlane.f32.xlu1 %v936_v48 }
  0xd1   :  { %320 = vmax.xlane.f32.xlu1 %v940_v49 }
 0x113   :  { %v303_v50 = vpop.xlane.xlu2 %302  ;;  %v295_v51 = vpop.xlane.xlu0 %294 }
 0x114   :  { %v330_v52 = vsub.f32 %v282_v20, %v303_v50  ;;  %v326_v53 = vsub.f32 %v278_v21, %v295_v51 }
 0x116   :  { %v350_v54 = vmul.f32 1.442695, %v330_v52  ;;  %v342_v55 = vmul.f32 1.442695, %v326_v53 }
 0x118   :  { %770 = vpow2.f32 %v350_v54 }
 0x119   :  { %772 = vpow2.f32 %v342_v55 }
 0x11b   :  { %v311_v56 = vpop.xlane.xlu2 %310  ;;  %v319_v57 = vpop.xlane.xlu0 %318 }
 0x11c   :  { %v334_v58 = vsub.f32 %v286_v25, %v311_v56  ;;  %v338_v59 = vsub.f32 %v290_v26, %v319_v57 }
 0x11e   :  { %v943_v60 = vpop.eup %770  ;;  %v358_v61 = vmul.f32 1.442695, %v334_v58  ;;  %v366_v62 = vmul.f32 1.442695, %v338_v59 }
 0x11f   :  { %v945_v63 = vpop.eup %772  ;;  %382 = vadd.xlane.f32.xlu2 %v943_v60 }
 0x120   :  { %774 = vpow2.f32 %v358_v61  ;;  %374 = vadd.xlane.f32.xlu1 %v945_v63 }
 0x121   :  { %776 = vpow2.f32 %v366_v62 }
 0x123   :  { %v305_v0 = vpop.xlane.xlu2 %304  ;;  %v297_v1 = vpop.xlane.xlu0 %296 }
 0x124   :  { %v331_v2 = vsub.f32 %v283_v30, %v305_v0  ;;  %v327_v3 = vsub.f32 %v279_v31, %v297_v1  ;;  %v299_v4 = vpop.xlane.xlu1 %298 }
 0x125   :  { %v328_v9 = vsub.f32 %v904_v32, %v299_v4 }
 0x126   :  { %v949_v5 = vpop.eup %774  ;;  %v352_v6 = vmul.f32 1.442695, %v331_v2  ;;  %v344_v7 = vmul.f32 1.442695, %v327_v3 }
 0x127   :  { %v951_v8 = vpop.eup %776  ;;  %390 = vadd.xlane.f32.xlu0 %v949_v5  ;;  %v346_v10 = vmul.f32 1.442695, %v328_v9 }
 0x128   :  { %778 = vpow2.f32 %v352_v6  ;;  %398 = vadd.xlane.f32.xlu1 %v951_v8 }
 0x129   :  { %780 = vpow2.f32 %v344_v7 }
 0x12a   :  { %782 = vpow2.f32 %v346_v10 }
 0x12b   :  { %v313_v11 = vpop.xlane.xlu0 %312 }
 0x12c   :  { %v335_v12 = vsub.f32 %v911_v36, %v313_v11  ;;  %v315_v13 = vpop.xlane.xlu1 %314 }
 0x12d   :  { %v336_v14 = vsub.f32 %v908_v35, %v315_v13 }
 0x12e   :  { %v958_v15 = vpop.eup %778  ;;  %v360_v16 = vmul.f32 1.442695, %v335_v12 }
 0x12f   :  { %v960_v17 = vpop.eup %780  ;;  %v362_v18 = vmul.f32 1.442695, %v336_v14  ;;  %384 = vadd.xlane.f32.xlu0 %v958_v15 }
 0x130   :  { %784 = vpow2.f32 %v360_v16  ;;  %376 = vadd.xlane.f32.xlu2 %v960_v17  ;;  %v966_v24 = vpop.eup %782 }
 0x131   :  { %786 = vpow2.f32 %v362_v18 }
 0x132   :  { %v317_v19 = vpop.xlane.xlu2 %316 }
 0x133   :  { %v337_v20 = vsub.f32 %v919_v42, %v317_v19  ;;  %v307_v21 = vpop.xlane.xlu0 %306 }
 0x134   :  { %v332_v22 = vsub.f32 %v916_v41, %v307_v21  ;;  %v301_v23 = vpop.xlane.xlu1 %300 }
 0x135   :  { %v364_v25 = vmul.f32 1.442695, %v337_v20  ;;  %v329_v29 = vsub.f32 %v924_v43, %v301_v23 }
 0x136   :  { %v968_v26 = vpop.eup %784  ;;  %v354_v27 = vmul.f32 1.442695, %v332_v22 }
 0x137   :  { %v970_v28 = vpop.eup %786  ;;  %788 = vpow2.f32 %v364_v25  ;;  %378 = vadd.xlane.f32.xlu0 %v966_v24  ;;  %392 = vadd.xlane.f32.xlu1 %v968_v26  ;;  %v348_v31 = vmul.f32 1.442695, %v329_v29 }
 0x138   :  { %790 = vpow2.f32 %v354_v27  ;;  %394 = vadd.xlane.f32.xlu2 %v970_v28 }
 0x139   :  { %792 = vpow2.f32 %v348_v31 }
 0x13a   :  { %v323_v30 = vpop.xlane.xlu2 %322 }
 0x13b   :  { %v340_v32 = vsub.f32 %v928_v45, %v323_v30  ;;  %v325_v36 = vpop.xlane.xlu0 %324 }
 0x13c   :  { %v309_v33 = vpop.xlane.xlu1 %308  ;;  %v341_v40 = vsub.f32 %v931_v47, %v325_v36 }
 0x13d   :  { %v977_v34 = vpop.eup %788  ;;  %v370_v35 = vmul.f32 1.442695, %v340_v32  ;;  %v333_v37 = vsub.f32 %v936_v48, %v309_v33 }
 0x13e   :  { %v980_v38 = vpop.eup %790  ;;  %v372_v41 = vmul.f32 1.442695, %v341_v40 }
 0x13f   :  { %v356_v39 = vmul.f32 1.442695, %v333_v37  ;;  %396 = vadd.xlane.f32.xlu0 %v977_v34  ;;  %386 = vadd.xlane.f32.xlu1 %v980_v38  ;;  %794 = vpow2.f32 %v370_v35  ;;  %v985_v43 = vpop.eup %792 }
 0x141   :  { %796 = vpow2.f32 %v356_v39 }
 0x142   :  { %798 = vpow2.f32 %v372_v41 }
 0x144   :  { %v321_v42 = vpop.xlane.xlu1 %320 }
 0x145   :  { %v339_v44 = vsub.f32 %v940_v49, %v321_v42  ;;  %v988_v45 = vpop.eup %794 }
 0x147   :  { %v990_v46 = vpop.eup %796  ;;  %v368_v48 = vmul.f32 1.442695, %v339_v44  ;;  %402 = vadd.xlane.f32.xlu0 %v988_v45  ;;  %380 = vadd.xlane.f32.xlu1 %v985_v43 }
 0x148   :  { %388 = vadd.xlane.f32.xlu2 %v990_v46  ;;  %v995_v47 = vpop.eup %798 }
 0x149   :  { %800 = vpow2.f32 %v368_v48 }
 0x14f   :  { %v997_v50 = vpop.eup %800  ;;  %404 = vadd.xlane.f32.xlu1 %v995_v47 }
 0x150   :  { %400 = vadd.xlane.f32.xlu2 %v997_v50 }
 0x192   :  { %v383_v49 = vpop.xlane.xlu2 %382 }
 0x193   :  { %802 = vrcp.f32 %v383_v49  ;;  %v375_v51 = vpop.xlane.xlu1 %374  ;;  %v477_v59 = vand.u32 2147483648, %v383_v49  ;;  %v475_v0 = vand.u32 2147483647, %v383_v49  ;;  %vm471_vm3 = vweird.f32 %v383_v49 }
 0x194   :  { %804 = vrcp.f32 %v375_v51  ;;  %v417_v1 = vand.u32 2147483648, %v375_v51  ;;  %v415_v3 = vand.u32 2147483647, %v375_v51  ;;  %vm411_vm5 = vweird.f32 %v375_v51 }
 0x195   :  { %v478_v7 = vor.u32 1.1754944e-38, %v477_v59  ;;  %vm476_vm6 = vcmp.eq.f32.partialorder %v475_v0, 8.507059e+37 }
 0x196   :  { %v418_v12 = vor.u32 1.1754944e-38, %v417_v1  ;;  %vm416_vm8 = vcmp.eq.f32.partialorder %v415_v3, 8.507059e+37 }
 0x199   :  { %v803_v52 = vpop.eup %802 }
 0x19a   :  { %v805_v53 = vpop.eup %804  ;;  %v467_v54 = vmul.f32 %v803_v52, %v383_v49  ;;  %v391_v55 = vpop.xlane.xlu0 %390  ;;  %vm472_vm1 = vweird.f32 %v803_v52 }
 0x19b   :  { %v407_v56 = vmul.f32 %v805_v53, %v375_v51  ;;  %806 = vrcp.f32 %v391_v55  ;;  %v1001_v57 = vpop.xlane.xlu1 %398  ;;  %vm412_vm2 = vweird.f32 %v805_v53  ;;  %vm473_vm4 = vmor %vm471_vm3, %vm472_vm1  ;;  %v535_v27 = vand.u32 2147483647, %v391_v55 }
 0x19c   :  { %v468_v58 = vsub.f32 1.0, %v467_v54  ;;  %808 = vrcp.f32 %v1001_v57  ;;  %vm413_vm7 = vmor %vm411_vm5, %vm412_vm2  ;;  %v537_v29 = vand.u32 2147483648, %v391_v55  ;;  %v597_v32 = vand.u32 2147483648, %v1001_v57 }
 0x19d   :  { %v408_v61 = vsub.f32 1.0, %v407_v56  ;;  %vm531_vm11 = vweird.f32 %v391_v55  ;;  %vm591_vm13 = vweird.f32 %v1001_v57  ;;  %vm536_vm14 = vcmp.eq.f32.partialorder %v535_v27, 8.507059e+37 }
 0x19e   :  { %v469_v62 = vmul.f32 %v803_v52, %v468_v58  ;;  %v538_v35 = vor.u32 1.1754944e-38, %v537_v29  ;;  %v598_v40 = vor.u32 1.1754944e-38, %v597_v32 }
 0x19f   :  { %v409_v2 = vmul.f32 %v805_v53, %v408_v61 }
 0x1a0   :  { %v470_v4 = vadd.f32 %v803_v52, %v469_v62 }
 0x1a1   :  { %v807_v6 = vpop.eup %806  ;;  %v410_v9 = vadd.f32 %v805_v53, %v409_v2 }
 0x1a2   :  { %v809_v10 = vpop.eup %808  ;;  %v474_v11 = vsel %vm473_vm4, %v803_v52, %v470_v4  ;;  %v527_v13 = vmul.f32 %v807_v6, %v391_v55  ;;  %v1004_v14 = vpop.xlane.xlu0 %384  ;;  %vm532_vm9 = vweird.f32 %v807_v6 }
 0x1a3   :  { %v479_v16 = vsel %vm476_vm6, %v478_v7, %v474_v11  ;;  %v414_v18 = vsel %vm413_vm7, %v805_v53, %v410_v9  ;;  %v587_v19 = vmul.f32 %v809_v10, %v1001_v57  ;;  %v377_v20 = vpop.xlane.xlu2 %376  ;;  %vm592_vm10 = vweird.f32 %v809_v10  ;;  %vm533_vm12 = vmor %vm531_vm11, %vm532_vm9 }
 0x1a4   :  { %v480_v21 = vmul.f32 %v943_v60, %v479_v16  ;;  %v419_v22 = vsel %vm416_vm8, %v418_v12, %v414_v18  ;;  %v528_v23 = vsub.f32 1.0, %v527_v13  ;;  %810 = vrcp.f32 %v377_v20  ;;  %vm593_vm15 = vmor %vm591_vm13, %vm592_vm10 }
 0x1a5   :  { %v420_v25 = vmul.f32 %v945_v63, %v419_v22  ;;  %v588_v30 = vsub.f32 1.0, %v587_v19  ;;  %812 = vrcp.f32 %v1004_v14  ;;  %v595_v63 = vand.u32 2147483647, %v1001_v57 }
 0x1a6   :  { %650 = vst [vmem:[%s1212_s2 + $0x20] sm:$0xff] %v480_v21  ;;  %v529_v31 = vmul.f32 %v807_v6, %v528_v23  ;;  %v430_v55 = vand.u32 2147483647, %v377_v20  ;;  %v432_v58 = vand.u32 2147483648, %v377_v20  ;;  %v490_v61 = vand.u32 2147483647, %v1004_v14 }
 0x1a7   :  { %646 = vst [vmem:[%s1212_s2] sm:$0xff] %v420_v25  ;;  %v589_v60 = vmul.f32 %v809_v10, %v588_v30  ;;  %vm596_vm0 = vcmp.eq.f32.partialorder %v595_v63, 8.507059e+37  ;;  %v492_v62 = vand.u32 2147483648, %v1004_v14  ;;  %vm426_vm2 = vweird.f32 %v377_v20 }
 0x1a8   :  { %v530_v33 = vadd.f32 %v807_v6, %v529_v31  ;;  %vm1038_vm3 = vcmp.eq.f32.partialorder %v430_v55, 8.507059e+37  ;;  %vm486_vm4 = vweird.f32 %v1004_v14  ;;  %v433_v2 = vor.u32 1.1754944e-38, %v432_v58 }
 0x1a9   :  { %v590_v36 = vadd.f32 %v809_v10, %v589_v60  ;;  %vm1044_vm7 = vcmp.eq.f32.partialorder %v490_v61, 8.507059e+37  ;;  %v493_v7 = vor.u32 1.1754944e-38, %v492_v62 }
 0x1aa   :  { %v811_v37 = vpop.eup %810  ;;  %v534_v39 = vsel %vm533_vm12, %v807_v6, %v530_v33  ;;  %v1019_v41 = vpop.xlane.xlu0 %378 }
 0x1ab   :  { %v1021_v42 = vpop.xlane.xlu1 %392  ;;  %v539_v44 = vsel %vm536_vm14, %v538_v35, %v534_v39  ;;  %v594_v48 = vsel %vm593_vm15, %v809_v10, %v590_v36  ;;  %v422_v49 = vmul.f32 %v811_v37, %v377_v20  ;;  %v1023_v51 = vpop.xlane.xlu2 %394  ;;  %814 = vrcp.f32 %v1019_v41 }
 0x1ac   :  { %v813_v52 = vpop.eup %812  ;;  %v540_v53 = vmul.f32 %v949_v5, %v539_v44  ;;  %v599_v54 = vsel %vm596_vm0, %v598_v40, %v594_v48  ;;  %816 = vrcp.f32 %v1023_v51  ;;  %vm427_vm1 = vweird.f32 %v811_v37 }
 0x1ad   :  { %v600_v56 = vmul.f32 %v951_v8, %v599_v54  ;;  %v423_v57 = vsub.f32 1.0, %v422_v49  ;;  %v482_v59 = vmul.f32 %v813_v52, %v1004_v14  ;;  %818 = vrcp.f32 %v1021_v42  ;;  %vm428_vm6 = vmor %vm426_vm2, %vm427_vm1 }
 0x1ae   :  { %654 = vst [vmem:[%s1212_s2 + $0x40] sm:$0xff] %v540_v53  ;;  %vm487_vm5 = vweird.f32 %v813_v52  ;;  %vm441_vm8 = vweird.f32 %v1019_v41  ;;  %v445_v9 = vand.u32 2147483647, %v1019_v41  ;;  %v447_v16 = vand.u32 2147483648, %v1019_v41 }
 0x1af   :  { %658 = vst [vmem:[%s1212_s2 + $0x60] sm:$0xff] %v600_v56  ;;  %v424_v5 = vmul.f32 %v811_v37, %v423_v57  ;;  %v483_v8 = vsub.f32 1.0, %v482_v59  ;;  %vm488_vm9 = vmor %vm486_vm4, %vm487_vm5  ;;  %vm561_vm10 = vweird.f32 %v1023_v51  ;;  %v565_v21 = vand.u32 2147483647, %v1023_v51 }
 0x1b0   :  { %vm1068_vm12 = vcmp.eq.f32.partialorder %v445_v9, 8.507059e+37  ;;  %v567_v31 = vand.u32 2147483648, %v1023_v51  ;;  %v448_v33 = vor.u32 1.1754944e-38, %v447_v16  ;;  %v550_v35 = vand.u32 2147483647, %v1021_v42 }
 0x1b1   :  { %v425_v1 = vadd.f32 %v811_v37, %v424_v5  ;;  %v484_v3 = vmul.f32 %v813_v52, %v483_v8  ;;  %v815_v4 = vpop.eup %814  ;;  %v552_v36 = vand.u32 2147483648, %v1021_v42  ;;  %vm1087_vm15 = vcmp.eq.f32.partialorder %v565_v21, 8.507059e+37 }
 0x1b2   :  { %v1050_v10 = vpop.xlane.xlu0 %396  ;;  %v437_v13 = vmul.f32 %v815_v4, %v1019_v41  ;;  %v817_v19 = vpop.eup %816  ;;  %vm442_vm11 = vweird.f32 %v815_v4  ;;  %v568_v48 = vor.u32 1.1754944e-38, %v567_v31  ;;  %vm546_vm0 = vweird.f32 %v1021_v42 }
 0x1b3   :  { %v429_v11 = vsel %vm428_vm6, %v811_v37, %v425_v1  ;;  %v485_v12 = vadd.f32 %v813_v52, %v484_v3  ;;  %v1054_v18 = vpop.xlane.xlu1 %386  ;;  %820 = vrcp.f32 %v1050_v10  ;;  %v557_v27 = vmul.f32 %v817_v19, %v1023_v51  ;;  %v819_v29 = vpop.eup %818  ;;  %vm443_vm14 = vmor %vm441_vm8, %vm442_vm11 }
 0x1b4   :  { %v434_v20 = vsel %vm1038_vm3, %v433_v2, %v429_v11  ;;  %v438_v25 = vsub.f32 1.0, %v437_v13  ;;  %v542_v63 = vmul.f32 %v819_v29, %v1021_v42  ;;  %822 = vrcp.f32 %v1054_v18 }
 0x1b5   :  { %v435_v22 = vmul.f32 %v960_v17, %v434_v20  ;;  %v489_v23 = vsel %vm488_vm9, %v813_v52, %v485_v12  ;;  %v558_v60 = vsub.f32 1.0, %v557_v27  ;;  %vm562_vm13 = vweird.f32 %v817_v19 }
 0x1b6   :  { %v494_v30 = vsel %vm1044_vm7, %v493_v7, %v489_v23  ;;  %v439_v32 = vmul.f32 %v815_v4, %v438_v25  ;;  %v543_v40 = vsub.f32 1.0, %v542_v63  ;;  %vm547_vm1 = vweird.f32 %v819_v29  ;;  %vm563_vm2 = vmor %vm561_vm10, %vm562_vm13 }
 0x1b7   :  { %647 = vst [vmem:[%s1212_s2 + $0x8] sm:$0xff] %v435_v22  ;;  %v495_v17 = vmul.f32 %v958_v15, %v494_v30  ;;  %v559_v39 = vmul.f32 %v817_v19, %v558_v60  ;;  %vm1102_vm3 = vcmp.eq.f32.partialorder %v550_v35, 8.507059e+37  ;;  %v553_v58 = vor.u32 1.1754944e-38, %v552_v36  ;;  %vm548_vm4 = vmor %vm546_vm0, %vm547_vm1 }
 0x1b8   :  { %v440_v37 = vadd.f32 %v815_v4, %v439_v32  ;;  %v544_v53 = vmul.f32 %v819_v29, %v543_v40  ;;  %v580_v59 = vand.u32 2147483647, %v1050_v10  ;;  %v582_v51 = vand.u32 2147483648, %v1050_v10 }
 0x1b9   :  { %651 = vst [vmem:[%s1212_s2 + $0x28] sm:$0xff] %v495_v17  ;;  %v821_v15 = vpop.eup %820  ;;  %v560_v52 = vadd.f32 %v817_v19, %v559_v39  ;;  %vm576_vm6 = vweird.f32 %v1050_v10  ;;  %v505_v12 = vand.u32 2147483647, %v1054_v18  ;;  %v507_v13 = vand.u32 2147483648, %v1054_v18 }
 0x1ba   :  { %v444_v49 = vsel %vm443_vm14, %v815_v4, %v440_v37  ;;  %v572_v54 = vmul.f32 %v821_v15, %v1050_v10  ;;  %v1093_v55 = vpop.xlane.xlu0 %402  ;;  %v545_v5 = vadd.f32 %v819_v29, %v544_v53  ;;  %v823_v1 = vpop.eup %822  ;;  %vm577_vm5 = vweird.f32 %v821_v15 }
 0x1bb   :  { %v1095_v56 = vpop.xlane.xlu2 %388  ;;  %v449_v41 = vsel %vm1068_vm12, %v448_v33, %v444_v49  ;;  %v564_v62 = vsel %vm563_vm2, %v817_v19, %v560_v52  ;;  %v1108_v0 = vpop.xlane.xlu1 %380  ;;  %824 = vrcp.f32 %v1093_v55  ;;  %v497_v6 = vmul.f32 %v823_v1, %v1054_v18  ;;  %vm578_vm7 = vmor %vm576_vm6, %vm577_vm5 }
 0x1bc   :  { %v450_v61 = vmul.f32 %v966_v24, %v449_v41  ;;  %v573_v8 = vsub.f32 1.0, %v572_v54  ;;  %v569_v2 = vsel %vm1087_vm15, %v568_v48, %v564_v62  ;;  %v549_v3 = vsel %vm548_vm4, %v819_v29, %v545_v5 }
 0x1bd   :  { %v570_v24 = vmul.f32 %v970_v28, %v569_v2  ;;  %v554_v7 = vsel %vm1102_vm3, %v553_v58, %v549_v3  ;;  %v498_v11 = vsub.f32 1.0, %v497_v6  ;;  %826 = vrcp.f32 %v1095_v56 }
 0x1be   :  { %648 = vst [vmem:[%s1212_s2 + $0x10] sm:$0xff] %v450_v61  ;;  %v574_v4 = vmul.f32 %v821_v15, %v573_v8  ;;  %v555_v42 = vmul.f32 %v968_v26, %v554_v7  ;;  %vm581_vm8 = vcmp.eq.f32.partialorder %v580_v59, 8.507059e+37  ;;  %v583_v28 = vor.u32 1.1754944e-38, %v582_v51 }
 0x1bf   :  { %656 = vst [vmem:[%s1212_s2 + $0x50] sm:$0xff] %v570_v24  ;;  %v499_v16 = vmul.f32 %v823_v1, %v498_v11  ;;  %vm502_vm9 = vweird.f32 %v823_v1  ;;  %828 = vrcp.f32 %v1108_v0  ;;  %v625_v21 = vand.u32 2147483647, %v1093_v55 }
 0x1c0   :  { %v575_v9 = vadd.f32 %v821_v15, %v574_v4  ;;  %655 = vst [vmem:[%s1212_s2 + $0x48] sm:$0xff] %v555_v42  ;;  %vm501_vm10 = vweird.f32 %v1054_v18  ;;  %v508_v27 = vor.u32 1.1754944e-38, %v507_v13  ;;  %v627_v29 = vand.u32 2147483648, %v1093_v55 }
 0x1c1   :  { %v825_v19 = vpop.eup %824  ;;  %v500_v23 = vadd.f32 %v823_v1, %v499_v16  ;;  %vm503_vm11 = vmor %vm501_vm10, %vm502_vm9  ;;  %vm506_vm12 = vcmp.eq.f32.partialorder %v505_v12, 8.507059e+37  ;;  %vm621_vm13 = vweird.f32 %v1093_v55  ;;  %vm1151_vm14 = vcmp.eq.f32.partialorder %v625_v21, 8.507059e+37 }
 0x1c2   :  { %v579_v10 = vsel %vm578_vm7, %v821_v15, %v575_v9  ;;  %v617_v25 = vmul.f32 %v825_v19, %v1093_v55  ;;  %vm622_vm15 = vweird.f32 %v825_v19  ;;  %v520_v35 = vand.u32 2147483647, %v1095_v56 }
 0x1c3   :  { %v1137_v26 = vpop.xlane.xlu2 %400  ;;  %v584_v20 = vsel %vm581_vm8, %v583_v28, %v579_v10  ;;  %v827_v30 = vpop.eup %826  ;;  %v504_v14 = vsel %vm503_vm11, %v823_v1, %v500_v23  ;;  %v628_v36 = vor.u32 1.1754944e-38, %v627_v29  ;;  %vm516_vm0 = vweird.f32 %v1095_v56  ;;  %vm623_vm2 = vmor %vm621_vm13, %vm622_vm15 }
 0x1c4   :  { %v585_v22 = vmul.f32 %v977_v34, %v584_v20  ;;  %830 = vrcp.f32 %v1137_v26  ;;  %v618_v31 = vsub.f32 1.0, %v617_v25  ;;  %v1148_v34 = vpop.xlane.xlu1 %404  ;;  %v509_v17 = vsel %vm506_vm12, %v508_v27, %v504_v14 }
 0x1c5   :  { %v512_v32 = vmul.f32 %v827_v30, %v1095_v56  ;;  %v829_v60 = vpop.eup %828  ;;  %v510_v63 = vmul.f32 %v980_v38, %v509_v17  ;;  %832 = vrcp.f32 %v1148_v34  ;;  %v522_v15 = vand.u32 2147483648, %v1095_v56 }
 0x1c6   :  { %657 = vst [vmem:[%s1212_s2 + $0x58] sm:$0xff] %v585_v22  ;;  %v619_v33 = vmul.f32 %v825_v19, %v618_v31  ;;  %v452_v39 = vmul.f32 %v829_v60, %v1108_v0  ;;  %vm456_vm1 = vweird.f32 %v1108_v0  ;;  %vm517_vm3 = vweird.f32 %v827_v30 }
 0x1c7   :  { %v513_v37 = vsub.f32 1.0, %v512_v32  ;;  %652 = vst [vmem:[%s1212_s2 + $0x30] sm:$0xff] %v510_v63  ;;  %v462_v49 = vand.u32 2147483648, %v1108_v0  ;;  %vm1169_vm4 = vcmp.eq.f32.partialorder %v520_v35, 8.507059e+37  ;;  %v460_v54 = vand.u32 2147483647, %v1108_v0  ;;  %vm518_vm6 = vmor %vm516_vm0, %vm517_vm3 }
 0x1c8   :  { %v620_v40 = vadd.f32 %v825_v19, %v619_v33  ;;  %v453_v48 = vsub.f32 1.0, %v452_v39  ;;  %vm457_vm5 = vweird.f32 %v829_v60  ;;  %v523_v61 = vor.u32 1.1754944e-38, %v522_v15 }
 0x1c9   :  { %v514_v44 = vmul.f32 %v827_v30, %v513_v37  ;;  %v610_v5 = vand.u32 2147483647, %v1137_v26  ;;  %v463_v51 = vor.u32 1.1754944e-38, %v462_v49  ;;  %v612_v24 = vand.u32 2147483648, %v1137_v26  ;;  %vm458_vm7 = vmor %vm456_vm1, %vm457_vm5 }
 0x1ca   :  { %v831_v38 = vpop.eup %830  ;;  %v624_v52 = vsel %vm623_vm2, %v825_v19, %v620_v40  ;;  %v454_v55 = vmul.f32 %v829_v60, %v453_v48  ;;  %vm461_vm9 = vcmp.eq.f32.partialorder %v460_v54, 8.507059e+37  ;;  %vm606_vm10 = vweird.f32 %v1137_v26 }
 0x1cb   :  { %v602_v41 = vmul.f32 %v831_v38, %v1137_v26  ;;  %v629_v57 = vsel %vm1151_vm14, %v628_v36, %v624_v52  ;;  %v515_v58 = vadd.f32 %v827_v30, %v514_v44  ;;  %v833_v8 = vpop.eup %832  ;;  %vm607_vm8 = vweird.f32 %v831_v38 }
 0x1cc   :  { %v630_v59 = vmul.f32 %v988_v45, %v629_v57  ;;  %v455_v2 = vadd.f32 %v829_v60, %v454_v55  ;;  %v632_v3 = vmul.f32 %v833_v8, %v1148_v34  ;;  %vm608_vm11 = vmor %vm606_vm10, %vm607_vm8  ;;  %vm611_vm12 = vcmp.eq.f32.partialorder %v610_v5, 8.507059e+37 }
 0x1cd   :  { %v603_v62 = vsub.f32 1.0, %v602_v41  ;;  %v519_v1 = vsel %vm518_vm6, %v827_v30, %v515_v58  ;;  %v613_v11 = vor.u32 1.1754944e-38, %v612_v24  ;;  %v642_v28 = vand.u32 2147483648, %v1148_v34 }
 0x1ce   :  { %660 = vst [vmem:[%s1212_s2 + $0x70] sm:$0xff] %v630_v59  ;;  %v524_v45 = vsel %vm1169_vm4, %v523_v61, %v519_v1  ;;  %v459_v6 = vsel %vm458_vm7, %v829_v60, %v455_v2  ;;  %v633_v9 = vsub.f32 1.0, %v632_v3  ;;  %vm637_vm13 = vweird.f32 %v833_v8 }
 0x1cf   :  { %v604_v56 = vmul.f32 %v831_v38, %v603_v62  ;;  %v525_v4 = vmul.f32 %v990_v46, %v524_v45  ;;  %v464_v7 = vsel %vm461_vm9, %v463_v51, %v459_v6  ;;  %v640_v13 = vand.u32 2147483647, %v1148_v34 }
 0x1d0   :  { %v465_v0 = vmul.f32 %v985_v43, %v464_v7  ;;  %v634_v46 = vmul.f32 %v833_v8, %v633_v9  ;;  %vm636_vm14 = vweird.f32 %v1148_v34  ;;  %v643_v43 = vor.u32 1.1754944e-38, %v642_v28 }
 0x1d1   :  { %v605_v42 = vadd.f32 %v831_v38, %v604_v56  ;;  %653 = vst [vmem:[%s1212_s2 + $0x38] sm:$0xff] %v525_v4  ;;  %vm638_vm15 = vmor %vm636_vm14, %vm637_vm13  ;;  %vm641_vm0 = vcmp.eq.f32.partialorder %v640_v13, 8.507059e+37 }
 0x1d2   :  { %649 = vst [vmem:[%s1212_s2 + $0x18] sm:$0xff] %v465_v0  ;;  %v635_v26 = vadd.f32 %v833_v8, %v634_v46 }
 0x1d3   :  { %v609_v12 = vsel %vm608_vm11, %v831_v38, %v605_v42 }
 0x1d4   :  { %v614_v10 = vsel %vm611_vm12, %v613_v11, %v609_v12  ;;  %v639_v19 = vsel %vm638_vm15, %v833_v8, %v635_v26 }
 0x1d5   :  { %v615_v16 = vmul.f32 %v997_v50, %v614_v10  ;;  %v644_v20 = vsel %vm641_vm0, %v643_v43, %v639_v19 }
 0x1d6   :  { %v645_v21 = vmul.f32 %v995_v47, %v644_v20 }
 0x1d7   :  { %659 = vst [vmem:[%s1212_s2 + $0x68] sm:$0xff] %v615_v16 }
 0x1d8   :  { %661 = vst [vmem:[%s1212_s2 + $0x78] sm:$0xff] %v645_v21 }

// kernel: sdcn_forward.7
= control target key start
LH: loop header
LB: loop body
LE: loop exit
PB: predicated region body
PF: predicated region fallthrough
CT: control target
= control target key end

     0   :  { %s901_s1 = inlined_call_operand.vmem [shape: bf16[128,128], index: 1, kind: input, shape index: {}]   ;;  %s902_s0 = inlined_call_operand.vmem [shape: bf16[128,128], index: 0, kind: input, shape index: {}]   ;;  %s903_s3 = inlined_call_operand.vmem [shape: bf16[128,128], index: 3, kind: input, shape index: {}]   ;;  %s904_s2 = inlined_call_operand.vmem [shape: bf16[128,128], index: 2, kind: input, shape index: {}]   ;;  %s905_s4 = inlined_call_operand.vmem [shape: bf16[128,128], index: 4, kind: output, shape index: {}]  }
   0x1   :  { %v645_v0 = vld [vmem:[%s901_s1 + $0x38] sm:$0xff]  ;;  %v644_v1 = vld [vmem:[%s901_s1 + $0x30] sm:$0xff]  ;;  %v643_v2 = vld [vmem:[%s901_s1 + $0x28] sm:$0xff] }
   0x2   :  { %181 = vmatpush.bf16.msra.mxu0 %v645_v0  ;;  %740 = vmatpush.bf16.msra.mxu2 %v645_v0  ;;  %v642_v3 = vld [vmem:[%s901_s1 + $0x20] sm:$0xff]  ;;  %v641_v4 = vld [vmem:[%s901_s1 + $0x18] sm:$0xff]  ;;  %v640_v5 = vld [vmem:[%s901_s1 + $0x10] sm:$0xff] }
   0x3   :  { %v639_v6 = vld [vmem:[%s901_s1 + $0x8] sm:$0xff]  ;;  %v638_v7 = vld [vmem:[%s901_s1] sm:$0xff]  ;;  %v653_v12 = vld [vmem:[%s903_s3 + $0x38] sm:$0xff] }
   0x4   :  { %v630_v8 = vld [vmem:[%s902_s0] sm:$0xff]  ;;  %v631_v10 = vld [vmem:[%s902_s0 + $0x8] sm:$0xff]  ;;  %449 = vmatpush.bf16.msra.mxu1 %v653_v12  ;;  %v652_v13 = vld [vmem:[%s903_s3 + $0x30] sm:$0xff]  ;;  %748 = vmatpush.bf16.msra.mxu3 %v653_v12 }
   0x5   :  { %v634_v9 = vld [vmem:[%s902_s0 + $0x20] sm:$0xff]  ;;  %v635_v11 = vld [vmem:[%s902_s0 + $0x28] sm:$0xff]  ;;  %v632_v16 = vld [vmem:[%s902_s0 + $0x10] sm:$0xff] }
   0x6   :  { %182 = vmatpush.bf16.msra.mxu0 %v644_v1  ;;  %741 = vmatpush.bf16.msra.mxu2 %v644_v1  ;;  %v651_v14 = vld [vmem:[%s903_s3 + $0x28] sm:$0xff]  ;;  %v650_v15 = vld [vmem:[%s903_s3 + $0x20] sm:$0xff]  ;;  %v636_v17 = vld [vmem:[%s902_s0 + $0x30] sm:$0xff] }
   0x7   :  { %v633_v18 = vld [vmem:[%s902_s0 + $0x18] sm:$0xff]  ;;  %v648_v21 = vld [vmem:[%s903_s3 + $0x10] sm:$0xff]  ;;  %v647_v22 = vld [vmem:[%s903_s3 + $0x8] sm:$0xff] }
   0x8   :  { %450 = vmatpush.bf16.msra.mxu1 %v652_v13  ;;  %749 = vmatpush.bf16.msra.mxu3 %v652_v13  ;;  %v637_v19 = vld [vmem:[%s902_s0 + $0x38] sm:$0xff]  ;;  %v646_v23 = vld [vmem:[%s903_s3] sm:$0xff]  ;;  %v726_v49 = vld [vmem:[%s904_s2 + $0x8] sm:$0xff]  }
   0x9   :  { %v649_v20 = vld [vmem:[%s903_s3 + $0x18] sm:$0xff]  ;;  %v655_v25 = vld [vmem:[%s904_s2] sm:$0xff]   ;;  %v660_v54 = vunpack.c.l.bf16 %v726_v49  ;;  %v661_v56 = vunpack.c.h.bf16 %v726_v49  ;;  %v730_v60 = vld [vmem:[%s904_s2 + $0x28] sm:$0xff]  }
   0xa   :  { %183 = vmatpush.bf16.msra.mxu0 %v643_v2  ;;  %742 = vmatpush.bf16.msra.mxu2 %v643_v2  ;;  %v656_v27 = vunpack.c.l.bf16 %v655_v25  ;;  %v657_v28 = vunpack.c.h.bf16 %v655_v25  ;;  %v729_v32 = vld [vmem:[%s904_s2 + $0x20] sm:$0xff]   ;;  %v676_v0 = vunpack.c.l.bf16 %v730_v60  ;;  %v727_v13 = vld [vmem:[%s904_s2 + $0x10] sm:$0xff]  }
   0xb   :  { %v672_v36 = vunpack.c.l.bf16 %v729_v32  ;;  %v673_v40 = vunpack.c.h.bf16 %v729_v32  ;;  %v347_v59 = vmul.f32 0.5, %v660_v54  ;;  %v348_v63 = vmul.f32 0.5, %v661_v56 }
   0xc   :  { %451 = vmatpush.bf16.msra.mxu1 %v651_v14  ;;  %750 = vmatpush.bf16.msra.mxu3 %v651_v14  ;;  %v345_v31 = vmul.f32 0.5, %v656_v27  ;;  %v346_v35 = vmul.f32 0.5, %v657_v28 }
   0xd   :  { %v353_v42 = vmul.f32 0.5, %v672_v36  ;;  %v354_v46 = vmul.f32 0.5, %v673_v40 }
   0xe   :  { %184 = vmatpush.bf16.msra.mxu0 %v642_v3  ;;  %743 = vmatpush.bf16.msra.mxu2 %v642_v3 }
  0x10   :  { %452 = vmatpush.bf16.msra.mxu1 %v650_v15  ;;  %751 = vmatpush.bf16.msra.mxu3 %v650_v15 }
  0x12   :  { %185 = vmatpush.bf16.msra.mxu0 %v641_v4  ;;  %744 = vmatpush.bf16.msra.mxu2 %v641_v4  ;;  %v677_v4 = vunpack.c.h.bf16 %v730_v60 }
  0x14   :  { %453 = vmatpush.bf16.msra.mxu1 %v649_v20  ;;  %752 = vmatpush.bf16.msra.mxu3 %v649_v20  ;;  %v665_v20 = vunpack.c.h.bf16 %v727_v13 }
  0x16   :  { %186 = vmatpush.bf16.msra.mxu0 %v640_v5  ;;  %745 = vmatpush.bf16.msra.mxu2 %v640_v5  ;;  %v350_v27 = vmul.f32 0.5, %v665_v20 }
  0x18   :  { %454 = vmatpush.bf16.msra.mxu1 %v648_v21  ;;  %753 = vmatpush.bf16.msra.mxu3 %v648_v21 }
  0x1a   :  { %187 = vmatpush.bf16.msra.mxu0 %v639_v6  ;;  %746 = vmatpush.bf16.msra.mxu2 %v639_v6  ;;  %v355_v6 = vmul.f32 0.5, %v676_v0 }
  0x1c   :  { %455 = vmatpush.bf16.msra.mxu1 %v647_v22  ;;  %754 = vmatpush.bf16.msra.mxu3 %v647_v22 }
  0x1e   :  { %188 = vmatpush.bf16.msra.mxu0 %v638_v7  ;;  %747 = vmatpush.bf16.msra.mxu2 %v638_v7 }
  0x20   :  { %456 = vmatpush.bf16.msra.mxu1 %v646_v23  ;;  %755 = vmatpush.bf16.msra.mxu3 %v646_v23 }
  0x21   :  { %189 = vmatmul.bf16.vlgmr.msra.gmra.mxu0 %v630_v8  ;;  %209 = vmatmul.bf16.vlgmr.msra.gmra.mxu2 %v634_v9 }
  0x31   :  { %194 = vmatmul.bf16.gmra.mxu0 %v631_v10  ;;  %214 = vmatmul.bf16.gmra.mxu2 %v635_v11  ;;  %v356_v10 = vmul.f32 0.5, %v677_v4 }
  0x41   :  { %199 = vmatmul.bf16.gmra.mxu0 %v632_v16  ;;  %219 = vmatmul.bf16.gmra.mxu2 %v636_v17 }
  0x51   :  { %204 = vmatmul.bf16.gmra.mxu0 %v633_v18  ;;  %224 = vmatmul.bf16.gmra.mxu2 %v637_v19  ;;  %v664_v18 = vunpack.c.l.bf16 %v727_v13 }
  0x53   :  { %v349_v23 = vmul.f32 0.5, %v664_v18 }
  0x9e   :  { %v190_v24 = vpop.f32.mrf.mxu0 }
  0x9f   :  { %v281_v26 = vmax.f32 %v190_v24, 0.0  ;;  %v731_v24 = vld [vmem:[%s904_s2 + $0x30] sm:$0xff]  }
  0xa0   :  { %v680_v28 = vunpack.c.l.bf16 %v731_v24  ;;  %v681_v32 = vunpack.c.h.bf16 %v731_v24 }
  0xa1   :  { %v297_v30 = vmul.f32 0.5, %v281_v26 }
  0xa3   :  { %v361_v37 = vadd.f32 %v345_v31, %v297_v30 }
  0xa4   :  { %v210_v29 = vpop.f32.mrf.mxu2 }
  0xa5   :  { %v289_v38 = vmax.f32 %v210_v29, 0.0 }
  0xa6   :  { %v192_v33 = vpop.f32.mrf.mxu0 }
  0xa7   :  { %v282_v34 = vmax.f32 %v192_v33, 0.0  ;;  %v305_v44 = vmul.f32 0.5, %v289_v38  ;;  %v358_v38 = vmul.f32 0.5, %v681_v32 }
  0xa9   :  { %v298_v39 = vmul.f32 0.5, %v282_v34  ;;  %v369_v51 = vadd.f32 %v353_v42, %v305_v44  ;;  %v357_v34 = vmul.f32 0.5, %v680_v28 }
  0xab   :  { %v362_v41 = vadd.f32 %v346_v35, %v298_v39 }
  0xac   :  { %v212_v43 = vpop.f32.mrf.mxu2 }
  0xad   :  { %v290_v45 = vmax.f32 %v212_v43, 0.0  ;;  %v377_v47 = vpack.c.bf16 %v362_v41, %v361_v37  ;;  %v728_v41 = vld [vmem:[%s904_s2 + $0x18] sm:$0xff]  }
  0xae   :  { %v195_v48 = vpop.f32.mrf.mxu0 }
  0xaf   :  { %v306_v50 = vmul.f32 0.5, %v290_v45  ;;  %457 = vmatmul.bf16.vlgmr.msra.gmra.mxu1 %v377_v47  ;;  %v283_v53 = vmax.f32 %v195_v48, 0.0  ;;  %v669_v48 = vunpack.c.h.bf16 %v728_v41 }
  0xb1   :  { %v370_v52 = vadd.f32 %v354_v46, %v306_v50  ;;  %v299_v58 = vmul.f32 0.5, %v283_v53  ;;  %v668_v46 = vunpack.c.l.bf16 %v728_v41 }
  0xb3   :  { %v381_v55 = vpack.c.bf16 %v370_v52, %v369_v51  ;;  %v363_v1 = vadd.f32 %v347_v59, %v299_v58  ;;  %v351_v51 = vmul.f32 0.5, %v668_v46  ;;  %v732_v52 = vld [vmem:[%s904_s2 + $0x38] sm:$0xff]  }
  0xb4   :  { %v215_v57 = vpop.f32.mrf.mxu2  ;;  %v684_v56 = vunpack.c.l.bf16 %v732_v52  ;;  %v685_v60 = vunpack.c.h.bf16 %v732_v52 }
  0xb5   :  { %477 = vmatmul.bf16.vlgmr.msra.gmra.mxu3 %v381_v55  ;;  %v291_v2 = vmax.f32 %v215_v57, 0.0  ;;  %v352_v55 = vmul.f32 0.5, %v669_v48 }
  0xb6   :  { %v197_v61 = vpop.f32.mrf.mxu0 }
  0xb7   :  { %v284_v62 = vmax.f32 %v197_v61, 0.0  ;;  %v307_v8 = vmul.f32 0.5, %v291_v2  ;;  %v360_v2 = vmul.f32 0.5, %v685_v60 }
  0xb9   :  { %v300_v3 = vmul.f32 0.5, %v284_v62  ;;  %v371_v15 = vadd.f32 %v355_v6, %v307_v8  ;;  %v359_v62 = vmul.f32 0.5, %v684_v56 }
  0xbb   :  { %v364_v5 = vadd.f32 %v348_v63, %v300_v3 }
  0xbc   :  { %v217_v7 = vpop.f32.mrf.mxu2 }
  0xbd   :  { %v292_v9 = vmax.f32 %v217_v7, 0.0  ;;  %v378_v11 = vpack.c.bf16 %v364_v5, %v363_v1 }
  0xbe   :  { %v200_v12 = vpop.f32.mrf.mxu0 }
  0xbf   :  { %v308_v14 = vmul.f32 0.5, %v292_v9  ;;  %462 = vmatmul.bf16.gmra.mxu1 %v378_v11  ;;  %v285_v17 = vmax.f32 %v200_v12, 0.0 }
  0xc1   :  { %v372_v16 = vadd.f32 %v356_v10, %v308_v14  ;;  %v301_v22 = vmul.f32 0.5, %v285_v17 }
  0xc3   :  { %v382_v19 = vpack.c.bf16 %v372_v16, %v371_v15  ;;  %v365_v29 = vadd.f32 %v349_v23, %v301_v22 }
  0xc4   :  { %v220_v21 = vpop.f32.mrf.mxu2 }
  0xc5   :  { %482 = vmatmul.bf16.gmra.mxu3 %v382_v19  ;;  %v293_v30 = vmax.f32 %v220_v21, 0.0 }
  0xc6   :  { %v202_v25 = vpop.f32.mrf.mxu0 }
  0xc7   :  { %v286_v26 = vmax.f32 %v202_v25, 0.0  ;;  %v309_v36 = vmul.f32 0.5, %v293_v30 }
  0xc9   :  { %v302_v31 = vmul.f32 0.5, %v286_v26  ;;  %v373_v43 = vadd.f32 %v357_v34, %v309_v36 }
  0xcb   :  { %v366_v33 = vadd.f32 %v350_v27, %v302_v31 }
  0xcc   :  { %v222_v35 = vpop.f32.mrf.mxu2 }
  0xcd   :  { %v294_v37 = vmax.f32 %v222_v35, 0.0  ;;  %v379_v39 = vpack.c.bf16 %v366_v33, %v365_v29 }
  0xce   :  { %v205_v40 = vpop.f32.mrf.mxu0 }
  0xcf   :  { %v310_v42 = vmul.f32 0.5, %v294_v37  ;;  %467 = vmatmul.bf16.gmra.mxu1 %v379_v39  ;;  %v287_v45 = vmax.f32 %v205_v40, 0.0 }
  0xd1   :  { %v374_v44 = vadd.f32 %v358_v38, %v310_v42  ;;  %v303_v50 = vmul.f32 0.5, %v287_v45 }
  0xd3   :  { %v383_v47 = vpack.c.bf16 %v374_v44, %v373_v43  ;;  %v367_v57 = vadd.f32 %v351_v51, %v303_v50 }
  0xd4   :  { %v225_v49 = vpop.f32.mrf.mxu2 }
  0xd5   :  { %487 = vmatmul.bf16.gmra.mxu3 %v383_v47  ;;  %v295_v58 = vmax.f32 %v225_v49, 0.0 }
  0xd6   :  { %v207_v53 = vpop.f32.mrf.mxu0 }
  0xd7   :  { %v288_v54 = vmax.f32 %v207_v53, 0.0  ;;  %v311_v0 = vmul.f32 0.5, %v295_v58 }
  0xd9   :  { %v304_v59 = vmul.f32 0.5, %v288_v54  ;;  %v375_v5 = vadd.f32 %v359_v62, %v311_v0 }
  0xdb   :  { %v368_v61 = vadd.f32 %v352_v55, %v304_v59 }
  0xdc   :  { %v227_v63 = vpop.f32.mrf.mxu2 }
  0xdd   :  { %v296_v1 = vmax.f32 %v227_v63, 0.0  ;;  %v380_v3 = vpack.c.bf16 %v368_v61, %v367_v57 }
  0xdf   :  { %v312_v4 = vmul.f32 0.5, %v296_v1  ;;  %472 = vmatmul.bf16.gmra.mxu1 %v380_v3 }
  0xe1   :  { %v376_v6 = vadd.f32 %v360_v2, %v312_v4 }
  0xe3   :  { %v384_v7 = vpack.c.bf16 %v376_v6, %v375_v5 }
  0xe5   :  { %492 = vmatmul.bf16.gmra.mxu3 %v384_v7 }
 0x12c   :  { %v458_v8 = vpop.f32.mrf.mxu1 }
 0x134   :  { %v460_v9 = vpop.f32.mrf.mxu1 }
 0x135   :  { %v689_v10 = vpack.c.bf16 %v460_v9, %v458_v8 }
 0x137   :  { %690 = vst [vmem:[%s905_s4] sm:$0xff] %v689_v10  }
 0x138   :  { %v478_v11 = vpop.f32.mrf.mxu3 }
 0x13c   :  { %v463_v12 = vpop.f32.mrf.mxu1 }
 0x140   :  { %v480_v13 = vpop.f32.mrf.mxu3 }
 0x141   :  { %v709_v14 = vpack.c.bf16 %v480_v13, %v478_v11 }
 0x143   :  { %736 = vst [vmem:[%s905_s4 + $0x20] sm:$0xff] %v709_v14  }
 0x144   :  { %v465_v15 = vpop.f32.mrf.mxu1 }
 0x145   :  { %v694_v16 = vpack.c.bf16 %v465_v15, %v463_v12 }
 0x147   :  { %733 = vst [vmem:[%s905_s4 + $0x8] sm:$0xff] %v694_v16  }
 0x148   :  { %v483_v17 = vpop.f32.mrf.mxu3 }
 0x14c   :  { %v468_v18 = vpop.f32.mrf.mxu1 }
 0x150   :  { %v485_v19 = vpop.f32.mrf.mxu3 }
 0x151   :  { %v714_v20 = vpack.c.bf16 %v485_v19, %v483_v17 }
 0x153   :  { %737 = vst [vmem:[%s905_s4 + $0x28] sm:$0xff] %v714_v20  }
 0x154   :  { %v470_v21 = vpop.f32.mrf.mxu1 }
 0x155   :  { %v699_v22 = vpack.c.bf16 %v470_v21, %v468_v18 }
 0x157   :  { %734 = vst [vmem:[%s905_s4 + $0x10] sm:$0xff] %v699_v22  }
 0x158   :  { %v488_v23 = vpop.f32.mrf.mxu3 }
 0x15c   :  { %v473_v24 = vpop.f32.mrf.mxu1 }
 0x160   :  { %v490_v25 = vpop.f32.mrf.mxu3 }
 0x161   :  { %v719_v26 = vpack.c.bf16 %v490_v25, %v488_v23 }
 0x163   :  { %738 = vst [vmem:[%s905_s4 + $0x30] sm:$0xff] %v719_v26  }
 0x164   :  { %v475_v27 = vpop.f32.mrf.mxu1 }
 0x165   :  { %v704_v28 = vpack.c.bf16 %v475_v27, %v473_v24 }
 0x167   :  { %735 = vst [vmem:[%s905_s4 + $0x18] sm:$0xff] %v704_v28  }
 0x168   :  { %v493_v29 = vpop.f32.mrf.mxu3 }
 0x170   :  { %v495_v30 = vpop.f32.mrf.mxu3 }
 0x171   :  { %v724_v31 = vpack.c.bf16 %v495_v30, %v493_v29 }
 0x173   :  { %739 = vst [vmem:[%s905_s4 + $0x38] sm:$0xff] %v724_v31  }

// kernel: sdcn_forward.10
= control target key start
LH: loop header
LB: loop body
LE: loop exit
PB: predicated region body
PF: predicated region fallthrough
CT: control target
= control target key end

     0   :  { %s870_s1 = inlined_call_operand.vmem [shape: bf16[128,128], index: 1, kind: input, shape index: {}]   ;;  %s871_s0 = inlined_call_operand.vmem [shape: bf16[128,128], index: 0, kind: input, shape index: {}]   ;;  %s872_s3 = inlined_call_operand.vmem [shape: bf16[128,128], index: 3, kind: input, shape index: {}]   ;;  %s873_s2 = inlined_call_operand.vmem [shape: f32[128,128], index: 2, kind: input, shape index: {}]   ;;  %s874_s4 = inlined_call_operand.vmem [shape: bf16[128,128], index: 4, kind: output, shape index: {}]  }
   0x1   :  { %v629_v0 = vld [vmem:[%s870_s1 + $0x38] sm:$0xff]  ;;  %v628_v1 = vld [vmem:[%s870_s1 + $0x30] sm:$0xff]  ;;  %v627_v2 = vld [vmem:[%s870_s1 + $0x28] sm:$0xff] }
   0x2   :  { %181 = vmatpush.bf16.msra.mxu0 %v629_v0  ;;  %685 = vmatpush.bf16.msra.mxu2 %v629_v0  ;;  %v626_v3 = vld [vmem:[%s870_s1 + $0x20] sm:$0xff]  ;;  %v625_v4 = vld [vmem:[%s870_s1 + $0x18] sm:$0xff]  ;;  %v624_v5 = vld [vmem:[%s870_s1 + $0x10] sm:$0xff] }
   0x3   :  { %v623_v6 = vld [vmem:[%s870_s1 + $0x8] sm:$0xff]  ;;  %v622_v7 = vld [vmem:[%s870_s1] sm:$0xff]  ;;  %v637_v12 = vld [vmem:[%s872_s3 + $0x38] sm:$0xff] }
   0x4   :  { %v614_v8 = vld [vmem:[%s871_s0] sm:$0xff]  ;;  %v615_v10 = vld [vmem:[%s871_s0 + $0x8] sm:$0xff]  ;;  %433 = vmatpush.bf16.msra.mxu1 %v637_v12  ;;  %v636_v13 = vld [vmem:[%s872_s3 + $0x30] sm:$0xff]  ;;  %693 = vmatpush.bf16.msra.mxu3 %v637_v12 }
   0x5   :  { %v618_v9 = vld [vmem:[%s871_s0 + $0x20] sm:$0xff]  ;;  %v619_v11 = vld [vmem:[%s871_s0 + $0x28] sm:$0xff]  ;;  %v616_v16 = vld [vmem:[%s871_s0 + $0x10] sm:$0xff] }
   0x6   :  { %182 = vmatpush.bf16.msra.mxu0 %v628_v1  ;;  %686 = vmatpush.bf16.msra.mxu2 %v628_v1  ;;  %v635_v14 = vld [vmem:[%s872_s3 + $0x28] sm:$0xff]  ;;  %v634_v15 = vld [vmem:[%s872_s3 + $0x20] sm:$0xff]  ;;  %v620_v17 = vld [vmem:[%s871_s0 + $0x30] sm:$0xff] }
   0x7   :  { %v617_v18 = vld [vmem:[%s871_s0 + $0x18] sm:$0xff]  ;;  %v632_v21 = vld [vmem:[%s872_s3 + $0x10] sm:$0xff]  ;;  %v631_v22 = vld [vmem:[%s872_s3 + $0x8] sm:$0xff] }
   0x8   :  { %434 = vmatpush.bf16.msra.mxu1 %v636_v13  ;;  %694 = vmatpush.bf16.msra.mxu3 %v636_v13  ;;  %v621_v19 = vld [vmem:[%s871_s0 + $0x38] sm:$0xff]  ;;  %v630_v23 = vld [vmem:[%s872_s3] sm:$0xff]  ;;  %v314_v28 = vld [vmem:[%s873_s2 + $0x8] sm:$0xff] }
   0x9   :  { %v633_v20 = vld [vmem:[%s872_s3 + $0x18] sm:$0xff]  ;;  %v313_v26 = vld [vmem:[%s873_s2] sm:$0xff]  ;;  %v330_v33 = vmul.f32 0.5, %v314_v28  ;;  %v322_v38 = vld [vmem:[%s873_s2 + $0x48] sm:$0xff] }
   0xa   :  { %183 = vmatpush.bf16.msra.mxu0 %v627_v2  ;;  %687 = vmatpush.bf16.msra.mxu2 %v627_v2  ;;  %v329_v30 = vmul.f32 0.5, %v313_v26  ;;  %v321_v36 = vld [vmem:[%s873_s2 + $0x40] sm:$0xff]  ;;  %v338_v44 = vmul.f32 0.5, %v322_v38  ;;  %v315_v51 = vld [vmem:[%s873_s2 + $0x10] sm:$0xff]  ;;  %v316_v54 = vld [vmem:[%s873_s2 + $0x18] sm:$0xff] }
   0xb   :  { %v337_v40 = vmul.f32 0.5, %v321_v36  ;;  %v331_v56 = vmul.f32 0.5, %v315_v51  ;;  %v332_v59 = vmul.f32 0.5, %v316_v54  ;;  %v323_v62 = vld [vmem:[%s873_s2 + $0x50] sm:$0xff]  ;;  %v324_v0 = vld [vmem:[%s873_s2 + $0x58] sm:$0xff]  ;;  %v317_v13 = vld [vmem:[%s873_s2 + $0x20] sm:$0xff] }
   0xc   :  { %435 = vmatpush.bf16.msra.mxu1 %v635_v14  ;;  %695 = vmatpush.bf16.msra.mxu3 %v635_v14  ;;  %v339_v2 = vmul.f32 0.5, %v323_v62  ;;  %v326_v26 = vld [vmem:[%s873_s2 + $0x68] sm:$0xff] }
   0xe   :  { %184 = vmatpush.bf16.msra.mxu0 %v626_v3  ;;  %688 = vmatpush.bf16.msra.mxu2 %v626_v3 }
  0x10   :  { %436 = vmatpush.bf16.msra.mxu1 %v634_v15  ;;  %696 = vmatpush.bf16.msra.mxu3 %v634_v15 }
  0x12   :  { %185 = vmatpush.bf16.msra.mxu0 %v625_v4  ;;  %689 = vmatpush.bf16.msra.mxu2 %v625_v4 }
  0x14   :  { %437 = vmatpush.bf16.msra.mxu1 %v633_v20  ;;  %697 = vmatpush.bf16.msra.mxu3 %v633_v20 }
  0x16   :  { %186 = vmatpush.bf16.msra.mxu0 %v624_v5  ;;  %690 = vmatpush.bf16.msra.mxu2 %v624_v5 }
  0x18   :  { %438 = vmatpush.bf16.msra.mxu1 %v632_v21  ;;  %698 = vmatpush.bf16.msra.mxu3 %v632_v21 }
  0x1a   :  { %187 = vmatpush.bf16.msra.mxu0 %v623_v6  ;;  %691 = vmatpush.bf16.msra.mxu2 %v623_v6  ;;  %v340_v6 = vmul.f32 0.5, %v324_v0 }
  0x1c   :  { %439 = vmatpush.bf16.msra.mxu1 %v631_v22  ;;  %699 = vmatpush.bf16.msra.mxu3 %v631_v22 }
  0x1e   :  { %188 = vmatpush.bf16.msra.mxu0 %v622_v7  ;;  %692 = vmatpush.bf16.msra.mxu2 %v622_v7 }
  0x20   :  { %440 = vmatpush.bf16.msra.mxu1 %v630_v23  ;;  %700 = vmatpush.bf16.msra.mxu3 %v630_v23 }
  0x21   :  { %189 = vmatmul.bf16.vlgmr.msra.gmra.mxu0 %v614_v8  ;;  %209 = vmatmul.bf16.vlgmr.msra.gmra.mxu2 %v618_v9 }
  0x31   :  { %194 = vmatmul.bf16.gmra.mxu0 %v615_v10  ;;  %214 = vmatmul.bf16.gmra.mxu2 %v619_v11 }
  0x41   :  { %199 = vmatmul.bf16.gmra.mxu0 %v616_v16  ;;  %219 = vmatmul.bf16.gmra.mxu2 %v620_v17  ;;  %v318_v16 = vld [vmem:[%s873_s2 + $0x28] sm:$0xff] }
  0x42   :  { %v334_v21 = vmul.f32 0.5, %v318_v16 }
  0x51   :  { %204 = vmatmul.bf16.gmra.mxu0 %v617_v18  ;;  %224 = vmatmul.bf16.gmra.mxu2 %v621_v19  ;;  %v333_v18 = vmul.f32 0.5, %v317_v13 }
  0x9e   :  { %v190_v24 = vpop.f32.mrf.mxu0 }
  0x9f   :  { %v281_v25 = vmax.f32 %v190_v24, 0.0  ;;  %v325_v24 = vld [vmem:[%s873_s2 + $0x60] sm:$0xff] }
  0xa0   :  { %v341_v28 = vmul.f32 0.5, %v325_v24 }
  0xa1   :  { %v297_v29 = vmul.f32 0.5, %v281_v25 }
  0xa3   :  { %v345_v34 = vadd.f32 %v329_v30, %v297_v29 }
  0xa4   :  { %v210_v27 = vpop.f32.mrf.mxu2 }
  0xa5   :  { %v289_v35 = vmax.f32 %v210_v27, 0.0 }
  0xa6   :  { %v192_v31 = vpop.f32.mrf.mxu0 }
  0xa7   :  { %v282_v32 = vmax.f32 %v192_v31, 0.0  ;;  %v305_v42 = vmul.f32 0.5, %v289_v35 }
  0xa9   :  { %v298_v37 = vmul.f32 0.5, %v282_v32  ;;  %v353_v48 = vadd.f32 %v337_v40, %v305_v42  ;;  %v342_v32 = vmul.f32 0.5, %v326_v26  ;;  %v320_v42 = vld [vmem:[%s873_s2 + $0x38] sm:$0xff] }
  0xab   :  { %v346_v39 = vadd.f32 %v330_v33, %v298_v37 }
  0xac   :  { %v212_v41 = vpop.f32.mrf.mxu2 }
  0xad   :  { %v290_v43 = vmax.f32 %v212_v41, 0.0  ;;  %v361_v45 = vpack.c.bf16 %v346_v39, %v345_v34  ;;  %v319_v39 = vld [vmem:[%s873_s2 + $0x30] sm:$0xff] }
  0xae   :  { %v195_v46 = vpop.f32.mrf.mxu0 }
  0xaf   :  { %v306_v47 = vmul.f32 0.5, %v290_v43  ;;  %441 = vmatmul.bf16.vlgmr.msra.gmra.mxu1 %v361_v45  ;;  %v283_v50 = vmax.f32 %v195_v46, 0.0 }
  0xb1   :  { %v354_v49 = vadd.f32 %v338_v44, %v306_v47  ;;  %v299_v55 = vmul.f32 0.5, %v283_v50  ;;  %v335_v44 = vmul.f32 0.5, %v319_v39  ;;  %v336_v47 = vmul.f32 0.5, %v320_v42  ;;  %v327_v50 = vld [vmem:[%s873_s2 + $0x70] sm:$0xff] }
  0xb2   :  { %v343_v54 = vmul.f32 0.5, %v327_v50 }
  0xb3   :  { %v365_v52 = vpack.c.bf16 %v354_v49, %v353_v48  ;;  %v347_v60 = vadd.f32 %v331_v56, %v299_v55 }
  0xb4   :  { %v215_v53 = vpop.f32.mrf.mxu2 }
  0xb5   :  { %461 = vmatmul.bf16.vlgmr.msra.gmra.mxu3 %v365_v52  ;;  %v291_v61 = vmax.f32 %v215_v53, 0.0  ;;  %v328_v52 = vld [vmem:[%s873_s2 + $0x78] sm:$0xff] }
  0xb6   :  { %v197_v57 = vpop.f32.mrf.mxu0 }
  0xb7   :  { %v284_v58 = vmax.f32 %v197_v57, 0.0  ;;  %v307_v4 = vmul.f32 0.5, %v291_v61 }
  0xb9   :  { %v300_v63 = vmul.f32 0.5, %v284_v58  ;;  %v355_v10 = vadd.f32 %v339_v2, %v307_v4  ;;  %v344_v58 = vmul.f32 0.5, %v328_v52 }
  0xbb   :  { %v348_v1 = vadd.f32 %v332_v59, %v300_v63 }
  0xbc   :  { %v217_v3 = vpop.f32.mrf.mxu2 }
  0xbd   :  { %v292_v5 = vmax.f32 %v217_v3, 0.0  ;;  %v362_v7 = vpack.c.bf16 %v348_v1, %v347_v60 }
  0xbe   :  { %v200_v8 = vpop.f32.mrf.mxu0 }
  0xbf   :  { %v308_v9 = vmul.f32 0.5, %v292_v5  ;;  %446 = vmatmul.bf16.gmra.mxu1 %v362_v7  ;;  %v285_v12 = vmax.f32 %v200_v8, 0.0 }
  0xc1   :  { %v356_v11 = vadd.f32 %v340_v6, %v308_v9  ;;  %v301_v17 = vmul.f32 0.5, %v285_v12 }
  0xc3   :  { %v366_v14 = vpack.c.bf16 %v356_v11, %v355_v10  ;;  %v349_v22 = vadd.f32 %v333_v18, %v301_v17 }
  0xc4   :  { %v220_v15 = vpop.f32.mrf.mxu2 }
  0xc5   :  { %466 = vmatmul.bf16.gmra.mxu3 %v366_v14  ;;  %v293_v23 = vmax.f32 %v220_v15, 0.0 }
  0xc6   :  { %v202_v19 = vpop.f32.mrf.mxu0 }
  0xc7   :  { %v286_v20 = vmax.f32 %v202_v19, 0.0  ;;  %v309_v30 = vmul.f32 0.5, %v293_v23 }
  0xc9   :  { %v302_v25 = vmul.f32 0.5, %v286_v20  ;;  %v357_v36 = vadd.f32 %v341_v28, %v309_v30 }
  0xcb   :  { %v350_v27 = vadd.f32 %v334_v21, %v302_v25 }
  0xcc   :  { %v222_v29 = vpop.f32.mrf.mxu2 }
  0xcd   :  { %v294_v31 = vmax.f32 %v222_v29, 0.0  ;;  %v363_v33 = vpack.c.bf16 %v350_v27, %v349_v22 }
  0xce   :  { %v205_v34 = vpop.f32.mrf.mxu0 }
  0xcf   :  { %v310_v35 = vmul.f32 0.5, %v294_v31  ;;  %451 = vmatmul.bf16.gmra.mxu1 %v363_v33  ;;  %v287_v38 = vmax.f32 %v205_v34, 0.0 }
  0xd1   :  { %v358_v37 = vadd.f32 %v342_v32, %v310_v35  ;;  %v303_v43 = vmul.f32 0.5, %v287_v38 }
  0xd3   :  { %v367_v40 = vpack.c.bf16 %v358_v37, %v357_v36  ;;  %v351_v48 = vadd.f32 %v335_v44, %v303_v43 }
  0xd4   :  { %v225_v41 = vpop.f32.mrf.mxu2 }
  0xd5   :  { %471 = vmatmul.bf16.gmra.mxu3 %v367_v40  ;;  %v295_v49 = vmax.f32 %v225_v41, 0.0 }
  0xd6   :  { %v207_v45 = vpop.f32.mrf.mxu0 }
  0xd7   :  { %v288_v46 = vmax.f32 %v207_v45, 0.0  ;;  %v311_v56 = vmul.f32 0.5, %v295_v49 }
  0xd9   :  { %v304_v51 = vmul.f32 0.5, %v288_v46  ;;  %v359_v61 = vadd.f32 %v343_v54, %v311_v56 }
  0xdb   :  { %v352_v53 = vadd.f32 %v336_v47, %v304_v51 }
  0xdc   :  { %v227_v55 = vpop.f32.mrf.mxu2 }
  0xdd   :  { %v296_v57 = vmax.f32 %v227_v55, 0.0  ;;  %v364_v59 = vpack.c.bf16 %v352_v53, %v351_v48 }
  0xdf   :  { %v312_v60 = vmul.f32 0.5, %v296_v57  ;;  %456 = vmatmul.bf16.gmra.mxu1 %v364_v59 }
  0xe1   :  { %v360_v62 = vadd.f32 %v344_v58, %v312_v60 }
  0xe3   :  { %v368_v63 = vpack.c.bf16 %v360_v62, %v359_v61 }
  0xe5   :  { %476 = vmatmul.bf16.gmra.mxu3 %v368_v63 }
 0x12c   :  { %v442_v0 = vpop.f32.mrf.mxu1 }
 0x134   :  { %v444_v1 = vpop.f32.mrf.mxu1 }
 0x135   :  { %v641_v2 = vpack.c.bf16 %v444_v1, %v442_v0 }
 0x137   :  { %642 = vst [vmem:[%s874_s4] sm:$0xff] %v641_v2  }
 0x138   :  { %v462_v3 = vpop.f32.mrf.mxu3 }
 0x13c   :  { %v447_v4 = vpop.f32.mrf.mxu1 }
 0x140   :  { %v464_v5 = vpop.f32.mrf.mxu3 }
 0x141   :  { %v661_v6 = vpack.c.bf16 %v464_v5, %v462_v3 }
 0x143   :  { %681 = vst [vmem:[%s874_s4 + $0x20] sm:$0xff] %v661_v6  }
 0x144   :  { %v449_v7 = vpop.f32.mrf.mxu1 }
 0x145   :  { %v646_v8 = vpack.c.bf16 %v449_v7, %v447_v4 }
 0x147   :  { %678 = vst [vmem:[%s874_s4 + $0x8] sm:$0xff] %v646_v8  }
 0x148   :  { %v467_v9 = vpop.f32.mrf.mxu3 }
 0x14c   :  { %v452_v10 = vpop.f32.mrf.mxu1 }
 0x150   :  { %v469_v11 = vpop.f32.mrf.mxu3 }
 0x151   :  { %v666_v12 = vpack.c.bf16 %v469_v11, %v467_v9 }
 0x153   :  { %682 = vst [vmem:[%s874_s4 + $0x28] sm:$0xff] %v666_v12  }
 0x154   :  { %v454_v13 = vpop.f32.mrf.mxu1 }
 0x155   :  { %v651_v14 = vpack.c.bf16 %v454_v13, %v452_v10 }
 0x157   :  { %679 = vst [vmem:[%s874_s4 + $0x10] sm:$0xff] %v651_v14  }
 0x158   :  { %v472_v15 = vpop.f32.mrf.mxu3 }
 0x15c   :  { %v457_v16 = vpop.f32.mrf.mxu1 }
 0x160   :  { %v474_v17 = vpop.f32.mrf.mxu3 }
 0x161   :  { %v671_v18 = vpack.c.bf16 %v474_v17, %v472_v15 }
 0x163   :  { %683 = vst [vmem:[%s874_s4 + $0x30] sm:$0xff] %v671_v18  }
 0x164   :  { %v459_v19 = vpop.f32.mrf.mxu1 }
 0x165   :  { %v656_v20 = vpack.c.bf16 %v459_v19, %v457_v16 }
 0x167   :  { %680 = vst [vmem:[%s874_s4 + $0x18] sm:$0xff] %v656_v20  }
 0x168   :  { %v477_v21 = vpop.f32.mrf.mxu3 }
 0x170   :  { %v479_v22 = vpop.f32.mrf.mxu3 }
 0x171   :  { %v676_v23 = vpack.c.bf16 %v479_v22, %v477_v21 }
 0x173   :  { %684 = vst [vmem:[%s874_s4 + $0x38] sm:$0xff] %v676_v23  }

// kernel: sdcn_forward.6
= control target key start
LH: loop header
LB: loop body
LE: loop exit
PB: predicated region body
PF: predicated region fallthrough
CT: control target
= control target key end

     0   :  { %s4276_s1 = inlined_call_operand.vmem [shape: bf16[128,128], index: 1, kind: input, shape index: {}]   ;;  %s4277_s2 = inlined_call_operand.vmem [shape: f32[1,128], index: 2, kind: input, shape index: {}]   ;;  %s4278_s0 = inlined_call_operand.vmem [shape: bf16[128,128], index: 0, kind: input, shape index: {}]   ;;  %s4279_s3 = inlined_call_operand.vmem [shape: bf16[128,128], index: 3, kind: input, shape index: {}]   ;;  %s4280_s4 = inlined_call_operand.vmem [shape: f32[1,128], index: 4, kind: input, shape index: {}]   ;;  %s4281_s22 = inlined_call_operand.vmem [shape: bf16[128,128], index: 22, kind: output, shape index: {3}]   ;;  %s4282_s5 = inlined_call_operand.vmem [shape: bf16[128,128], index: 5, kind: input, shape index: {}]   ;;  %s4283_s6 = inlined_call_operand.vmem [shape: f32[1,128], index: 6, kind: input, shape index: {}]   ;;  %s4284_s23 = inlined_call_operand.vmem [shape: bf16[128,128], index: 23, kind: output, shape index: {4}]   ;;  %s4285_s7 = inlined_call_operand.vmem [shape: bf16[128,128], index: 7, kind: input, shape index: {}]   ;;  %s4286_s8 = inlined_call_operand.vmem [shape: f32[1,128], index: 8, kind: input, shape index: {}]   ;;  %s4287_s24 = inlined_call_operand.vmem [shape: bf16[128,128], index: 24, kind: output, shape index: {5}]   ;;  %s4288_s9 = inlined_call_operand.vmem [shape: bf16[128,128], index: 9, kind: input, shape index: {}]   ;;  %s4289_s20 = inlined_call_operand.vmem [shape: f32[128,128], index: 20, kind: output, shape index: {1}]   ;;  %s4290_s10 = inlined_call_operand.vmem [shape: f32[1,128], index: 10, kind: input, shape index: {}]   ;;  %s4291_s18 = inlined_call_operand.vmem [shape: f32[128,128], index: 18, kind: input, shape index: {}]   ;;  %s4292_s11 = inlined_call_operand.vmem [shape: bf16[128,128], index: 11, kind: input, shape index: {}]   ;;  %s4293_s13 = inlined_call_operand.vmem [shape: bf16[128,128], index: 13, kind: input, shape index: {}]   ;;  %s4294_s12 = inlined_call_operand.vmem [shape: f32[1,128], index: 12, kind: input, shape index: {}]   ;;  %s4295_s15 = inlined_call_operand.vmem [shape: bf16[128,128], index: 15, kind: input, shape index: {}]   ;;  %s4296_s17 = inlined_call_operand.vmem [shape: bf16[128,128], index: 17, kind: input, shape index: {}]   ;;  %s4297_s14 = inlined_call_operand.vmem [shape: f32[1,128], index: 14, kind: input, shape index: {}]   ;;  %s4298_s16 = inlined_call_operand.vmem [shape: f32[1,128], index: 16, kind: input, shape index: {}]   ;;  %s4299_s25 = inlined_call_operand.vmem [shape: bf16[128,128], index: 25, kind: output, shape index: {6}]   ;;  %s4300_s21 = inlined_call_operand.vmem [shape: f32[128,128], index: 21, kind: output, shape index: {2}]   ;;  %s4301_s19 = inlined_call_operand.vmem [shape: f32[128,128], index: 19, kind: output, shape index: {0}]  }
   0x1   :  { %4309 = sst [smem:[#allocation2_spill]] %s4276_s1 }
   0x2   :  { %4310 = sst [smem:[#allocation3_spill]] %s4277_s2 }
   0x3   :  { %4311 = sst [smem:[#allocation4_spill]] %s4278_s0 }
   0x4   :  { %4312 = sst [smem:[#allocation5_spill]] %s4279_s3 }
   0x5   :  { %4313 = sst [smem:[#allocation6_spill]] %s4280_s4 }
   0x6   :  { %4314 = sst [smem:[#allocation7_spill]] %s4281_s22 }
   0x7   :  { %4315 = sst [smem:[#allocation8_spill]] %s4282_s5 }
   0x8   :  { %4316 = sst [smem:[#allocation9_spill]] %s4283_s6 }
   0x9   :  { %4317 = sst [smem:[#allocation10_spill]] %s4284_s23 }
   0xa   :  { %4318 = sst [smem:[#allocation11_spill]] %s4285_s7 }
   0xb   :  { %s4319_s5 = sld [smem:[#allocation2_spill]] }
   0xc   :  { %s4320_s3 = sld [smem:[#allocation4_spill]] }
   0xd   :  { %s4321_s22 = sld [smem:[#allocation5_spill]] }
   0xe   :  { %s4322_s28 = sld [smem:[#allocation3_spill]] }
   0xf   :  { %s4323_s0 = sld [smem:[#allocation7_spill]] }
  0x10   :  { %s4324_s4 = sld [smem:[#allocation8_spill]] }
  0x11   :  { %v2762_v0 = vld [vmem:[%s4319_s5 + $0x38] sm:$0xff]  ;;  %v2761_v1 = vld [vmem:[%s4319_s5 + $0x30] sm:$0xff]  ;;  %v2760_v2 = vld [vmem:[%s4319_s5 + $0x28] sm:$0xff]  ;;  %s4327_s7 = sld [smem:[#allocation11_spill]] }
  0x12   :  { %201 = vmatpush.bf16.msra.mxu0 %v2762_v0  ;;  %3015 = vmatpush.bf16.msra.mxu2 %v2762_v0  ;;  %v2759_v3 = vld [vmem:[%s4319_s5 + $0x20] sm:$0xff]  ;;  %v2758_v4 = vld [vmem:[%s4319_s5 + $0x18] sm:$0xff]  ;;  %v2757_v5 = vld [vmem:[%s4319_s5 + $0x10] sm:$0xff]  ;;  %s4328_s2 = sld [smem:[#allocation9_spill]] }
  0x13   :  { %v2756_v6 = vld [vmem:[%s4319_s5 + $0x8] sm:$0xff]  ;;  %v2755_v7 = vld [vmem:[%s4319_s5] sm:$0xff]  ;;  %v2770_v12 = vld [vmem:[%s4321_s22 + $0x38] sm:$0xff]  ;;  %s4325_s5 = sld [smem:[#allocation6_spill]] }
  0x14   :  { %v2747_v8 = vld [vmem:[%s4320_s3] sm:$0xff]  ;;  %v2748_v10 = vld [vmem:[%s4320_s3 + $0x8] sm:$0xff]  ;;  %398 = vmatpush.bf16.msra.mxu1 %v2770_v12  ;;  %v2769_v13 = vld [vmem:[%s4321_s22 + $0x30] sm:$0xff]  ;;  %3023 = vmatpush.bf16.msra.mxu3 %v2770_v12 }
  0x15   :  { %v2751_v9 = vld [vmem:[%s4320_s3 + $0x20] sm:$0xff]  ;;  %v2752_v11 = vld [vmem:[%s4320_s3 + $0x28] sm:$0xff]  ;;  %v2749_v15 = vld [vmem:[%s4320_s3 + $0x10] sm:$0xff] }
  0x16   :  { %202 = vmatpush.bf16.msra.mxu0 %v2761_v1  ;;  %3016 = vmatpush.bf16.msra.mxu2 %v2761_v1  ;;  %v2768_v14 = vld [vmem:[%s4321_s22 + $0x28] sm:$0xff]  ;;  %v2753_v16 = vld [vmem:[%s4320_s3 + $0x30] sm:$0xff]  ;;  %v2750_v17 = vld [vmem:[%s4320_s3 + $0x18] sm:$0xff] }
  0x17   :  { %v2754_v18 = vld [vmem:[%s4320_s3 + $0x38] sm:$0xff]  ;;  %v2767_v19 = vld [vmem:[%s4321_s22 + $0x20] sm:$0xff]  ;;  %v2765_v21 = vld [vmem:[%s4321_s22 + $0x10] sm:$0xff] }
  0x18   :  { %399 = vmatpush.bf16.msra.mxu1 %v2769_v13  ;;  %3024 = vmatpush.bf16.msra.mxu3 %v2769_v13  ;;  %v2766_v20 = vld [vmem:[%s4321_s22 + $0x18] sm:$0xff]  ;;  %v2764_v22 = vld [vmem:[%s4321_s22 + $0x8] sm:$0xff]  ;;  %v2763_v23 = vld [vmem:[%s4321_s22] sm:$0xff] }
  0x19   :  { %v3316_v24 = vld [vmem:[%s4322_s28] ss:$0 sm:$0xff]  ;;  %v2778_v13 = vld [vmem:[%s4324_s4 + $0x38] sm:$0xff]  ;;  %s4326_s28 = sld [smem:[#allocation10_spill]] }
  0x1a   :  { %203 = vmatpush.bf16.msra.mxu0 %v2760_v2  ;;  %3017 = vmatpush.bf16.msra.mxu2 %v2760_v2 }
  0x1c   :  { %400 = vmatpush.bf16.msra.mxu1 %v2768_v14  ;;  %3025 = vmatpush.bf16.msra.mxu3 %v2768_v14 }
  0x1e   :  { %204 = vmatpush.bf16.msra.mxu0 %v2759_v3  ;;  %3018 = vmatpush.bf16.msra.mxu2 %v2759_v3 }
  0x20   :  { %401 = vmatpush.bf16.msra.mxu1 %v2767_v19  ;;  %3026 = vmatpush.bf16.msra.mxu3 %v2767_v19  ;;  %v2777_v19 = vld [vmem:[%s4324_s4 + $0x30] sm:$0xff] }
  0x22   :  { %205 = vmatpush.bf16.msra.mxu0 %v2758_v4  ;;  %3019 = vmatpush.bf16.msra.mxu2 %v2758_v4 }
  0x24   :  { %402 = vmatpush.bf16.msra.mxu1 %v2766_v20  ;;  %3027 = vmatpush.bf16.msra.mxu3 %v2766_v20 }
  0x26   :  { %206 = vmatpush.bf16.msra.mxu0 %v2757_v5  ;;  %3020 = vmatpush.bf16.msra.mxu2 %v2757_v5 }
  0x28   :  { %403 = vmatpush.bf16.msra.mxu1 %v2765_v21  ;;  %3028 = vmatpush.bf16.msra.mxu3 %v2765_v21 }
  0x2a   :  { %207 = vmatpush.bf16.msra.mxu0 %v2756_v6  ;;  %3021 = vmatpush.bf16.msra.mxu2 %v2756_v6 }
  0x2c   :  { %404 = vmatpush.bf16.msra.mxu1 %v2764_v22  ;;  %3029 = vmatpush.bf16.msra.mxu3 %v2764_v22 }
  0x2e   :  { %208 = vmatpush.bf16.msra.mxu0 %v2755_v7  ;;  %3022 = vmatpush.bf16.msra.mxu2 %v2755_v7 }
  0x30   :  { %405 = vmatpush.bf16.msra.mxu1 %v2763_v23  ;;  %3030 = vmatpush.bf16.msra.mxu3 %v2763_v23 }
  0x31   :  { %209 = vmatmul.bf16.vlgmr.msra.gmra.mxu0 %v2747_v8  ;;  %229 = vmatmul.bf16.vlgmr.msra.gmra.mxu2 %v2751_v9 }
  0x32   :  { %595 = vmatpush.bf16.msrb.mxu2 %v2778_v13 }
  0x36   :  { %596 = vmatpush.bf16.msrb.mxu2 %v2777_v19 }
  0x41   :  { %214 = vmatmul.bf16.gmra.mxu0 %v2748_v10  ;;  %234 = vmatmul.bf16.gmra.mxu2 %v2752_v11 }
  0x51   :  { %219 = vmatmul.bf16.gmra.mxu0 %v2749_v15  ;;  %239 = vmatmul.bf16.gmra.mxu2 %v2753_v16 }
  0x61   :  { %224 = vmatmul.bf16.gmra.mxu0 %v2750_v17  ;;  %244 = vmatmul.bf16.gmra.mxu2 %v2754_v18 }
  0xae   :  { %v210_v25 = vpop.f32.mrf.mxu0 }
  0xaf   :  { %v211_v26 = vadd.f32 %v3316_v24, %v210_v25 }
  0xb1   :  { %v250_v27 = vmax.f32 %v211_v26, 0.0  ;;  %v2776_v26 = vld [vmem:[%s4324_s4 + $0x28] sm:$0xff] }
  0xb2   :  { %597 = vmatpush.bf16.msrb.mxu2 %v2776_v26 }
  0xb3   :  { %v266_v31 = vpack.c.bf16 %v250_v27, %v250_v27 }
  0xb4   :  { %v230_v30 = vpop.f32.mrf.mxu2 }
  0xb5   :  { %v318_v35 = vunpack.c.l.b16 %v266_v31  ;;  %v231_v37 = vadd.f32 %v3316_v24, %v230_v30 }
  0xb6   :  { %v212_v28 = vpop.f32.mrf.mxu0 }
  0xb7   :  { %v213_v29 = vadd.f32 %v3316_v24, %v212_v28  ;;  %v258_v40 = vmax.f32 %v231_v37, 0.0 }
  0xb9   :  { %v251_v32 = vmax.f32 %v213_v29, 0.0  ;;  %v274_v44 = vpack.c.bf16 %v258_v40, %v258_v40 }
  0xbb   :  { %v2830_v33 = vpack.c.bf16 %v251_v32, %v250_v27  ;;  %v267_v34 = vpack.c.bf16 %v251_v32, %v251_v32  ;;  %v326_v51 = vunpack.c.l.b16 %v274_v44 }
  0xbc   :  { %v232_v41 = vpop.f32.mrf.mxu2 }
  0xbd   :  { %2831 = vst [vmem:[%s4323_s0] sm:$0xff] %v2830_v33   ;;  %v319_v36 = vunpack.c.l.b16 %v267_v34  ;;  %v233_v43 = vadd.f32 %v3316_v24, %v232_v41  ;;  %v2775_v33 = vld [vmem:[%s4324_s4 + $0x20] sm:$0xff] }
  0xbe   :  { %v215_v38 = vpop.f32.mrf.mxu0  ;;  %598 = vmatpush.bf16.msrb.mxu2 %v2775_v33 }
  0xbf   :  { %v334_v39 = vpack.c.b16 %v319_v36, %v318_v35  ;;  %v216_v42 = vadd.f32 %v3316_v24, %v215_v38  ;;  %v259_v45 = vmax.f32 %v233_v43, 0.0 }
  0xc1   :  { %406 = vmatmul.bf16.vlgmr.msra.gmra.mxu1 %v334_v39  ;;  %v252_v46 = vmax.f32 %v216_v42, 0.0  ;;  %v2850_v47 = vpack.c.bf16 %v259_v45, %v258_v40  ;;  %v275_v48 = vpack.c.bf16 %v259_v45, %v259_v45  ;;  %v2774_v39 = vld [vmem:[%s4324_s4 + $0x18] sm:$0xff] }
  0xc2   :  { %599 = vmatpush.bf16.msrb.mxu2 %v2774_v39 }
  0xc3   :  { %2990 = vst [vmem:[%s4323_s0 + $0x20] sm:$0xff] %v2850_v47   ;;  %v327_v52 = vunpack.c.l.b16 %v275_v48  ;;  %v268_v54 = vpack.c.bf16 %v252_v46, %v252_v46  ;;  %v2773_v48 = vld [vmem:[%s4324_s4 + $0x10] sm:$0xff] }
  0xc4   :  { %v235_v53 = vpop.f32.mrf.mxu2 }
  0xc5   :  { %v338_v56 = vpack.c.b16 %v327_v52, %v326_v51  ;;  %v320_v59 = vunpack.c.l.b16 %v268_v54  ;;  %v236_v61 = vadd.f32 %v3316_v24, %v235_v53 }
  0xc6   :  { %v217_v49 = vpop.f32.mrf.mxu0  ;;  %600 = vmatpush.bf16.msrb.mxu2 %v2773_v48 }
  0xc7   :  { %v218_v50 = vadd.f32 %v3316_v24, %v217_v49  ;;  %426 = vmatmul.bf16.vlgmr.msra.gmra.mxu3 %v338_v56  ;;  %v260_v0 = vmax.f32 %v236_v61, 0.0 }
  0xc9   :  { %v253_v55 = vmax.f32 %v218_v50, 0.0  ;;  %v276_v3 = vpack.c.bf16 %v260_v0, %v260_v0 }
  0xcb   :  { %v2835_v57 = vpack.c.bf16 %v253_v55, %v252_v46  ;;  %v269_v58 = vpack.c.bf16 %v253_v55, %v253_v55  ;;  %v328_v9 = vunpack.c.l.b16 %v276_v3 }
  0xcc   :  { %v237_v1 = vpop.f32.mrf.mxu2 }
  0xcd   :  { %2987 = vst [vmem:[%s4323_s0 + $0x8] sm:$0xff] %v2835_v57   ;;  %v321_v60 = vunpack.c.l.b16 %v269_v58  ;;  %v238_v4 = vadd.f32 %v3316_v24, %v237_v1  ;;  %v3385_v1 = vld [vmem:[%s4325_s5] ss:$0 sm:$0xff] }
  0xce   :  { %v220_v62 = vpop.f32.mrf.mxu0 }
  0xcf   :  { %v335_v63 = vpack.c.b16 %v321_v60, %v320_v59  ;;  %v221_v2 = vadd.f32 %v3316_v24, %v220_v62  ;;  %v261_v5 = vmax.f32 %v238_v4, 0.0 }
  0xd1   :  { %411 = vmatmul.bf16.gmra.mxu1 %v335_v63  ;;  %v254_v6 = vmax.f32 %v221_v2, 0.0  ;;  %v2855_v7 = vpack.c.bf16 %v261_v5, %v260_v0  ;;  %v277_v8 = vpack.c.bf16 %v261_v5, %v261_v5  ;;  %v2772_v0 = vld [vmem:[%s4324_s4 + $0x8] sm:$0xff] }
  0xd2   :  { %601 = vmatpush.bf16.msrb.mxu2 %v2772_v0 }
  0xd3   :  { %2991 = vst [vmem:[%s4323_s0 + $0x28] sm:$0xff] %v2855_v7   ;;  %v329_v12 = vunpack.c.l.b16 %v277_v8  ;;  %v270_v15 = vpack.c.bf16 %v254_v6, %v254_v6 }
  0xd4   :  { %v240_v14 = vpop.f32.mrf.mxu2 }
  0xd5   :  { %v241_v17 = vadd.f32 %v3316_v24, %v240_v14  ;;  %v339_v18 = vpack.c.b16 %v329_v12, %v328_v9  ;;  %v322_v22 = vunpack.c.l.b16 %v270_v15 }
  0xd6   :  { %v222_v10 = vpop.f32.mrf.mxu0 }
  0xd7   :  { %v223_v11 = vadd.f32 %v3316_v24, %v222_v10  ;;  %431 = vmatmul.bf16.gmra.mxu3 %v339_v18  ;;  %v262_v25 = vmax.f32 %v241_v17, 0.0 }
  0xd9   :  { %v255_v16 = vmax.f32 %v223_v11, 0.0  ;;  %v278_v31 = vpack.c.bf16 %v262_v25, %v262_v25 }
  0xdb   :  { %v2840_v20 = vpack.c.bf16 %v255_v16, %v254_v6  ;;  %v271_v21 = vpack.c.bf16 %v255_v16, %v255_v16  ;;  %v330_v38 = vunpack.c.l.b16 %v278_v31 }
  0xdc   :  { %v242_v29 = vpop.f32.mrf.mxu2 }
  0xdd   :  { %2988 = vst [vmem:[%s4323_s0 + $0x10] sm:$0xff] %v2840_v20   ;;  %v323_v23 = vunpack.c.l.b16 %v271_v21  ;;  %v243_v32 = vadd.f32 %v3316_v24, %v242_v29 }
  0xde   :  { %v225_v27 = vpop.f32.mrf.mxu0 }
  0xdf   :  { %v336_v28 = vpack.c.b16 %v323_v23, %v322_v22  ;;  %v226_v30 = vadd.f32 %v3316_v24, %v225_v27  ;;  %v263_v34 = vmax.f32 %v243_v32, 0.0 }
  0xe1   :  { %416 = vmatmul.bf16.gmra.mxu1 %v336_v28  ;;  %v256_v35 = vmax.f32 %v226_v30, 0.0  ;;  %v2860_v36 = vpack.c.bf16 %v263_v34, %v262_v25  ;;  %v279_v37 = vpack.c.bf16 %v263_v34, %v263_v34 }
  0xe3   :  { %2992 = vst [vmem:[%s4323_s0 + $0x30] sm:$0xff] %v2860_v36   ;;  %v331_v42 = vunpack.c.l.b16 %v279_v37  ;;  %v272_v44 = vpack.c.bf16 %v256_v35, %v256_v35 }
  0xe4   :  { %v245_v43 = vpop.f32.mrf.mxu2 }
  0xe5   :  { %v246_v46 = vadd.f32 %v3316_v24, %v245_v43  ;;  %v340_v47 = vpack.c.b16 %v331_v42, %v330_v38  ;;  %v324_v51 = vunpack.c.l.b16 %v272_v44 }
  0xe6   :  { %v227_v40 = vpop.f32.mrf.mxu0 }
  0xe7   :  { %v228_v41 = vadd.f32 %v3316_v24, %v227_v40  ;;  %436 = vmatmul.bf16.gmra.mxu3 %v340_v47  ;;  %v264_v53 = vmax.f32 %v246_v46, 0.0 }
  0xe9   :  { %v257_v45 = vmax.f32 %v228_v41, 0.0  ;;  %v280_v56 = vpack.c.bf16 %v264_v53, %v264_v53 }
  0xeb   :  { %v2845_v49 = vpack.c.bf16 %v257_v45, %v256_v35  ;;  %v273_v50 = vpack.c.bf16 %v257_v45, %v257_v45  ;;  %v332_v61 = vunpack.c.l.b16 %v280_v56 }
  0xec   :  { %v247_v55 = vpop.f32.mrf.mxu2 }
  0xed   :  { %2989 = vst [vmem:[%s4323_s0 + $0x18] sm:$0xff] %v2845_v49   ;;  %v325_v52 = vunpack.c.l.b16 %v273_v50  ;;  %v248_v57 = vadd.f32 %v3316_v24, %v247_v55  ;;  %v2771_v24 = vld [vmem:[%s4324_s4] sm:$0xff] }
  0xee   :  { %602 = vmatpush.bf16.msrb.mxu2 %v2771_v24 }
  0xef   :  { %v337_v54 = vpack.c.b16 %v325_v52, %v324_v51  ;;  %v265_v58 = vmax.f32 %v248_v57, 0.0 }
  0xf1   :  { %421 = vmatmul.bf16.gmra.mxu1 %v337_v54  ;;  %v2865_v59 = vpack.c.bf16 %v265_v58, %v264_v53  ;;  %v281_v60 = vpack.c.bf16 %v265_v58, %v265_v58 }
  0xf3   :  { %2993 = vst [vmem:[%s4323_s0 + $0x38] sm:$0xff] %v2865_v59   ;;  %v333_v62 = vunpack.c.l.b16 %v281_v60 }
  0xf5   :  { %v341_v63 = vpack.c.b16 %v333_v62, %v332_v61 }
  0xf7   :  { %441 = vmatmul.bf16.gmra.mxu3 %v341_v63 }
 0x13e   :  { %v407_v2 = vpop.f32.mrf.mxu1 }
 0x13f   :  { %v408_v3 = vadd.f32 %v3385_v1, %v407_v2 }
 0x141   :  { %v447_v4 = vmax.f32 %v408_v3, 0.0 }
 0x143   :  { %v463_v7 = vpack.c.bf16 %v447_v4, %v447_v4 }
 0x145   :  { %v515_v11 = vunpack.c.l.b16 %v463_v7 }
 0x146   :  { %v409_v5 = vpop.f32.mrf.mxu1 }
 0x147   :  { %v410_v6 = vadd.f32 %v3385_v1, %v409_v5 }
 0x149   :  { %v448_v8 = vmax.f32 %v410_v6, 0.0 }
 0x14a   :  { %v427_v14 = vpop.f32.mrf.mxu3 }
 0x14b   :  { %v464_v9 = vpack.c.bf16 %v448_v8, %v448_v8  ;;  %v2870_v10 = vpack.c.bf16 %v448_v8, %v447_v4  ;;  %v428_v17 = vadd.f32 %v3385_v1, %v427_v14 }
 0x14d   :  { %v516_v12 = vunpack.c.l.b16 %v464_v9  ;;  %2871 = vst [vmem:[%s4326_s28] sm:$0xff] %v2870_v10   ;;  %v3395_v22 = vmax.f32 %v428_v17, 0.0  ;;  %v2786_v9 = vld [vmem:[%s4327_s7 + $0x38] sm:$0xff] }
 0x14e   :  { %v412_v13 = vpop.f32.mrf.mxu1  ;;  %792 = vmatpush.bf16.msrb.mxu3 %v2786_v9 }
 0x14f   :  { %v531_v15 = vpack.c.b16 %v516_v12, %v515_v11  ;;  %v413_v16 = vadd.f32 %v3385_v1, %v412_v13  ;;  %v2785_v11 = vld [vmem:[%s4327_s7 + $0x30] sm:$0xff]  ;;  %v471_v13 = vpack.c.bf16 %v3395_v22, %v3395_v22 }
 0x151   :  { %603 = vmatmul.bf16.vlgmr.msrb.gmra.mxu2 %v531_v15  ;;  %v449_v18 = vmax.f32 %v413_v16, 0.0 }
 0x152   :  { %v429_v20 = vpop.f32.mrf.mxu3  ;;  %793 = vmatpush.bf16.msrb.mxu3 %v2785_v11 }
 0x153   :  { %v430_v23 = vadd.f32 %v3385_v1, %v429_v20  ;;  %v465_v25 = vpack.c.bf16 %v449_v18, %v449_v18 }
 0x155   :  { %v3398_v27 = vmax.f32 %v430_v23, 0.0  ;;  %v517_v31 = vunpack.c.l.b16 %v465_v25 }
 0x156   :  { %v414_v19 = vpop.f32.mrf.mxu1 }
 0x157   :  { %v415_v21 = vadd.f32 %v3385_v1, %v414_v19  ;;  %v2890_v30 = vpack.c.bf16 %v3398_v27, %v3395_v22  ;;  %v472_v14 = vpack.c.bf16 %v3398_v27, %v3398_v27  ;;  %v2784_v22 = vld [vmem:[%s4327_s7 + $0x28] sm:$0xff] }
 0x158   :  { %794 = vmatpush.bf16.msrb.mxu3 %v2784_v22 }
 0x159   :  { %v450_v26 = vmax.f32 %v415_v21, 0.0  ;;  %2997 = vst [vmem:[%s4326_s28 + $0x20] sm:$0xff] %v2890_v30   ;;  %v524_v19 = vunpack.c.l.b16 %v472_v14  ;;  %v2781_v30 = vld [vmem:[%s4327_s7 + $0x10] sm:$0xff] }
 0x15a   :  { %v432_v34 = vpop.f32.mrf.mxu3 }
 0x15b   :  { %v2875_v28 = vpack.c.bf16 %v450_v26, %v449_v18  ;;  %v466_v29 = vpack.c.bf16 %v450_v26, %v450_v26  ;;  %v433_v37 = vadd.f32 %v3385_v1, %v432_v34  ;;  %v523_v18 = vunpack.c.l.b16 %v471_v13 }
 0x15d   :  { %2994 = vst [vmem:[%s4326_s28 + $0x8] sm:$0xff] %v2875_v28   ;;  %v518_v32 = vunpack.c.l.b16 %v466_v29  ;;  %v457_v42 = vmax.f32 %v433_v37, 0.0  ;;  %v535_v21 = vpack.c.b16 %v524_v19, %v523_v18  ;;  %v2782_v29 = vld [vmem:[%s4327_s7 + $0x18] sm:$0xff] }
 0x15e   :  { %v417_v33 = vpop.f32.mrf.mxu1 }
 0x15f   :  { %v532_v35 = vpack.c.b16 %v518_v32, %v517_v31  ;;  %v418_v36 = vadd.f32 %v3385_v1, %v417_v33  ;;  %v473_v23 = vpack.c.bf16 %v457_v42, %v457_v42 }
 0x161   :  { %608 = vmatmul.bf16.gmra.mxu2 %v532_v35  ;;  %v451_v38 = vmax.f32 %v418_v36, 0.0  ;;  %v525_v26 = vunpack.c.l.b16 %v473_v23 }
 0x162   :  { %v434_v40 = vpop.f32.mrf.mxu3 }
 0x163   :  { %v435_v43 = vadd.f32 %v3385_v1, %v434_v40  ;;  %v467_v44 = vpack.c.bf16 %v451_v38, %v451_v38  ;;  %v2780_v40 = vld [vmem:[%s4327_s7 + $0x8] sm:$0xff] }
 0x165   :  { %v458_v46 = vmax.f32 %v435_v43, 0.0  ;;  %v519_v50 = vunpack.c.l.b16 %v467_v44  ;;  %v3464_v43 = vld [vmem:[%s4328_s2] ss:$0 sm:$0xff] }
 0x166   :  { %v419_v39 = vpop.f32.mrf.mxu1 }
 0x167   :  { %v420_v41 = vadd.f32 %v3385_v1, %v419_v39  ;;  %v2895_v49 = vpack.c.bf16 %v458_v46, %v457_v42  ;;  %v474_v25 = vpack.c.bf16 %v458_v46, %v458_v46  ;;  %v2779_v42 = vld [vmem:[%s4327_s7] sm:$0xff] }
 0x169   :  { %v452_v45 = vmax.f32 %v420_v41, 0.0  ;;  %2998 = vst [vmem:[%s4326_s28 + $0x28] sm:$0xff] %v2895_v49   ;;  %v526_v27 = vunpack.c.l.b16 %v474_v25 }
 0x16a   :  { %v437_v53 = vpop.f32.mrf.mxu3 }
 0x16b   :  { %v2880_v47 = vpack.c.bf16 %v452_v45, %v451_v38  ;;  %v468_v48 = vpack.c.bf16 %v452_v45, %v452_v45  ;;  %v438_v56 = vadd.f32 %v3385_v1, %v437_v53  ;;  %v536_v28 = vpack.c.b16 %v526_v27, %v525_v26 }
 0x16d   :  { %2995 = vst [vmem:[%s4326_s28 + $0x10] sm:$0xff] %v2880_v47   ;;  %v520_v51 = vunpack.c.l.b16 %v468_v48  ;;  %v459_v61 = vmax.f32 %v438_v56, 0.0 }
 0x16e   :  { %v422_v52 = vpop.f32.mrf.mxu1 }
 0x16f   :  { %v533_v54 = vpack.c.b16 %v520_v51, %v519_v50  ;;  %v423_v55 = vadd.f32 %v3385_v1, %v422_v52  ;;  %v475_v31 = vpack.c.bf16 %v459_v61, %v459_v61 }
 0x171   :  { %613 = vmatmul.bf16.gmra.mxu2 %v533_v54  ;;  %v453_v57 = vmax.f32 %v423_v55, 0.0  ;;  %v527_v33 = vunpack.c.l.b16 %v475_v31 }
 0x172   :  { %v439_v59 = vpop.f32.mrf.mxu3 }
 0x173   :  { %v440_v62 = vadd.f32 %v3385_v1, %v439_v59  ;;  %v469_v63 = vpack.c.bf16 %v453_v57, %v453_v57 }
 0x175   :  { %v460_v24 = vmax.f32 %v440_v62, 0.0  ;;  %v521_v5 = vunpack.c.l.b16 %v469_v63 }
 0x176   :  { %v424_v58 = vpop.f32.mrf.mxu1 }
 0x177   :  { %v425_v60 = vadd.f32 %v3385_v1, %v424_v58  ;;  %v2900_v4 = vpack.c.bf16 %v460_v24, %v459_v61  ;;  %v476_v32 = vpack.c.bf16 %v460_v24, %v460_v24 }
 0x179   :  { %v454_v0 = vmax.f32 %v425_v60, 0.0  ;;  %2999 = vst [vmem:[%s4326_s28 + $0x30] sm:$0xff] %v2900_v4   ;;  %v528_v34 = vunpack.c.l.b16 %v476_v32 }
 0x17a   :  { %v442_v7 = vpop.f32.mrf.mxu3 }
 0x17b   :  { %v2885_v2 = vpack.c.bf16 %v454_v0, %v453_v57  ;;  %v470_v3 = vpack.c.bf16 %v454_v0, %v454_v0  ;;  %v443_v10 = vadd.f32 %v3385_v1, %v442_v7  ;;  %v537_v35 = vpack.c.b16 %v528_v34, %v527_v33 }
 0x17d   :  { %2996 = vst [vmem:[%s4326_s28 + $0x18] sm:$0xff] %v2885_v2   ;;  %v522_v6 = vunpack.c.l.b16 %v470_v3  ;;  %v461_v15 = vmax.f32 %v443_v10, 0.0 }
 0x17f   :  { %v534_v8 = vpack.c.b16 %v522_v6, %v521_v5  ;;  %v477_v36 = vpack.c.bf16 %v461_v15, %v461_v15 }
 0x181   :  { %618 = vmatmul.bf16.gmra.mxu2 %v534_v8  ;;  %v529_v38 = vunpack.c.l.b16 %v477_v36 }
 0x182   :  { %v444_v12 = vpop.f32.mrf.mxu3 }
 0x183   :  { %v445_v16 = vadd.f32 %v3385_v1, %v444_v12  ;;  %v2783_v1 = vld [vmem:[%s4327_s7 + $0x20] sm:$0xff] }
 0x184   :  { %795 = vmatpush.bf16.msrb.mxu3 %v2783_v1 }
 0x185   :  { %v462_v17 = vmax.f32 %v445_v16, 0.0 }
 0x187   :  { %v2905_v20 = vpack.c.bf16 %v462_v17, %v461_v15  ;;  %v478_v37 = vpack.c.bf16 %v462_v17, %v462_v17 }
 0x188   :  { %796 = vmatpush.bf16.msrb.mxu3 %v2782_v29 }
 0x189   :  { %3000 = vst [vmem:[%s4326_s28 + $0x38] sm:$0xff] %v2905_v20   ;;  %v530_v39 = vunpack.c.l.b16 %v478_v37 }
 0x18b   :  { %v538_v41 = vpack.c.b16 %v530_v39, %v529_v38 }
 0x18c   :  { %797 = vmatpush.bf16.msrb.mxu3 %v2781_v30  ;;  %v2794_v30 = vld [vmem:[%s4288_s9 + $0x38] sm:$0xff] }
 0x18d   :  { %917 = vmatpush.bf16.msrb.mxu0 %v2794_v30 }
 0x190   :  { %798 = vmatpush.bf16.msrb.mxu3 %v2780_v40  ;;  %v2793_v40 = vld [vmem:[%s4288_s9 + $0x30] sm:$0xff] }
 0x191   :  { %623 = vmatmul.bf16.gmra.mxu2 %v535_v21  ;;  %918 = vmatpush.bf16.msrb.mxu0 %v2793_v40 }
 0x194   :  { %799 = vmatpush.bf16.msrb.mxu3 %v2779_v42 }
 0x1a1   :  { %628 = vmatmul.bf16.gmra.mxu2 %v536_v28 }
 0x1b1   :  { %633 = vmatmul.bf16.gmra.mxu2 %v537_v35 }
 0x1c1   :  { %638 = vmatmul.bf16.gmra.mxu2 %v538_v41 }
 0x1d4   :  { %v604_v44 = vpop.f32.mrf.mxu2 }
 0x1d5   :  { %v605_v45 = vadd.f32 %v3464_v43, %v604_v44 }
 0x1d7   :  { %v644_v46 = vmax.f32 %v605_v45, 0.0  ;;  %v2792_v45 = vld [vmem:[%s4288_s9 + $0x28] sm:$0xff] }
 0x1d8   :  { %919 = vmatpush.bf16.msrb.mxu0 %v2792_v45 }
 0x1d9   :  { %v660_v49 = vpack.c.bf16 %v644_v46, %v644_v46 }
 0x1db   :  { %v712_v53 = vunpack.c.l.b16 %v660_v49 }
 0x1dc   :  { %v606_v47 = vpop.f32.mrf.mxu2 }
 0x1dd   :  { %v607_v48 = vadd.f32 %v3464_v43, %v606_v47 }
 0x1df   :  { %v645_v50 = vmax.f32 %v607_v48, 0.0 }
 0x1e1   :  { %v661_v51 = vpack.c.bf16 %v645_v50, %v645_v50  ;;  %v2910_v52 = vpack.c.bf16 %v645_v50, %v644_v46 }
 0x1e3   :  { %v713_v54 = vunpack.c.l.b16 %v661_v51  ;;  %2911 = vst [vmem:[%s4287_s24] sm:$0xff] %v2910_v52  }
 0x1e4   :  { %v609_v55 = vpop.f32.mrf.mxu2 }
 0x1e5   :  { %v728_v56 = vpack.c.b16 %v713_v54, %v712_v53  ;;  %v610_v57 = vadd.f32 %v3464_v43, %v609_v55  ;;  %v2791_v55 = vld [vmem:[%s4288_s9 + $0x20] sm:$0xff] }
 0x1e6   :  { %920 = vmatpush.bf16.msrb.mxu0 %v2791_v55  ;;  %v3600_v55 = vld [vmem:[%s4291_s18 + $0x20] sm:$0xff] }
 0x1e7   :  { %800 = vmatmul.bf16.vlgmr.msrb.gmra.mxu3 %v728_v56  ;;  %v646_v58 = vmax.f32 %v610_v57, 0.0 }
 0x1e9   :  { %v662_v61 = vpack.c.bf16 %v646_v58, %v646_v58 }
 0x1eb   :  { %v714_v24 = vunpack.c.l.b16 %v662_v61 }
 0x1ec   :  { %v611_v59 = vpop.f32.mrf.mxu2 }
 0x1ed   :  { %v612_v60 = vadd.f32 %v3464_v43, %v611_v59  ;;  %v2790_v59 = vld [vmem:[%s4288_s9 + $0x18] sm:$0xff] }
 0x1ee   :  { %921 = vmatpush.bf16.msrb.mxu0 %v2790_v59  ;;  %v3610_v59 = vld [vmem:[%s4291_s18 + $0x28] sm:$0xff] }
 0x1ef   :  { %v647_v62 = vmax.f32 %v612_v60, 0.0  ;;  %v2789_v60 = vld [vmem:[%s4288_s9 + $0x10] sm:$0xff] }
 0x1f1   :  { %v2915_v63 = vpack.c.bf16 %v647_v62, %v646_v58  ;;  %v663_v0 = vpack.c.bf16 %v647_v62, %v647_v62 }
 0x1f2   :  { %922 = vmatpush.bf16.msrb.mxu0 %v2789_v60  ;;  %v1628_v60 = vmul.f32 %v3610_v59, %v3610_v59 }
 0x1f3   :  { %3001 = vst [vmem:[%s4287_s24 + $0x8] sm:$0xff] %v2915_v63   ;;  %v715_v2 = vunpack.c.l.b16 %v663_v0  ;;  %v2788_v0 = vld [vmem:[%s4288_s9 + $0x8] sm:$0xff] }
 0x1f4   :  { %v614_v3 = vpop.f32.mrf.mxu2 }
 0x1f5   :  { %v729_v4 = vpack.c.b16 %v715_v2, %v714_v24  ;;  %v615_v5 = vadd.f32 %v3464_v43, %v614_v3 }
 0x1f6   :  { %923 = vmatpush.bf16.msrb.mxu0 %v2788_v0 }
 0x1f7   :  { %805 = vmatmul.bf16.gmra.mxu3 %v729_v4  ;;  %v648_v6 = vmax.f32 %v615_v5, 0.0 }
 0x1f9   :  { %v664_v9 = vpack.c.bf16 %v648_v6, %v648_v6 }
 0x1fb   :  { %v716_v13 = vunpack.c.l.b16 %v664_v9 }
 0x1fc   :  { %v616_v7 = vpop.f32.mrf.mxu2 }
 0x1fd   :  { %v617_v8 = vadd.f32 %v3464_v43, %v616_v7 }
 0x1ff   :  { %v649_v10 = vmax.f32 %v617_v8, 0.0 }
 0x201   :  { %v2920_v11 = vpack.c.bf16 %v649_v10, %v648_v6  ;;  %v665_v12 = vpack.c.bf16 %v649_v10, %v649_v10 }
 0x203   :  { %3002 = vst [vmem:[%s4287_s24 + $0x10] sm:$0xff] %v2920_v11   ;;  %v717_v14 = vunpack.c.l.b16 %v665_v12 }
 0x204   :  { %v619_v15 = vpop.f32.mrf.mxu2 }
 0x205   :  { %v730_v16 = vpack.c.b16 %v717_v14, %v716_v13  ;;  %v620_v17 = vadd.f32 %v3464_v43, %v619_v15  ;;  %v2787_v13 = vld [vmem:[%s4288_s9] sm:$0xff] }
 0x206   :  { %924 = vmatpush.bf16.msrb.mxu0 %v2787_v13 }
 0x207   :  { %810 = vmatmul.bf16.gmra.mxu3 %v730_v16  ;;  %v650_v18 = vmax.f32 %v620_v17, 0.0 }
 0x209   :  { %v666_v21 = vpack.c.bf16 %v650_v18, %v650_v18 }
 0x20b   :  { %v718_v25 = vunpack.c.l.b16 %v666_v21 }
 0x20c   :  { %v621_v19 = vpop.f32.mrf.mxu2 }
 0x20d   :  { %v622_v20 = vadd.f32 %v3464_v43, %v621_v19 }
 0x20f   :  { %v651_v22 = vmax.f32 %v622_v20, 0.0 }
 0x211   :  { %v2925_v1 = vpack.c.bf16 %v651_v22, %v650_v18  ;;  %v667_v23 = vpack.c.bf16 %v651_v22, %v651_v22 }
 0x213   :  { %3003 = vst [vmem:[%s4287_s24 + $0x18] sm:$0xff] %v2925_v1   ;;  %v719_v26 = vunpack.c.l.b16 %v667_v23 }
 0x214   :  { %v624_v27 = vpop.f32.mrf.mxu2 }
 0x215   :  { %v731_v28 = vpack.c.b16 %v719_v26, %v718_v25  ;;  %v625_v29 = vadd.f32 %v3464_v43, %v624_v27 }
 0x217   :  { %815 = vmatmul.bf16.gmra.mxu3 %v731_v28  ;;  %v652_v31 = vmax.f32 %v625_v29, 0.0 }
 0x219   :  { %v668_v34 = vpack.c.bf16 %v652_v31, %v652_v31 }
 0x21b   :  { %v720_v38 = vunpack.c.l.b16 %v668_v34 }
 0x21c   :  { %v626_v32 = vpop.f32.mrf.mxu2 }
 0x21d   :  { %v627_v33 = vadd.f32 %v3464_v43, %v626_v32 }
 0x21f   :  { %v653_v35 = vmax.f32 %v627_v33, 0.0 }
 0x221   :  { %v669_v36 = vpack.c.bf16 %v653_v35, %v653_v35  ;;  %v2930_v37 = vpack.c.bf16 %v653_v35, %v652_v31 }
 0x223   :  { %3004 = vst [vmem:[%s4287_s24 + $0x20] sm:$0xff] %v2930_v37   ;;  %v721_v39 = vunpack.c.l.b16 %v669_v36 }
 0x224   :  { %v629_v41 = vpop.f32.mrf.mxu2 }
 0x225   :  { %v732_v42 = vpack.c.b16 %v721_v39, %v720_v38  ;;  %v630_v44 = vadd.f32 %v3464_v43, %v629_v41 }
 0x227   :  { %820 = vmatmul.bf16.gmra.mxu3 %v732_v42  ;;  %v654_v46 = vmax.f32 %v630_v44, 0.0  ;;  %v3570_v42 = vld [vmem:[%s4291_s18] sm:$0xff]  ;;  %v3575_v44 = vld [vmem:[%s4291_s18 + $0x8] sm:$0xff] }
 0x228   :  { %v1623_v45 = vmul.f32 %v3570_v42, %v3570_v42 }
 0x229   :  { %v670_v49 = vpack.c.bf16 %v654_v46, %v654_v46 }
 0x22b   :  { %v722_v53 = vunpack.c.l.b16 %v670_v49 }
 0x22c   :  { %v631_v47 = vpop.f32.mrf.mxu2 }
 0x22d   :  { %v632_v48 = vadd.f32 %v3464_v43, %v631_v47  ;;  %v3585_v47 = vld [vmem:[%s4291_s18 + $0x10] sm:$0xff] }
 0x22f   :  { %v655_v50 = vmax.f32 %v632_v48, 0.0  ;;  %v1625_v48 = vmul.f32 %v3585_v47, %v3585_v47 }
 0x231   :  { %v671_v51 = vpack.c.bf16 %v655_v50, %v655_v50  ;;  %v2935_v52 = vpack.c.bf16 %v655_v50, %v654_v46  ;;  %v1624_v46 = vmul.f32 %v3575_v44, %v3575_v44 }
 0x233   :  { %3005 = vst [vmem:[%s4287_s24 + $0x28] sm:$0xff] %v2935_v52   ;;  %v723_v54 = vunpack.c.l.b16 %v671_v51  ;;  %v1639_v49 = vadd.f32 %v1624_v46, %v1623_v45  ;;  %v3592_v51 = vld [vmem:[%s4291_s18 + $0x18] sm:$0xff] }
 0x234   :  { %v634_v56 = vpop.f32.mrf.mxu2 }
 0x235   :  { %v733_v57 = vpack.c.b16 %v723_v54, %v722_v53  ;;  %v635_v58 = vadd.f32 %v3464_v43, %v634_v56  ;;  %v1626_v53 = vmul.f32 %v3592_v51, %v3592_v51  ;;  %v1640_v54 = vadd.f32 %v1639_v49, %v1625_v48  ;;  %v2800_v48 = vld [vmem:[%s4292_s11 + $0x28] sm:$0xff] }
 0x237   :  { %825 = vmatmul.bf16.gmra.mxu3 %v733_v57  ;;  %v656_v61 = vmax.f32 %v635_v58, 0.0  ;;  %v1627_v57 = vmul.f32 %v3600_v55, %v3600_v55  ;;  %v1641_v58 = vadd.f32 %v1640_v54, %v1626_v53  ;;  %v2799_v54 = vld [vmem:[%s4292_s11 + $0x20] sm:$0xff] }
 0x239   :  { %v672_v24 = vpack.c.bf16 %v656_v61, %v656_v61 }
 0x23b   :  { %v724_v5 = vunpack.c.l.b16 %v672_v24 }
 0x23c   :  { %v636_v62 = vpop.f32.mrf.mxu2 }
 0x23d   :  { %v637_v63 = vadd.f32 %v3464_v43, %v636_v62  ;;  %v3617_v62 = vld [vmem:[%s4291_s18 + $0x30] sm:$0xff] }
 0x23f   :  { %v657_v2 = vmax.f32 %v637_v63, 0.0  ;;  %v1629_v63 = vmul.f32 %v3617_v62, %v3617_v62 }
 0x241   :  { %v673_v3 = vpack.c.bf16 %v657_v2, %v657_v2  ;;  %v2940_v4 = vpack.c.bf16 %v657_v2, %v656_v61  ;;  %v1642_v61 = vadd.f32 %v1641_v58, %v1627_v57  ;;  %v3624_v2 = vld [vmem:[%s4291_s18 + $0x38] sm:$0xff] }
 0x243   :  { %3006 = vst [vmem:[%s4287_s24 + $0x30] sm:$0xff] %v2940_v4   ;;  %v725_v6 = vunpack.c.l.b16 %v673_v3  ;;  %v1643_v0 = vadd.f32 %v1642_v61, %v1628_v60  ;;  %v1630_v4 = vmul.f32 %v3624_v2, %v3624_v2  ;;  %v2798_v61 = vld [vmem:[%s4292_s11 + $0x18] sm:$0xff] }
 0x244   :  { %v639_v7 = vpop.f32.mrf.mxu2 }
 0x245   :  { %v734_v8 = vpack.c.b16 %v725_v6, %v724_v5  ;;  %v640_v9 = vadd.f32 %v3464_v43, %v639_v7  ;;  %v1644_v5 = vadd.f32 %v1643_v0, %v1629_v63  ;;  %v3632_v6 = vld [vmem:[%s4291_s18 + $0x40] sm:$0xff] }
 0x247   :  { %830 = vmatmul.bf16.gmra.mxu3 %v734_v8  ;;  %v658_v10 = vmax.f32 %v640_v9, 0.0  ;;  %v2802_v9 = vld [vmem:[%s4292_s11 + $0x38] sm:$0xff] }
 0x248   :  { %1058 = vmatpush.bf16.msrb.mxu1 %v2802_v9 }
 0x249   :  { %v674_v14 = vpack.c.bf16 %v658_v10, %v658_v10 }
 0x24b   :  { %v726_v18 = vunpack.c.l.b16 %v674_v14 }
 0x24c   :  { %v641_v11 = vpop.f32.mrf.mxu2 }
 0x24d   :  { %v642_v12 = vadd.f32 %v3464_v43, %v641_v11  ;;  %v3533_v43 = vld [vmem:[%s4286_s8] ss:$0 sm:$0xff]  ;;  %v1645_v11 = vadd.f32 %v1644_v5, %v1630_v4 }
 0x24f   :  { %v659_v15 = vmax.f32 %v642_v12, 0.0  ;;  %v3647_v12 = vld [vmem:[%s4291_s18 + $0x48] sm:$0xff] }
 0x250   :  { %v1632_v13 = vmul.f32 %v3647_v12, %v3647_v12 }
 0x251   :  { %v675_v16 = vpack.c.bf16 %v659_v15, %v659_v15  ;;  %v2945_v17 = vpack.c.bf16 %v659_v15, %v658_v10  ;;  %v1631_v10 = vmul.f32 %v3632_v6, %v3632_v6  ;;  %v3655_v15 = vld [vmem:[%s4291_s18 + $0x50] sm:$0xff] }
 0x253   :  { %3007 = vst [vmem:[%s4287_s24 + $0x38] sm:$0xff] %v2945_v17   ;;  %v727_v19 = vunpack.c.l.b16 %v675_v16  ;;  %v1646_v14 = vadd.f32 %v1645_v11, %v1631_v10  ;;  %v1633_v16 = vmul.f32 %v3655_v15, %v3655_v15 }
 0x255   :  { %v735_v20 = vpack.c.b16 %v727_v19, %v726_v18  ;;  %v1647_v17 = vadd.f32 %v1646_v14, %v1632_v13  ;;  %v3662_v19 = vld [vmem:[%s4291_s18 + $0x58] sm:$0xff]  ;;  %v2795_v14 = vld [vmem:[%s4292_s11] sm:$0xff] }
 0x257   :  { %835 = vmatmul.bf16.gmra.mxu3 %v735_v20 }
 0x26a   :  { %v801_v21 = vpop.f32.mrf.mxu3 }
 0x26b   :  { %v802_v22 = vadd.f32 %v3533_v43, %v801_v21  ;;  %v1634_v21 = vmul.f32 %v3662_v19, %v3662_v19 }
 0x26d   :  { %2287 = vst [vmem:[%s4289_s20] sm:$0xff] %v802_v22  ;;  %v1575_v1 = vmul.f32 %v802_v22, %v802_v22 }
 0x26f   :  { %1591 = vadd.xlane.f32.xlu0 %v1575_v1  ;;  %v3670_v1 = vld [vmem:[%s4291_s18 + $0x60] sm:$0xff] }
 0x272   :  { %v803_v23 = vpop.f32.mrf.mxu3 }
 0x273   :  { %v804_v25 = vadd.f32 %v3533_v43, %v803_v23 }
 0x275   :  { %2288 = vst [vmem:[%s4289_s20 + $0x8] sm:$0xff] %v804_v25  ;;  %v1576_v26 = vmul.f32 %v804_v25, %v804_v25  ;;  %v3543_v27 = vpack.c.bf16 %v804_v25, %v802_v22  ;;  %v1648_v22 = vadd.f32 %v1647_v17, %v1633_v16  ;;  %v2801_v25 = vld [vmem:[%s4292_s11 + $0x30] sm:$0xff] }
 0x276   :  { %1059 = vmatpush.bf16.msrb.mxu1 %v2801_v25 }
 0x277   :  { %1593 = vadd.xlane.f32.xlu0 %v1576_v26  ;;  %925 = vmatmul.bf16.vlgmr.msrb.gmra.mxu0 %v3543_v27  ;;  %v1635_v26 = vmul.f32 %v3670_v1, %v3670_v1 }
 0x27a   :  { %v806_v28 = vpop.f32.mrf.mxu3  ;;  %1060 = vmatpush.bf16.msrb.mxu1 %v2800_v48  ;;  %v2808_v48 = vld [vmem:[%s4293_s13 + $0x28] sm:$0xff] }
 0x27b   :  { %v807_v29 = vadd.f32 %v3533_v43, %v806_v28  ;;  %v1649_v28 = vadd.f32 %v1648_v22, %v1634_v21 }
 0x27d   :  { %2289 = vst [vmem:[%s4289_s20 + $0x10] sm:$0xff] %v807_v29  ;;  %v1577_v30 = vmul.f32 %v807_v29, %v807_v29 }
 0x27e   :  { %1061 = vmatpush.bf16.msrb.mxu1 %v2799_v54 }
 0x27f   :  { %1595 = vadd.xlane.f32.xlu1 %v1577_v30 }
 0x282   :  { %v808_v31 = vpop.f32.mrf.mxu3  ;;  %1062 = vmatpush.bf16.msrb.mxu1 %v2798_v61 }
 0x283   :  { %v809_v32 = vadd.f32 %v3533_v43, %v808_v31  ;;  %v1650_v31 = vadd.f32 %v1649_v28, %v1635_v26 }
 0x285   :  { %2290 = vst [vmem:[%s4289_s20 + $0x18] sm:$0xff] %v809_v32  ;;  %v1578_v33 = vmul.f32 %v809_v32, %v809_v32  ;;  %v3554_v34 = vpack.c.bf16 %v809_v32, %v807_v29  ;;  %v3683_v29 = vld [vmem:[%s4291_s18 + $0x68] sm:$0xff]  ;;  %v3690_v32 = vld [vmem:[%s4291_s18 + $0x70] sm:$0xff] }
 0x286   :  { %v1636_v30 = vmul.f32 %v3683_v29, %v3683_v29  ;;  %v1524_v26 = vpack.c.bf16 %v3683_v29, %v3670_v1 }
 0x287   :  { %1597 = vadd.xlane.f32.xlu1 %v1578_v33  ;;  %930 = vmatmul.bf16.gmra.mxu0 %v3554_v34  ;;  %v1637_v33 = vmul.f32 %v3690_v32, %v3690_v32 }
 0x28a   :  { %v811_v35 = vpop.f32.mrf.mxu3 }
 0x28b   :  { %v812_v36 = vadd.f32 %v3533_v43, %v811_v35  ;;  %v1651_v35 = vadd.f32 %v1650_v31, %v1636_v30 }
 0x28d   :  { %2291 = vst [vmem:[%s4289_s20 + $0x20] sm:$0xff] %v812_v36  ;;  %v1579_v37 = vmul.f32 %v812_v36, %v812_v36 }
 0x28f   :  { %1599 = vadd.xlane.f32.xlu2 %v1579_v37  ;;  %v1517_v37 = vld [vmem:[%s4291_s18 + $0x78] sm:$0xff] }
 0x290   :  { %v1525_v22 = vpack.c.bf16 %v1517_v37, %v3690_v32 }
 0x292   :  { %v813_v38 = vpop.f32.mrf.mxu3 }
 0x293   :  { %v814_v39 = vadd.f32 %v3533_v43, %v813_v38 }
 0x295   :  { %2292 = vst [vmem:[%s4289_s20 + $0x28] sm:$0xff] %v814_v39  ;;  %v1580_v40 = vmul.f32 %v814_v39, %v814_v39  ;;  %v3565_v41 = vpack.c.bf16 %v814_v39, %v812_v36  ;;  %v1638_v39 = vmul.f32 %v1517_v37, %v1517_v37 }
 0x297   :  { %1601 = vadd.xlane.f32.xlu2 %v1580_v40  ;;  %935 = vmatmul.bf16.gmra.mxu0 %v3565_v41  ;;  %v1652_v40 = vadd.f32 %v1651_v35, %v1637_v33  ;;  %v2809_v35 = vld [vmem:[%s4293_s13 + $0x30] sm:$0xff] }
 0x299   :  { %v3706_v49 = vadd.f32 %v1652_v40, %v1638_v39 }
 0x29a   :  { %v816_v50 = vpop.f32.mrf.mxu3 }
 0x29b   :  { %v817_v52 = vadd.f32 %v3533_v43, %v816_v50 }
 0x29d   :  { %2293 = vst [vmem:[%s4289_s20 + $0x30] sm:$0xff] %v817_v52  ;;  %v1581_v56 = vmul.f32 %v817_v52, %v817_v52 }
 0x29f   :  { %1603 = vadd.xlane.f32.xlu0 %v1581_v56 }
 0x2a2   :  { %v818_v24 = vpop.f32.mrf.mxu3 }
 0x2a3   :  { %v819_v3 = vadd.f32 %v3533_v43, %v818_v24  ;;  %v2797_v24 = vld [vmem:[%s4292_s11 + $0x10] sm:$0xff] }
 0x2a4   :  { %1063 = vmatpush.bf16.msrb.mxu1 %v2797_v24 }
 0x2a5   :  { %2294 = vst [vmem:[%s4289_s20 + $0x38] sm:$0xff] %v819_v3  ;;  %v1582_v7 = vmul.f32 %v819_v3, %v819_v3  ;;  %v3637_v8 = vpack.c.bf16 %v819_v3, %v817_v52 }
 0x2a7   :  { %1605 = vadd.xlane.f32.xlu1 %v1582_v7  ;;  %940 = vmatmul.bf16.gmra.mxu0 %v3637_v8  ;;  %v2796_v7 = vld [vmem:[%s4292_s11 + $0x8] sm:$0xff] }
 0x2a8   :  { %1064 = vmatpush.bf16.msrb.mxu1 %v2796_v7 }
 0x2aa   :  { %v821_v18 = vpop.f32.mrf.mxu3 }
 0x2ab   :  { %v822_v20 = vadd.f32 %v3533_v43, %v821_v18 }
 0x2ac   :  { %1065 = vmatpush.bf16.msrb.mxu1 %v2795_v14 }
 0x2ad   :  { %2295 = vst [vmem:[%s4289_s20 + $0x40] sm:$0xff] %v822_v20  ;;  %v1583_v23 = vmul.f32 %v822_v20, %v822_v20 }
 0x2af   :  { %1607 = vadd.xlane.f32.xlu2 %v1583_v23  ;;  %v2810_v23 = vld [vmem:[%s4293_s13 + $0x38] sm:$0xff] }
 0x2b0   :  { %1526 = vmatpush.bf16.msra.mxu1 %v1525_v22  ;;  %1199 = vmatpush.bf16.msra.mxu2 %v2810_v23  ;;  %v1519_v22 = vpack.c.bf16 %v3592_v51, %v3585_v47  ;;  %v2803_v47 = vld [vmem:[%s4293_s13] sm:$0xff] }
 0x2b2   :  { %v823_v36 = vpop.f32.mrf.mxu3 }
 0x2b3   :  { %v824_v38 = vadd.f32 %v3533_v43, %v823_v36 }
 0x2b4   :  { %1527 = vmatpush.bf16.msra.mxu1 %v1524_v26  ;;  %1200 = vmatpush.bf16.msra.mxu2 %v2809_v35 }
 0x2b5   :  { %2296 = vst [vmem:[%s4289_s20 + $0x48] sm:$0xff] %v824_v38  ;;  %v1584_v45 = vmul.f32 %v824_v38, %v824_v38  ;;  %v3701_v46 = vpack.c.bf16 %v824_v38, %v822_v20  ;;  %v1523_v38 = vpack.c.bf16 %v3662_v19, %v3655_v15 }
 0x2b7   :  { %1609 = vadd.xlane.f32.xlu0 %v1584_v45  ;;  %945 = vmatmul.bf16.gmra.mxu0 %v3701_v46 }
 0x2b8   :  { %1528 = vmatpush.bf16.msra.mxu1 %v1523_v38  ;;  %1201 = vmatpush.bf16.msra.mxu2 %v2808_v48 }
 0x2ba   :  { %v826_v50 = vpop.f32.mrf.mxu3 }
 0x2bb   :  { %v827_v52 = vadd.f32 %v3533_v43, %v826_v50 }
 0x2bd   :  { %2297 = vst [vmem:[%s4289_s20 + $0x50] sm:$0xff] %v827_v52  ;;  %v1585_v53 = vmul.f32 %v827_v52, %v827_v52 }
 0x2bf   :  { %1611 = vadd.xlane.f32.xlu1 %v1585_v53  ;;  %v1522_v53 = vpack.c.bf16 %v3647_v12, %v3632_v6 }
 0x2c1   :  { %1529 = vmatpush.bf16.msra.mxu1 %v1522_v53 }
 0x2c2   :  { %v828_v56 = vpop.f32.mrf.mxu3 }
 0x2c3   :  { %v829_v57 = vadd.f32 %v3533_v43, %v828_v56 }
 0x2c5   :  { %2298 = vst [vmem:[%s4289_s20 + $0x58] sm:$0xff] %v829_v57  ;;  %v1586_v58 = vmul.f32 %v829_v57, %v829_v57  ;;  %v3720_v60 = vpack.c.bf16 %v829_v57, %v827_v52 }
 0x2c7   :  { %1613 = vadd.xlane.f32.xlu2 %v1586_v58  ;;  %950 = vmatmul.bf16.gmra.mxu0 %v3720_v60  ;;  %v2807_v58 = vld [vmem:[%s4293_s13 + $0x20] sm:$0xff] }
 0x2c8   :  { %1202 = vmatpush.bf16.msra.mxu2 %v2807_v58  ;;  %v2817_v58 = vld [vmem:[%s4295_s15 + $0x30] sm:$0xff] }
 0x2ca   :  { %v831_v63 = vpop.f32.mrf.mxu3 }
 0x2cb   :  { %v832_v0 = vadd.f32 %v3533_v43, %v831_v63 }
 0x2cd   :  { %2299 = vst [vmem:[%s4289_s20 + $0x60] sm:$0xff] %v832_v0  ;;  %v1587_v3 = vmul.f32 %v832_v0, %v832_v0 }
 0x2cf   :  { %1615 = vadd.xlane.f32.xlu0 %v1587_v3 }
 0x2d2   :  { %v833_v4 = vpop.f32.mrf.mxu3 }
 0x2d3   :  { %v834_v5 = vadd.f32 %v3533_v43, %v833_v4 }
 0x2d5   :  { %2300 = vst [vmem:[%s4289_s20 + $0x68] sm:$0xff] %v834_v5  ;;  %v1588_v9 = vmul.f32 %v834_v5, %v834_v5  ;;  %v3740_v10 = vpack.c.bf16 %v834_v5, %v832_v0  ;;  %v1521_v0 = vpack.c.bf16 %v3624_v2, %v3617_v62  ;;  %v2806_v5 = vld [vmem:[%s4293_s13 + $0x18] sm:$0xff] }
 0x2d6   :  { %1203 = vmatpush.bf16.msra.mxu2 %v2806_v5  ;;  %v2824_v5 = vld [vmem:[%s4296_s17 + $0x28] sm:$0xff] }
 0x2d7   :  { %1617 = vadd.xlane.f32.xlu1 %v1588_v9  ;;  %955 = vmatmul.bf16.gmra.mxu0 %v3740_v10 }
 0x2d8   :  { %1530 = vmatpush.bf16.msra.mxu1 %v1521_v0 }
 0x2da   :  { %v836_v11 = vpop.f32.mrf.mxu3 }
 0x2db   :  { %v837_v13 = vadd.f32 %v3533_v43, %v836_v11  ;;  %v1520_v11 = vpack.c.bf16 %v3610_v59, %v3600_v55 }
 0x2dd   :  { %2301 = vst [vmem:[%s4289_s20 + $0x70] sm:$0xff] %v837_v13  ;;  %v1589_v16 = vmul.f32 %v837_v13, %v837_v13  ;;  %1531 = vmatpush.bf16.msra.mxu1 %v1520_v11 }
 0x2df   :  { %1619 = vadd.xlane.f32.xlu2 %v1589_v16 }
 0x2e1   :  { %1532 = vmatpush.bf16.msra.mxu1 %v1519_v22 }
 0x2e2   :  { %v838_v17 = vpop.f32.mrf.mxu3 }
 0x2e3   :  { %v839_v18 = vadd.f32 %v3533_v43, %v838_v17  ;;  %v3764_v43 = vld [vmem:[%s4290_s10] ss:$0 sm:$0xff]  ;;  %v2805_v17 = vld [vmem:[%s4293_s13 + $0x10] sm:$0xff] }
 0x2e4   :  { %1204 = vmatpush.bf16.msra.mxu2 %v2805_v17 }
 0x2e5   :  { %2302 = vst [vmem:[%s4289_s20 + $0x78] sm:$0xff] %v839_v18  ;;  %v1590_v20 = vmul.f32 %v839_v18, %v839_v18  ;;  %v3754_v21 = vpack.c.bf16 %v839_v18, %v837_v13 }
 0x2e7   :  { %1621 = vadd.xlane.f32.xlu0 %v1590_v20  ;;  %960 = vmatmul.bf16.gmra.mxu0 %v3754_v21 }
 0x2f4   :  { %v926_v25 = vpop.f32.mrf.mxu0 }
 0x2f5   :  { %v927_v28 = vadd.f32 %v3764_v43, %v926_v25 }
 0x2f7   :  { %v966_v32 = vmax.f32 %v927_v28, 0.0  ;;  %v2804_v28 = vld [vmem:[%s4293_s13 + $0x8] sm:$0xff] }
 0x2f8   :  { %1205 = vmatpush.bf16.msra.mxu2 %v2804_v28 }
 0x2fc   :  { %v928_v30 = vpop.f32.mrf.mxu0  ;;  %1206 = vmatpush.bf16.msra.mxu2 %v2803_v47 }
 0x2fd   :  { %v929_v31 = vadd.f32 %v3764_v43, %v928_v30 }
 0x2ff   :  { %v967_v33 = vmax.f32 %v929_v31, 0.0  ;;  %v1518_v31 = vpack.c.bf16 %v3575_v44, %v3570_v42 }
 0x301   :  { %v982_v36 = vpack.c.bf16 %v967_v33, %v966_v32  ;;  %1533 = vmatpush.bf16.msra.mxu1 %v1518_v31 }
 0x303   :  { %1066 = vmatmul.bf16.vlgmr.msrb.gmra.mxu1 %v982_v36 }
 0x304   :  { %v931_v37 = vpop.f32.mrf.mxu0 }
 0x305   :  { %v932_v1 = vadd.f32 %v3764_v43, %v931_v37 }
 0x307   :  { %v968_v40 = vmax.f32 %v932_v1, 0.0 }
 0x30c   :  { %v933_v29 = vpop.f32.mrf.mxu0 }
 0x30d   :  { %v934_v39 = vadd.f32 %v3764_v43, %v933_v29 }
 0x30f   :  { %v969_v45 = vmax.f32 %v934_v39, 0.0 }
 0x311   :  { %v983_v50 = vpack.c.bf16 %v969_v45, %v968_v40 }
 0x313   :  { %1071 = vmatmul.bf16.gmra.mxu1 %v983_v50  ;;  %v3820_v50 = vld [vmem:[%s4294_s12] ss:$0 sm:$0xff] }
 0x314   :  { %v936_v52 = vpop.f32.mrf.mxu0 }
 0x315   :  { %v937_v15 = vadd.f32 %v3764_v43, %v936_v52  ;;  %v2818_v52 = vld [vmem:[%s4295_s15 + $0x38] sm:$0xff] }
 0x316   :  { %1340 = vmatpush.bf16.msra.mxu3 %v2818_v52 }
 0x317   :  { %v970_v56 = vmax.f32 %v937_v15, 0.0 }
 0x31a   :  { %1341 = vmatpush.bf16.msra.mxu3 %v2817_v58 }
 0x31c   :  { %v938_v19 = vpop.f32.mrf.mxu0 }
 0x31d   :  { %v939_v54 = vadd.f32 %v3764_v43, %v938_v19 }
 0x31f   :  { %v971_v57 = vmax.f32 %v939_v54, 0.0 }
 0x321   :  { %v984_v61 = vpack.c.bf16 %v971_v57, %v970_v56 }
 0x323   :  { %1076 = vmatmul.bf16.gmra.mxu1 %v984_v61  ;;  %v2825_v61 = vld [vmem:[%s4296_s17 + $0x30] sm:$0xff] }
 0x324   :  { %v941_v63 = vpop.f32.mrf.mxu0 }
 0x325   :  { %v942_v6 = vadd.f32 %v3764_v43, %v941_v63 }
 0x327   :  { %v972_v3 = vmax.f32 %v942_v6, 0.0 }
 0x32c   :  { %v943_v12 = vpop.f32.mrf.mxu0 }
 0x32d   :  { %v944_v24 = vadd.f32 %v3764_v43, %v943_v12 }
 0x32f   :  { %v973_v4 = vmax.f32 %v944_v24, 0.0 }
 0x331   :  { %v985_v7 = vpack.c.bf16 %v973_v4, %v972_v3  ;;  %v2816_v4 = vld [vmem:[%s4295_s15 + $0x28] sm:$0xff] }
 0x332   :  { %1342 = vmatpush.bf16.msra.mxu3 %v2816_v4 }
 0x333   :  { %1081 = vmatmul.bf16.gmra.mxu1 %v985_v7 }
 0x334   :  { %v946_v9 = vpop.f32.mrf.mxu0 }
 0x335   :  { %v947_v62 = vadd.f32 %v3764_v43, %v946_v9 }
 0x337   :  { %v974_v14 = vmax.f32 %v947_v62, 0.0 }
 0x33c   :  { %v948_v2 = vpop.f32.mrf.mxu0 }
 0x33d   :  { %v949_v13 = vadd.f32 %v3764_v43, %v948_v2 }
 0x33f   :  { %v975_v16 = vmax.f32 %v949_v13, 0.0 }
 0x341   :  { %v986_v18 = vpack.c.bf16 %v975_v16, %v974_v14  ;;  %v2815_v14 = vld [vmem:[%s4295_s15 + $0x20] sm:$0xff] }
 0x342   :  { %v2823_v16 = vld [vmem:[%s4296_s17 + $0x20] sm:$0xff]  ;;  %1343 = vmatpush.bf16.msra.mxu3 %v2815_v14 }
 0x343   :  { %1086 = vmatmul.bf16.gmra.mxu1 %v986_v18 }
 0x344   :  { %v951_v20 = vpop.f32.mrf.mxu0 }
 0x345   :  { %v952_v55 = vadd.f32 %v3764_v43, %v951_v20 }
 0x347   :  { %v976_v25 = vmax.f32 %v952_v55, 0.0 }
 0x34c   :  { %v953_v59 = vpop.f32.mrf.mxu0 }
 0x34d   :  { %v954_v23 = vadd.f32 %v3764_v43, %v953_v59 }
 0x34f   :  { %v977_v26 = vmax.f32 %v954_v23, 0.0  ;;  %v2814_v23 = vld [vmem:[%s4295_s15 + $0x18] sm:$0xff] }
 0x350   :  { %1344 = vmatpush.bf16.msra.mxu3 %v2814_v23 }
 0x351   :  { %v987_v30 = vpack.c.bf16 %v977_v26, %v976_v25  ;;  %v2822_v25 = vld [vmem:[%s4296_s17 + $0x18] sm:$0xff] }
 0x353   :  { %1091 = vmatmul.bf16.gmra.mxu1 %v987_v30 }
 0x354   :  { %v956_v51 = vpop.f32.mrf.mxu0 }
 0x355   :  { %v957_v32 = vadd.f32 %v3764_v43, %v956_v51 }
 0x357   :  { %v978_v36 = vmax.f32 %v957_v32, 0.0  ;;  %v2813_v32 = vld [vmem:[%s4295_s15 + $0x10] sm:$0xff] }
 0x358   :  { %1345 = vmatpush.bf16.msra.mxu3 %v2813_v32  ;;  %v3912_v32 = vld [vmem:[%s4297_s14] ss:$0 sm:$0xff] }
 0x35c   :  { %v958_v33 = vpop.f32.mrf.mxu0 }
 0x35d   :  { %v959_v35 = vadd.f32 %v3764_v43, %v958_v33  ;;  %v2821_v33 = vld [vmem:[%s4296_s17 + $0x10] sm:$0xff] }
 0x35f   :  { %v979_v37 = vmax.f32 %v959_v35, 0.0 }
 0x361   :  { %v988_v38 = vpack.c.bf16 %v979_v37, %v978_v36 }
 0x363   :  { %1096 = vmatmul.bf16.gmra.mxu1 %v988_v38 }
 0x364   :  { %v961_v1 = vpop.f32.mrf.mxu0 }
 0x365   :  { %v962_v29 = vadd.f32 %v3764_v43, %v961_v1 }
 0x367   :  { %v980_v39 = vmax.f32 %v962_v29, 0.0 }
 0x36c   :  { %v963_v42 = vpop.f32.mrf.mxu0 }
 0x36d   :  { %v964_v44 = vadd.f32 %v3764_v43, %v963_v42  ;;  %v2826_v43 = vld [vmem:[%s4296_s17 + $0x38] sm:$0xff] }
 0x36e   :  { %1453 = vmatpush.bf16.msra.mxu0 %v2826_v43 }
 0x36f   :  { %v981_v40 = vmax.f32 %v964_v44, 0.0 }
 0x371   :  { %v989_v45 = vpack.c.bf16 %v981_v40, %v980_v39  ;;  %v1654_v39 = vrot.slane %v3706_v49, 4 }
 0x372   :  { %1454 = vmatpush.bf16.msra.mxu0 %v2825_v61  ;;  %v2811_v61 = vld [vmem:[%s4295_s15] sm:$0xff] }
 0x373   :  { %1101 = vmatmul.bf16.gmra.mxu1 %v989_v45  ;;  %v2812_v45 = vld [vmem:[%s4295_s15 + $0x8] sm:$0xff] }
 0x374   :  { %1346 = vmatpush.bf16.msra.mxu3 %v2812_v45 }
 0x376   :  { %1455 = vmatpush.bf16.msra.mxu0 %v2824_v5 }
 0x378   :  { %1347 = vmatpush.bf16.msra.mxu3 %v2811_v61 }
 0x37a   :  { %1456 = vmatpush.bf16.msra.mxu0 %v2823_v16  ;;  %v3104_v16 = vld [vmem:[%s4320_s3 + $0x8] sm:$0xff] }
 0x37e   :  { %1457 = vmatpush.bf16.msra.mxu0 %v2822_v25 }
 0x380   :  { %v1067_v48 = vpop.f32.mrf.mxu1 }
 0x381   :  { %v1068_v53 = vadd.f32 %v3820_v50, %v1067_v48  ;;  %v2820_v48 = vld [vmem:[%s4296_s17 + $0x8] sm:$0xff] }
 0x382   :  { %1458 = vmatpush.bf16.msra.mxu0 %v2821_v33 }
 0x383   :  { %1534 = vmatmul.bf16.vlgmr.msra.gmra.mxu1 %v3543_v27  ;;  %v1107_v54 = vmax.f32 %v1068_v53, 0.0 }
 0x386   :  { %1459 = vmatpush.bf16.msra.mxu0 %v2820_v48 }
 0x388   :  { %v1069_v15 = vpop.f32.mrf.mxu1 }
 0x389   :  { %v1070_v19 = vadd.f32 %v3820_v50, %v1069_v15 }
 0x38b   :  { %v1108_v56 = vmax.f32 %v1070_v19, 0.0 }
 0x38d   :  { %v1123_v57 = vpack.c.bf16 %v1108_v56, %v1107_v54 }
 0x38f   :  { %1207 = vmatmul.bf16.vlgmr.msra.gmra.mxu2 %v1123_v57 }
 0x390   :  { %v1072_v27 = vpop.f32.mrf.mxu1 }
 0x391   :  { %v1073_v63 = vadd.f32 %v3820_v50, %v1072_v27 }
 0x393   :  { %1539 = vmatmul.bf16.gmra.mxu1 %v3554_v34  ;;  %v1109_v12 = vmax.f32 %v1073_v63, 0.0 }
 0x398   :  { %v1074_v0 = vpop.f32.mrf.mxu1 }
 0x399   :  { %v1075_v6 = vadd.f32 %v3820_v50, %v1074_v0 }
 0x39b   :  { %v1110_v24 = vmax.f32 %v1075_v6, 0.0 }
 0x39d   :  { %v1124_v3 = vpack.c.bf16 %v1110_v24, %v1109_v12 }
 0x39f   :  { %1212 = vmatmul.bf16.gmra.mxu2 %v1124_v3 }
 0x3a0   :  { %v1077_v34 = vpop.f32.mrf.mxu1 }
 0x3a1   :  { %v1078_v7 = vadd.f32 %v3820_v50, %v1077_v34 }
 0x3a3   :  { %1544 = vmatmul.bf16.gmra.mxu1 %v3565_v41  ;;  %v1111_v62 = vmax.f32 %v1078_v7, 0.0 }
 0x3a8   :  { %v1079_v9 = vpop.f32.mrf.mxu1 }
 0x3a9   :  { %v1080_v11 = vadd.f32 %v3820_v50, %v1079_v9 }
 0x3ab   :  { %v1112_v2 = vmax.f32 %v1080_v11, 0.0 }
 0x3ad   :  { %v1125_v13 = vpack.c.bf16 %v1112_v2, %v1111_v62 }
 0x3af   :  { %1217 = vmatmul.bf16.gmra.mxu2 %v1125_v13  ;;  %v1596_v13 = vpop.xlane.xlu1 %1595 }
 0x3b0   :  { %v1082_v41 = vpop.f32.mrf.mxu1 }
 0x3b1   :  { %v1083_v17 = vadd.f32 %v3820_v50, %v1082_v41 }
 0x3b3   :  { %1549 = vmatmul.bf16.gmra.mxu1 %v3637_v8  ;;  %v1113_v22 = vmax.f32 %v1083_v17, 0.0 }
 0x3b8   :  { %v1084_v18 = vpop.f32.mrf.mxu1 }
 0x3b9   :  { %v1085_v20 = vadd.f32 %v3820_v50, %v1084_v18 }
 0x3bb   :  { %v1114_v55 = vmax.f32 %v1085_v20, 0.0  ;;  %v1980_v20 = vlaneseq }
 0x3bd   :  { %v1126_v59 = vpack.c.bf16 %v1114_v55, %v1113_v22 }
 0x3bf   :  { %1222 = vmatmul.bf16.gmra.mxu2 %v1126_v59 }
 0x3c0   :  { %v1087_v8 = vpop.f32.mrf.mxu1 }
 0x3c1   :  { %v1088_v26 = vadd.f32 %v3820_v50, %v1087_v8 }
 0x3c3   :  { %1554 = vmatmul.bf16.gmra.mxu1 %v3701_v46  ;;  %v1115_v31 = vmax.f32 %v1088_v26, 0.0 }
 0x3c8   :  { %v1089_v28 = vpop.f32.mrf.mxu1 }
 0x3c9   :  { %v1090_v30 = vadd.f32 %v3820_v50, %v1089_v28 }
 0x3cb   :  { %v1116_v47 = vmax.f32 %v1090_v30, 0.0  ;;  %v3907_v30 = vand.u32 127, %v1980_v20 }
 0x3cd   :  { %v1127_v51 = vpack.c.bf16 %v1116_v47, %v1115_v31  ;;  %vm1982_vm3 = vcmp.lt.s32.totalorder %v3907_v30, 8 }
 0x3cf   :  { %1227 = vmatmul.bf16.gmra.mxu2 %v1127_v51  ;;  %v1598_v51 = vpop.xlane.xlu1 %1597 }
 0x3d0   :  { %v1092_v46 = vpop.f32.mrf.mxu1 }
 0x3d1   :  { %v1093_v35 = vadd.f32 %v3820_v50, %v1092_v46 }
 0x3d3   :  { %1559 = vmatmul.bf16.gmra.mxu1 %v3720_v60  ;;  %v1117_v38 = vmax.f32 %v1093_v35, 0.0 }
 0x3d8   :  { %v1094_v36 = vpop.f32.mrf.mxu1 }
 0x3d9   :  { %v1095_v37 = vadd.f32 %v3820_v50, %v1094_v36 }
 0x3db   :  { %v1118_v1 = vmax.f32 %v1095_v37, 0.0 }
 0x3dd   :  { %v1128_v29 = vpack.c.bf16 %v1118_v1, %v1117_v38 }
 0x3df   :  { %1232 = vmatmul.bf16.gmra.mxu2 %v1128_v29 }
 0x3e0   :  { %v1097_v60 = vpop.f32.mrf.mxu1 }
 0x3e1   :  { %v1098_v42 = vadd.f32 %v3820_v50, %v1097_v60 }
 0x3e3   :  { %1564 = vmatmul.bf16.gmra.mxu1 %v3740_v10  ;;  %v1119_v52 = vmax.f32 %v1098_v42, 0.0  ;;  %v1655_v10 = vadd.f32 %v1654_v39, %v3706_v49  ;;  %v2819_v49 = vld [vmem:[%s4296_s17] sm:$0xff] }
 0x3e4   :  { %1460 = vmatpush.bf16.msra.mxu0 %v2819_v49 }
 0x3e5   :  { %v1656_v19 = vrot.slane %v1655_v10, 2 }
 0x3e7   :  { %v1657_v54 = vadd.f32 %v1656_v19, %v1655_v10 }
 0x3e8   :  { %v1099_v44 = vpop.f32.mrf.mxu1 }
 0x3e9   :  { %v1100_v40 = vadd.f32 %v3820_v50, %v1099_v44  ;;  %v1658_v27 = vrot.slane %v1657_v54, 1 }
 0x3eb   :  { %v1120_v43 = vmax.f32 %v1100_v40, 0.0  ;;  %v3896_v6 = vadd.f32 %v1658_v27, %v1657_v54 }
 0x3ed   :  { %v1129_v53 = vpack.c.bf16 %v1120_v43, %v1119_v52  ;;  %v1662_v59 = vadd.f32 %v3896_v6, %v1596_v13  ;;  %v1663_v38 = vadd.f32 %v3896_v6, %v1598_v51  ;;  %v1600_v52 = vpop.xlane.xlu2 %1599 }
 0x3ef   :  { %1237 = vmatmul.bf16.gmra.mxu2 %v1129_v53 }
 0x3f0   :  { %v1102_v15 = vpop.f32.mrf.mxu1 }
 0x3f1   :  { %v1103_v56 = vadd.f32 %v3820_v50, %v1102_v15 }
 0x3f3   :  { %1569 = vmatmul.bf16.gmra.mxu1 %v3754_v21  ;;  %v1121_v63 = vmax.f32 %v1103_v56, 0.0  ;;  %v1592_v21 = vpop.xlane.xlu0 %1591 }
 0x3f4   :  { %v1660_v3 = vadd.f32 %v3896_v6, %v1592_v21 }
 0x3f5   :  { %v1602_v13 = vpop.xlane.xlu2 %1601 }
 0x3f6   :  { %v1665_v20 = vadd.f32 %v3896_v6, %v1602_v13 }
 0x3f8   :  { %v1104_v57 = vpop.f32.mrf.mxu1 }
 0x3f9   :  { %v1105_v58 = vadd.f32 %v3820_v50, %v1104_v57  ;;  %v3103_v50 = vld [vmem:[%s4320_s3] sm:$0xff] }
 0x3fa   :  { %1461 = vmatmul.bf16.vlgmr.msra.gmra.mxu0 %v3103_v50 }
 0x3fb   :  { %v1122_v0 = vmax.f32 %v1105_v58, 0.0  ;;  %v1594_v7 = vpop.xlane.xlu0 %1593  ;;  %v3105_v58 = vld [vmem:[%s4320_s3 + $0x10] sm:$0xff] }
 0x3fc   :  { %v1661_v62 = vadd.f32 %v3896_v6, %v1594_v7 }
 0x3fd   :  { %v1130_v12 = vpack.c.bf16 %v1122_v0, %v1121_v63 }
 0x3ff   :  { %1242 = vmatmul.bf16.gmra.mxu2 %v1130_v12 }
 0x400   :  { %v1535_v24 = vpop.f32.mrf.mxu1 }
 0x401   :  { %v1676_v34 = vmul.f32 2.0, %v1535_v24  ;;  %v1664_v24 = vadd.f32 %v3896_v6, %v1600_v52 }
 0x403   :  { %v1692_v4 = vsub.f32 %v1660_v3, %v1676_v34 }
 0x405   :  { %v1708_v5 = vmax.f32 %v1692_v4, 0.0 }
 0x407   :  { %v1724_v9 = vadd.f32 1.0, %v1708_v5 }
 0x408   :  { %v1537_v11 = vpop.f32.mrf.mxu1 }
 0x409   :  { %3039 = vrcp.f32 %v1724_v9  ;;  %v1677_v2 = vmul.f32 2.0, %v1537_v11  ;;  %v1751_v28 = vand.u32 2147483648, %v1724_v9  ;;  %v1749_v47 = vand.u32 2147483647, %v1724_v9 }
 0x40a   :  { %1466 = vmatmul.bf16.gmra.mxu0 %v3104_v16  ;;  %vm1745_vm1 = vweird.f32 %v1724_v9 }
 0x40b   :  { %v1693_v41 = vsub.f32 %v1661_v62, %v1677_v2  ;;  %v1752_v37 = vor.u32 1.1754944e-38, %v1751_v28  ;;  %vm1750_vm4 = vcmp.eq.f32.partialorder %v1749_v47, 8.507059e+37 }
 0x40d   :  { %v1709_v14 = vmax.f32 %v1693_v41, 0.0 }
 0x40f   :  { %v3040_v17 = vpop.eup %3039  ;;  %v1725_v18 = vadd.f32 1.0, %v1709_v14 }
 0x410   :  { %v1540_v22 = vpop.f32.mrf.mxu1  ;;  %v1741_v55 = vmul.f32 %v3040_v17, %v1724_v9  ;;  %vm1746_vm0 = vweird.f32 %v3040_v17 }
 0x411   :  { %3041 = vrcp.f32 %v1725_v18  ;;  %v1678_v8 = vmul.f32 2.0, %v1540_v22  ;;  %vm1747_vm2 = vmor %vm1745_vm1, %vm1746_vm0  ;;  %v1766_v53 = vand.u32 2147483648, %v1725_v18  ;;  %v1764_v19 = vand.u32 2147483647, %v1725_v18 }
 0x412   :  { %v1208_v23 = vpop.f32.mrf.mxu2  ;;  %v1742_v25 = vsub.f32 1.0, %v1741_v55  ;;  %vm1760_vm6 = vweird.f32 %v1725_v18 }
 0x413   :  { %v1694_v26 = vsub.f32 %v1662_v59, %v1678_v8  ;;  %v1209_v42 = vadd.f32 %v3912_v32, %v1208_v23  ;;  %v1767_v0 = vor.u32 1.1754944e-38, %v1766_v53  ;;  %vm1765_vm8 = vcmp.eq.f32.partialorder %v1764_v19, 8.507059e+37 }
 0x414   :  { %v1743_v31 = vmul.f32 %v3040_v17, %v1742_v25 }
 0x415   :  { %v1710_v46 = vmax.f32 %v1694_v26, 0.0  ;;  %v1248_v54 = vmax.f32 %v1209_v42, 0.0 }
 0x416   :  { %v1744_v33 = vadd.f32 %v3040_v17, %v1743_v31 }
 0x417   :  { %v3042_v35 = vpop.eup %3041  ;;  %v3914_v36 = vadd.f32 1.0, %v1710_v46 }
 0x418   :  { %v1542_v1 = vpop.f32.mrf.mxu1  ;;  %v1748_v29 = vsel %vm1747_vm2, %v3040_v17, %v1744_v33  ;;  %v1756_v60 = vmul.f32 %v3042_v35, %v1725_v18  ;;  %vm1761_vm5 = vweird.f32 %v3042_v35 }
 0x419   :  { %3043 = vrcp.f32 %v3914_v36  ;;  %v1679_v44 = vmul.f32 2.0, %v1542_v1  ;;  %v1753_v39 = vsel %vm1750_vm4, %v1752_v37, %v1748_v29  ;;  %vm1762_vm7 = vmor %vm1760_vm6, %vm1761_vm5  ;;  %v1781_v11 = vand.u32 2147483648, %v3914_v36  ;;  %v1604_v1 = vpop.xlane.xlu0 %1603 }
 0x41a   :  { %v1210_v40 = vpop.f32.mrf.mxu2  ;;  %v3922_v45 = vsel %vm1982_vm3, %v1753_v39, 0.0  ;;  %v1757_v48 = vsub.f32 1.0, %v1756_v60  ;;  %1471 = vmatmul.bf16.gmra.mxu0 %v3105_v58  ;;  %v1779_v2 = vand.u32 2147483647, %v3914_v36  ;;  %vm1775_vm10 = vweird.f32 %v3914_v36  ;;  %v3106_v60 = vld [vmem:[%s4320_s3 + $0x18] sm:$0xff] }
 0x41b   :  { %v1695_v43 = vsub.f32 %v1663_v38, %v1679_v44  ;;  %v1211_v10 = vadd.f32 %v3912_v32, %v1210_v40  ;;  %1999 = vadd.xlane.f32.xlu1 %v3922_v45  ;;  %v1782_v18 = vor.u32 1.1754944e-38, %v1781_v11 }
 0x41c   :  { %v1758_v15 = vmul.f32 %v3042_v35, %v1757_v48  ;;  %vm1780_vm12 = vcmp.eq.f32.partialorder %v1779_v2, 8.507059e+37 }
 0x41d   :  { %v1711_v56 = vmax.f32 %v1695_v43, 0.0  ;;  %v1249_v57 = vmax.f32 %v1211_v10, 0.0  ;;  %v1666_v10 = vadd.f32 %v3896_v6, %v1604_v1 }
 0x41e   :  { %v1759_v27 = vadd.f32 %v3042_v35, %v1758_v15 }
 0x41f   :  { %v3044_v61 = vpop.eup %3043  ;;  %v3929_v49 = vadd.f32 1.0, %v1711_v56  ;;  %v1264_v63 = vpack.c.bf16 %v1249_v57, %v1248_v54 }
 0x420   :  { %v1545_v21 = vpop.f32.mrf.mxu1  ;;  %v1763_v12 = vsel %vm1762_vm7, %v3042_v35, %v1759_v27  ;;  %v1771_v50 = vmul.f32 %v3044_v61, %v3914_v36  ;;  %vm1776_vm9 = vweird.f32 %v3044_v61 }
 0x421   :  { %3045 = vrcp.f32 %v3929_v49  ;;  %v1680_v3 = vmul.f32 2.0, %v1545_v21  ;;  %1348 = vmatmul.bf16.vlgmr.msra.gmra.mxu3 %v1264_v63  ;;  %v1768_v34 = vsel %vm1765_vm8, %v1767_v0, %v1763_v12  ;;  %vm1777_vm11 = vmor %vm1775_vm10, %vm1776_vm9  ;;  %v1796_v46 = vand.u32 2147483648, %v3929_v49 }
 0x422   :  { %v1213_v4 = vpop.f32.mrf.mxu2  ;;  %v3936_v5 = vsel %vm1982_vm3, %v1768_v34, 0.0  ;;  %v1772_v7 = vsub.f32 1.0, %v1771_v50  ;;  %v1794_v35 = vand.u32 2147483647, %v3929_v49  ;;  %vm1790_vm14 = vweird.f32 %v3929_v49 }
 0x423   :  { %v1696_v9 = vsub.f32 %v1664_v24, %v1680_v3  ;;  %2001 = vadd.xlane.f32.xlu2 %v3936_v5  ;;  %v1214_v8 = vadd.f32 %v3912_v32, %v1213_v4  ;;  %v1797_v40 = vor.u32 1.1754944e-38, %v1796_v46 }
 0x424   :  { %v1773_v62 = vmul.f32 %v3044_v61, %v1772_v7  ;;  %vm1795_vm0 = vcmp.eq.f32.partialorder %v1794_v35, 8.507059e+37 }
 0x425   :  { %v1712_v41 = vmax.f32 %v1696_v9, 0.0  ;;  %v1250_v36 = vmax.f32 %v1214_v8, 0.0 }
 0x426   :  { %v1774_v14 = vadd.f32 %v3044_v61, %v1773_v62 }
 0x427   :  { %v3046_v16 = vpop.eup %3045  ;;  %v3942_v17 = vadd.f32 1.0, %v1712_v41 }
 0x428   :  { %v1547_v22 = vpop.f32.mrf.mxu1  ;;  %v1778_v55 = vsel %vm1777_vm11, %v3044_v61, %v1774_v14  ;;  %v1786_v59 = vmul.f32 %v3046_v16, %v3929_v49  ;;  %vm1791_vm13 = vweird.f32 %v3046_v16  ;;  %v1606_v49 = vpop.xlane.xlu1 %1605 }
 0x429   :  { %3047 = vrcp.f32 %v3942_v17  ;;  %v1681_v23 = vmul.f32 2.0, %v1547_v22  ;;  %v1783_v25 = vsel %vm1780_vm12, %v1782_v18, %v1778_v55  ;;  %vm1792_vm15 = vmor %vm1790_vm14, %vm1791_vm13  ;;  %v1811_v27 = vand.u32 2147483648, %v3942_v17 }
 0x42a   :  { %v1215_v26 = vpop.f32.mrf.mxu2  ;;  %v3950_v28 = vsel %vm1982_vm3, %v1783_v25, 0.0  ;;  %v1787_v31 = vsub.f32 1.0, %v1786_v59  ;;  %1476 = vmatmul.bf16.gmra.mxu0 %v3106_v60  ;;  %v1809_v61 = vand.u32 2147483647, %v3942_v17  ;;  %vm1805_vm2 = vweird.f32 %v3942_v17  ;;  %v1608_v59 = vpop.xlane.xlu2 %1607 }
 0x42b   :  { %v1697_v47 = vsub.f32 %v1665_v20, %v1681_v23  ;;  %v1216_v51 = vadd.f32 %v3912_v32, %v1215_v26  ;;  %2003 = vadd.xlane.f32.xlu0 %v3950_v28  ;;  %v1812_v50 = vor.u32 1.1754944e-38, %v1811_v27  ;;  %v1667_v24 = vadd.f32 %v3896_v6, %v1606_v49  ;;  %v3107_v23 = vld [vmem:[%s4320_s3 + $0x20] sm:$0xff] }
 0x42c   :  { %v1788_v33 = vmul.f32 %v3046_v16, %v1787_v31  ;;  %vm1810_vm5 = vcmp.eq.f32.partialorder %v1809_v61, 8.507059e+37  ;;  %v1668_v35 = vadd.f32 %v3896_v6, %v1608_v59 }
 0x42d   :  { %v1713_v37 = vmax.f32 %v1697_v47, 0.0  ;;  %v1251_v38 = vmax.f32 %v1216_v51, 0.0 }
 0x42e   :  { %v1789_v29 = vadd.f32 %v3046_v16, %v1788_v33 }
 0x42f   :  { %v3048_v42 = vpop.eup %3047  ;;  %v3960_v44 = vadd.f32 1.0, %v1713_v37  ;;  %v1265_v39 = vpack.c.bf16 %v1251_v38, %v1250_v36 }
 0x430   :  { %v1550_v48 = vpop.f32.mrf.mxu1  ;;  %v1793_v52 = vsel %vm1792_vm15, %v3046_v16, %v1789_v29  ;;  %v1801_v43 = vmul.f32 %v3048_v42, %v3942_v17  ;;  %vm1806_vm1 = vweird.f32 %v3048_v42 }
 0x431   :  { %3049 = vrcp.f32 %v3960_v44  ;;  %v1682_v53 = vmul.f32 2.0, %v1550_v48  ;;  %1353 = vmatmul.bf16.gmra.mxu3 %v1265_v39  ;;  %v1798_v15 = vsel %vm1795_vm0, %v1797_v40, %v1793_v52  ;;  %vm1807_vm4 = vmor %vm1805_vm2, %vm1806_vm1  ;;  %v1826_v16 = vand.u32 2147483648, %v3960_v44  ;;  %v1610_v40 = vpop.xlane.xlu0 %1609 }
 0x432   :  { %v1218_v19 = vpop.f32.mrf.mxu2  ;;  %v3967_v54 = vsel %vm1982_vm3, %v1798_v15, 0.0  ;;  %v1802_v56 = vsub.f32 1.0, %v1801_v43  ;;  %v1824_v18 = vand.u32 2147483647, %v3960_v44  ;;  %vm1820_vm7 = vweird.f32 %v3960_v44 }
 0x433   :  { %v1698_v57 = vsub.f32 %v1666_v10, %v1682_v53  ;;  %2005 = vadd.xlane.f32.xlu1 %v3967_v54  ;;  %v1219_v7 = vadd.f32 %v3912_v32, %v1218_v19  ;;  %v1827_v47 = vor.u32 1.1754944e-38, %v1826_v16  ;;  %v1669_v15 = vadd.f32 %v3896_v6, %v1610_v40 }
 0x434   :  { %v1803_v58 = vmul.f32 %v3048_v42, %v1802_v56  ;;  %vm1825_vm9 = vcmp.eq.f32.partialorder %v1824_v18, 8.507059e+37 }
 0x435   :  { %v1714_v63 = vmax.f32 %v1698_v57, 0.0  ;;  %v1252_v20 = vmax.f32 %v1219_v7, 0.0 }
 0x436   :  { %v1804_v0 = vadd.f32 %v3048_v42, %v1803_v58 }
 0x437   :  { %v3050_v21 = vpop.eup %3049  ;;  %v3973_v12 = vadd.f32 1.0, %v1714_v63 }
 0x438   :  { %v1552_v3 = vpop.f32.mrf.mxu1  ;;  %v1808_v34 = vsel %vm1807_vm4, %v3048_v42, %v1804_v0  ;;  %v1816_v4 = vmul.f32 %v3050_v21, %v3960_v44  ;;  %vm1821_vm6 = vweird.f32 %v3050_v21 }
 0x439   :  { %3051 = vrcp.f32 %v3973_v12  ;;  %v1683_v9 = vmul.f32 2.0, %v1552_v3  ;;  %v1813_v11 = vsel %vm1810_vm5, %v1812_v50, %v1808_v34  ;;  %vm1822_vm8 = vmor %vm1820_vm7, %vm1821_vm6  ;;  %v1841_v42 = vand.u32 2147483648, %v3973_v12 }
 0x43a   :  { %v1220_v62 = vpop.f32.mrf.mxu2  ;;  %v3981_v2 = vsel %vm1982_vm3, %v1813_v11, 0.0  ;;  %v1817_v13 = vsub.f32 1.0, %v1816_v4  ;;  %1481 = vmatmul.bf16.gmra.mxu0 %v3107_v23  ;;  %v1839_v39 = vand.u32 2147483647, %v3973_v12  ;;  %vm1835_vm11 = vweird.f32 %v3973_v12 }
 0x43b   :  { %v1699_v41 = vsub.f32 %v1667_v24, %v1683_v9  ;;  %v1221_v14 = vadd.f32 %v3912_v32, %v1220_v62  ;;  %2007 = vadd.xlane.f32.xlu2 %v3981_v2  ;;  %v1842_v53 = vor.u32 1.1754944e-38, %v1841_v42  ;;  %v1612_v9 = vpop.xlane.xlu1 %1611  ;;  %v3108_v62 = vld [vmem:[%s4320_s3 + $0x28] sm:$0xff] }
 0x43c   :  { %v1818_v17 = vmul.f32 %v3050_v21, %v1817_v13  ;;  %vm1840_vm13 = vcmp.eq.f32.partialorder %v1839_v39, 8.507059e+37 }
 0x43d   :  { %v1715_v22 = vmax.f32 %v1699_v41, 0.0  ;;  %v1253_v55 = vmax.f32 %v1221_v14, 0.0 }
 0x43e   :  { %v1819_v8 = vadd.f32 %v3050_v21, %v1818_v17 }
 0x43f   :  { %v3052_v25 = vpop.eup %3051  ;;  %v3991_v26 = vadd.f32 1.0, %v1715_v22  ;;  %v1266_v31 = vpack.c.bf16 %v1253_v55, %v1252_v20  ;;  %v1670_v22 = vadd.f32 %v3896_v6, %v1612_v9 }
 0x440   :  { %v1555_v51 = vpop.f32.mrf.mxu1  ;;  %v1823_v46 = vsel %vm1822_vm8, %v3050_v21, %v1819_v8  ;;  %v1831_v33 = vmul.f32 %v3052_v25, %v3973_v12  ;;  %vm1836_vm10 = vweird.f32 %v3052_v25 }
 0x441   :  { %3053 = vrcp.f32 %v3991_v26  ;;  %v1684_v36 = vmul.f32 2.0, %v1555_v51  ;;  %1358 = vmatmul.bf16.gmra.mxu3 %v1266_v31  ;;  %v1828_v37 = vsel %vm1825_vm9, %v1827_v47, %v1823_v46  ;;  %vm1837_vm12 = vmor %vm1835_vm11, %vm1836_vm10  ;;  %v1856_v50 = vand.u32 2147483648, %v3991_v26  ;;  %v1614_v46 = vpop.xlane.xlu2 %1613 }
 0x442   :  { %v1223_v38 = vpop.f32.mrf.mxu2  ;;  %v3998_v1 = vsel %vm1982_vm3, %v1828_v37, 0.0  ;;  %v1832_v29 = vsub.f32 1.0, %v1831_v33  ;;  %v1854_v3 = vand.u32 2147483647, %v3991_v26  ;;  %vm1850_vm15 = vweird.f32 %v3991_v26 }
 0x443   :  { %v1700_v60 = vsub.f32 %v1668_v35, %v1684_v36  ;;  %2009 = vadd.xlane.f32.xlu0 %v3998_v1  ;;  %v1224_v27 = vadd.f32 %v3912_v32, %v1223_v38  ;;  %v1857_v16 = vor.u32 1.1754944e-38, %v1856_v50 }
 0x444   :  { %v1833_v44 = vmul.f32 %v3052_v25, %v1832_v29  ;;  %vm1855_vm1 = vcmp.eq.f32.partialorder %v1854_v3, 8.507059e+37  ;;  %v1671_v29 = vadd.f32 %v3896_v6, %v1614_v46 }
 0x445   :  { %v1716_v48 = vmax.f32 %v1700_v60, 0.0  ;;  %v1254_v34 = vmax.f32 %v1224_v27, 0.0 }
 0x446   :  { %v1834_v52 = vadd.f32 %v3052_v25, %v1833_v44 }
 0x447   :  { %v3054_v43 = vpop.eup %3053  ;;  %v4004_v10 = vadd.f32 1.0, %v1716_v48 }
 0x448   :  { %v1557_v19 = vpop.f32.mrf.mxu1  ;;  %v1838_v56 = vsel %vm1837_vm12, %v3052_v25, %v1834_v52  ;;  %v1846_v57 = vmul.f32 %v3054_v43, %v3991_v26  ;;  %vm1851_vm14 = vweird.f32 %v3054_v43 }
 0x449   :  { %3055 = vrcp.f32 %v4004_v10  ;;  %v1685_v58 = vmul.f32 2.0, %v1557_v19  ;;  %v1843_v61 = vsel %vm1840_vm13, %v1842_v53, %v1838_v56  ;;  %vm1852_vm0 = vmor %vm1850_vm15, %vm1851_vm14  ;;  %v1871_v31 = vand.u32 2147483648, %v4004_v10 }
 0x44a   :  { %v1225_v49 = vpop.f32.mrf.mxu2  ;;  %v4012_v63 = vsel %vm1982_vm3, %v1843_v61, 0.0  ;;  %v1847_v0 = vsub.f32 1.0, %v1846_v57  ;;  %1486 = vmatmul.bf16.gmra.mxu0 %v3108_v62  ;;  %v1869_v51 = vand.u32 2147483647, %v4004_v10  ;;  %vm1865_vm4 = vweird.f32 %v4004_v10 }
 0x44b   :  { %v1701_v21 = vsub.f32 %v1669_v15, %v1685_v58  ;;  %v1226_v12 = vadd.f32 %v3912_v32, %v1225_v49  ;;  %2011 = vadd.xlane.f32.xlu1 %v4012_v63  ;;  %v1872_v38 = vor.u32 1.1754944e-38, %v1871_v31  ;;  %v1616_v49 = vpop.xlane.xlu0 %1615 }
 0x44c   :  { %v1848_v24 = vmul.f32 %v3054_v43, %v1847_v0  ;;  %vm1870_vm6 = vcmp.eq.f32.partialorder %v1869_v51, 8.507059e+37  ;;  %v1672_v9 = vadd.f32 %v3896_v6, %v1616_v49 }
 0x44d   :  { %v1717_v4 = vmax.f32 %v1701_v21, 0.0  ;;  %v1255_v7 = vmax.f32 %v1226_v12, 0.0  ;;  %v3109_v21 = vld [vmem:[%s4320_s3 + $0x30] sm:$0xff] }
 0x44e   :  { %v1849_v11 = vadd.f32 %v3054_v43, %v1848_v24 }
 0x44f   :  { %v3056_v13 = vpop.eup %3055  ;;  %v4022_v41 = vadd.f32 1.0, %v1717_v4  ;;  %v1267_v14 = vpack.c.bf16 %v1255_v7, %v1254_v34 }
 0x450   :  { %v1560_v17 = vpop.f32.mrf.mxu1  ;;  %v1853_v18 = vsel %vm1852_vm0, %v3054_v43, %v1849_v11  ;;  %v1861_v20 = vmul.f32 %v3056_v13, %v4004_v10  ;;  %vm1866_vm2 = vweird.f32 %v3056_v13 }
 0x451   :  { %3057 = vrcp.f32 %v4022_v41  ;;  %v1686_v55 = vmul.f32 2.0, %v1560_v17  ;;  %1363 = vmatmul.bf16.gmra.mxu3 %v1267_v14  ;;  %v1858_v59 = vsel %vm1855_vm1, %v1857_v16, %v1853_v18  ;;  %vm1867_vm5 = vmor %vm1865_vm4, %vm1866_vm2  ;;  %v1886_v19 = vand.u32 2147483648, %v4022_v41 }
 0x452   :  { %v1228_v8 = vpop.f32.mrf.mxu2  ;;  %v4029_v23 = vsel %vm1982_vm3, %v1858_v59, 0.0  ;;  %v1862_v25 = vsub.f32 1.0, %v1861_v20  ;;  %v1884_v57 = vand.u32 2147483647, %v4022_v41  ;;  %vm1880_vm8 = vweird.f32 %v4022_v41 }
 0x453   :  { %v1702_v26 = vsub.f32 %v1670_v22, %v1686_v55  ;;  %2013 = vadd.xlane.f32.xlu2 %v4029_v23  ;;  %v1229_v39 = vadd.f32 %v3912_v32, %v1228_v8  ;;  %v1887_v3 = vor.u32 1.1754944e-38, %v1886_v19  ;;  %v1618_v22 = vpop.xlane.xlu1 %1617  ;;  %v3110_v19 = vld [vmem:[%s4320_s3 + $0x38] sm:$0xff] }
 0x454   :  { %v1863_v47 = vmul.f32 %v3056_v13, %v1862_v25  ;;  %vm1885_vm10 = vcmp.eq.f32.partialorder %v1884_v57, 8.507059e+37  ;;  %v1673_v31 = vadd.f32 %v3896_v6, %v1618_v22 }
 0x455   :  { %v1718_v33 = vmax.f32 %v1702_v26, 0.0  ;;  %v1256_v27 = vmax.f32 %v1229_v39, 0.0 }
 0x456   :  { %v1864_v35 = vadd.f32 %v3056_v13, %v1863_v47 }
 0x457   :  { %v3058_v36 = vpop.eup %3057  ;;  %v4035_v37 = vadd.f32 1.0, %v1718_v33 }
 0x458   :  { %v1562_v60 = vpop.f32.mrf.mxu1  ;;  %v1868_v42 = vsel %vm1867_vm5, %v3056_v13, %v1864_v35  ;;  %v1876_v44 = vmul.f32 %v3058_v36, %v4022_v41  ;;  %vm1881_vm7 = vweird.f32 %v3058_v36 }
 0x459   :  { %3059 = vrcp.f32 %v4035_v37  ;;  %v1687_v40 = vmul.f32 2.0, %v1562_v60  ;;  %v1873_v48 = vsel %vm1870_vm6, %v1872_v38, %v1868_v42  ;;  %vm1882_vm9 = vmor %vm1880_vm8, %vm1881_vm7  ;;  %v1901_v17 = vand.u32 2147483648, %v4035_v37 }
 0x45a   :  { %v1230_v52 = vpop.f32.mrf.mxu2  ;;  %v4043_v43 = vsel %vm1982_vm3, %v1873_v48, 0.0  ;;  %v1877_v10 = vsub.f32 1.0, %v1876_v44  ;;  %1491 = vmatmul.bf16.gmra.mxu0 %v3109_v21  ;;  %v1899_v20 = vand.u32 2147483647, %v4035_v37  ;;  %vm1895_vm12 = vweird.f32 %v4035_v37 }
 0x45b   :  { %v1703_v53 = vsub.f32 %v1671_v29, %v1687_v40  ;;  %v1231_v15 = vadd.f32 %v3912_v32, %v1230_v52  ;;  %2015 = vadd.xlane.f32.xlu0 %v4043_v43  ;;  %v1902_v26 = vor.u32 1.1754944e-38, %v1901_v17 }
 0x45c   :  { %v1878_v56 = vmul.f32 %v3058_v36, %v1877_v10  ;;  %vm1900_vm14 = vcmp.eq.f32.partialorder %v1899_v20, 8.507059e+37 }
 0x45d   :  { %v1719_v58 = vmax.f32 %v1703_v53, 0.0  ;;  %v1257_v61 = vmax.f32 %v1231_v15, 0.0  ;;  %v1620_v53 = vpop.xlane.xlu2 %1619 }
 0x45e   :  { %v1879_v0 = vadd.f32 %v3058_v36, %v1878_v56  ;;  %v1674_v21 = vadd.f32 %v3896_v6, %v1620_v53 }
 0x45f   :  { %v3060_v12 = vpop.eup %3059  ;;  %v4053_v50 = vadd.f32 1.0, %v1719_v58  ;;  %v1268_v24 = vpack.c.bf16 %v1257_v61, %v1256_v27 }
 0x460   :  { %v1565_v34 = vpop.f32.mrf.mxu1  ;;  %v1883_v4 = vsel %vm1882_vm9, %v3058_v36, %v1879_v0  ;;  %v1891_v7 = vmul.f32 %v3060_v12, %v4035_v37  ;;  %vm1896_vm11 = vweird.f32 %v3060_v12 }
 0x461   :  { %3061 = vrcp.f32 %v4053_v50  ;;  %v1688_v11 = vmul.f32 2.0, %v1565_v34  ;;  %1368 = vmatmul.bf16.gmra.mxu3 %v1268_v24  ;;  %v1888_v62 = vsel %vm1885_vm10, %v1887_v3, %v1883_v4  ;;  %vm1897_vm13 = vmor %vm1895_vm12, %vm1896_vm11  ;;  %v1916_v44 = vand.u32 2147483648, %v4053_v50 }
 0x462   :  { %v1233_v13 = vpop.f32.mrf.mxu2  ;;  %v4060_v41 = vsel %vm1982_vm3, %v1888_v62, 0.0  ;;  %v1892_v14 = vsub.f32 1.0, %v1891_v7  ;;  %v1914_v40 = vand.u32 2147483647, %v4053_v50  ;;  %vm1910_vm0 = vweird.f32 %v4053_v50  ;;  %v1622_v62 = vpop.xlane.xlu0 %1621 }
 0x463   :  { %v1704_v16 = vsub.f32 %v1672_v9, %v1688_v11  ;;  %2017 = vadd.xlane.f32.xlu1 %v4060_v41  ;;  %v1234_v33 = vadd.f32 %v3912_v32, %v1233_v13  ;;  %v1917_v58 = vor.u32 1.1754944e-38, %v1916_v44  ;;  %v1675_v20 = vadd.f32 %v3896_v6, %v1622_v62 }
 0x464   :  { %v1893_v18 = vmul.f32 %v3060_v12, %v1892_v14  ;;  %vm1915_vm2 = vcmp.eq.f32.partialorder %v1914_v40, 8.507059e+37 }
 0x465   :  { %v1720_v55 = vmax.f32 %v1704_v16, 0.0  ;;  %v1258_v48 = vmax.f32 %v1234_v33, 0.0 }
 0x466   :  { %v1894_v59 = vadd.f32 %v3060_v12, %v1893_v18 }
 0x467   :  { %v3062_v8 = vpop.eup %3061  ;;  %v4066_v25 = vadd.f32 1.0, %v1720_v55 }
 0x468   :  { %v1567_v47 = vpop.f32.mrf.mxu1  ;;  %v1898_v51 = vsel %vm1897_vm13, %v3060_v12, %v1894_v59  ;;  %v1906_v46 = vmul.f32 %v3062_v8, %v4053_v50  ;;  %vm1911_vm15 = vweird.f32 %v3062_v8 }
 0x469   :  { %3063 = vrcp.f32 %v4066_v25  ;;  %v1689_v35 = vmul.f32 2.0, %v1567_v47  ;;  %v1903_v36 = vsel %vm1900_vm14, %v1902_v26, %v1898_v51  ;;  %vm1912_vm1 = vmor %vm1910_vm0, %vm1911_vm15  ;;  %v1931_v7 = vand.u32 2147483648, %v4066_v25 }
 0x46a   :  { %v1235_v38 = vpop.f32.mrf.mxu2  ;;  %v4074_v37 = vsel %vm1982_vm3, %v1903_v36, 0.0  ;;  %v1907_v29 = vsub.f32 1.0, %v1906_v46  ;;  %1496 = vmatmul.bf16.gmra.mxu0 %v3110_v19  ;;  %v1929_v11 = vand.u32 2147483647, %v4066_v25  ;;  %vm1925_vm5 = vweird.f32 %v4066_v25 }
 0x46b   :  { %v1705_v60 = vsub.f32 %v1673_v31, %v1689_v35  ;;  %v1236_v42 = vadd.f32 %v3912_v32, %v1235_v38  ;;  %2019 = vadd.xlane.f32.xlu2 %v4074_v37  ;;  %v1932_v18 = vor.u32 1.1754944e-38, %v1931_v7 }
 0x46c   :  { %v1908_v39 = vmul.f32 %v3062_v8, %v1907_v29  ;;  %vm1930_vm7 = vcmp.eq.f32.partialorder %v1929_v11, 8.507059e+37 }
 0x46d   :  { %v1721_v52 = vmax.f32 %v1705_v60, 0.0  ;;  %v1259_v10 = vmax.f32 %v1236_v42, 0.0 }
 0x46e   :  { %v1909_v15 = vadd.f32 %v3062_v8, %v1908_v39 }
 0x46f   :  { %v3064_v56 = vpop.eup %3063  ;;  %v1737_v57 = vadd.f32 1.0, %v1721_v52  ;;  %v1269_v27 = vpack.c.bf16 %v1259_v10, %v1258_v48 }
 0x470   :  { %v1570_v61 = vpop.f32.mrf.mxu1  ;;  %v1913_v49 = vsel %vm1912_vm1, %v3062_v8, %v1909_v15  ;;  %v1921_v0 = vmul.f32 %v3064_v56, %v4066_v25  ;;  %vm1926_vm4 = vweird.f32 %v3064_v56 }
 0x471   :  { %3065 = vrcp.f32 %v1737_v57  ;;  %v1690_v12 = vmul.f32 2.0, %v1570_v61  ;;  %1373 = vmatmul.bf16.gmra.mxu3 %v1269_v27  ;;  %v1918_v50 = vsel %vm1915_vm2, %v1917_v58, %v1913_v49  ;;  %vm1927_vm6 = vmor %vm1925_vm5, %vm1926_vm4  ;;  %v1946_v6 = vand.u32 2147483648, %v1737_v57 }
 0x472   :  { %v1238_v24 = vpop.f32.mrf.mxu2  ;;  %v4088_v3 = vsel %vm1982_vm3, %v1918_v50, 0.0  ;;  %v1922_v34 = vsub.f32 1.0, %v1921_v0  ;;  %v1944_v36 = vand.u32 2147483647, %v1737_v57  ;;  %vm1940_vm9 = vweird.f32 %v1737_v57 }
 0x473   :  { %v1706_v4 = vsub.f32 %v1674_v21, %v1690_v12  ;;  %2021 = vadd.xlane.f32.xlu0 %v4088_v3  ;;  %v1239_v8 = vadd.f32 %v3912_v32, %v1238_v24  ;;  %v1947_v52 = vor.u32 1.1754944e-38, %v1946_v6 }
 0x474   :  { %v1923_v9 = vmul.f32 %v3064_v56, %v1922_v34  ;;  %vm1945_vm11 = vcmp.eq.f32.partialorder %v1944_v36, 8.507059e+37 }
 0x475   :  { %v1722_v13 = vmax.f32 %v1706_v4, 0.0  ;;  %v1260_v38 = vmax.f32 %v1239_v8, 0.0 }
 0x476   :  { %v1924_v14 = vadd.f32 %v3064_v56, %v1923_v9 }
 0x477   :  { %v3066_v16 = vpop.eup %3065  ;;  %v1738_v17 = vadd.f32 1.0, %v1722_v13  ;;  %v1462_v42 = vpop.f32.mrf.mxu0 }
 0x478   :  { %v1572_v22 = vpop.f32.mrf.mxu1  ;;  %v1928_v55 = vsel %vm1927_vm6, %v3064_v56, %v1924_v14  ;;  %v1936_v59 = vmul.f32 %v3066_v16, %v1737_v57  ;;  %vm1941_vm8 = vweird.f32 %v3066_v16 }
 0x479   :  { %3067 = vrcp.f32 %v1738_v17  ;;  %v1691_v26 = vmul.f32 2.0, %v1572_v22  ;;  %v1933_v31 = vsel %vm1930_vm7, %v1932_v18, %v1928_v55  ;;  %vm1942_vm10 = vmor %vm1940_vm9, %vm1941_vm8  ;;  %v1961_v57 = vand.u32 2147483648, %v1738_v17 }
 0x47a   :  { %v1240_v47 = vpop.f32.mrf.mxu2  ;;  %v4098_v51 = vsel %vm1982_vm3, %v1933_v31, 0.0  ;;  %v1937_v25 = vsub.f32 1.0, %v1936_v59  ;;  %v1959_v61 = vand.u32 2147483647, %v1738_v17  ;;  %vm1955_vm13 = vweird.f32 %v1738_v17 }
 0x47b   :  { %v1707_v46 = vsub.f32 %v1675_v20, %v1691_v26  ;;  %v1241_v33 = vadd.f32 %v3912_v32, %v1240_v47  ;;  %2023 = vadd.xlane.f32.xlu1 %v4098_v51  ;;  %v1962_v50 = vor.u32 1.1754944e-38, %v1961_v57 }
 0x47c   :  { %v1938_v35 = vmul.f32 %v3066_v16, %v1937_v25  ;;  %vm1960_vm15 = vcmp.eq.f32.partialorder %v1959_v61, 8.507059e+37 }
 0x47d   :  { %v1723_v29 = vmax.f32 %v1707_v46, 0.0  ;;  %v1261_v60 = vmax.f32 %v1241_v33, 0.0 }
 0x47e   :  { %v1939_v44 = vadd.f32 %v3066_v16, %v1938_v35 }
 0x47f   :  { %v3068_v39 = vpop.eup %3067  ;;  %v1739_v40 = vadd.f32 1.0, %v1723_v29  ;;  %v1270_v48 = vpack.c.bf16 %v1261_v60, %v1260_v38  ;;  %v1464_v49 = vpop.f32.mrf.mxu0 }
 0x480   :  { %v1943_v10 = vsel %vm1942_vm10, %v3066_v16, %v1939_v44  ;;  %v1951_v53 = vmul.f32 %v3068_v39, %v1738_v17  ;;  %vm1956_vm12 = vweird.f32 %v3068_v39  ;;  %v2950_v21 = vpack.c.bf16 %v1464_v49, %v1462_v42 }
 0x481   :  { %3069 = vrcp.f32 %v1739_v40  ;;  %1378 = vmatmul.bf16.gmra.mxu3 %v1270_v48  ;;  %v1948_v15 = vsel %vm1945_vm11, %v1947_v52, %v1943_v10  ;;  %vm1957_vm14 = vmor %vm1955_vm13, %vm1956_vm12  ;;  %v1976_v14 = vand.u32 2147483648, %v1739_v40  ;;  %v1974_v17 = vand.u32 2147483647, %v1739_v40 }
 0x482   :  { %v1243_v19 = vpop.f32.mrf.mxu2  ;;  %v4104_v56 = vsel %vm1982_vm3, %v1948_v15, 0.0  ;;  %v1952_v27 = vsub.f32 1.0, %v1951_v53  ;;  %2951 = vst [vmem:[%s4299_s25] sm:$0xff] %v2950_v21   ;;  %vm1970_vm1 = vweird.f32 %v1739_v40 }
 0x483   :  { %2025 = vadd.xlane.f32.xlu2 %v4104_v56  ;;  %v1244_v4 = vadd.f32 %v3912_v32, %v1243_v19  ;;  %v1977_v26 = vor.u32 1.1754944e-38, %v1976_v14  ;;  %vm1975_vm4 = vcmp.eq.f32.partialorder %v1974_v17, 8.507059e+37 }
 0x484   :  { %v1953_v58 = vmul.f32 %v3068_v39, %v1952_v27  ;;  %v4129_v27 = vld [vmem:[%s4298_s16] ss:$0 sm:$0xff] }
 0x485   :  { %v1262_v18 = vmax.f32 %v1244_v4, 0.0 }
 0x486   :  { %v1954_v0 = vadd.f32 %v3068_v39, %v1953_v58 }
 0x487   :  { %v3070_v12 = vpop.eup %3069  ;;  %v1467_v22 = vpop.f32.mrf.mxu0 }
 0x488   :  { %v1958_v24 = vsel %vm1957_vm14, %v3068_v39, %v1954_v0  ;;  %v1966_v34 = vmul.f32 %v3070_v12, %v1739_v40  ;;  %vm1971_vm0 = vweird.f32 %v3070_v12 }
 0x489   :  { %v1963_v7 = vsel %vm1960_vm15, %v1962_v50, %v1958_v24  ;;  %vm1972_vm2 = vmor %vm1970_vm1, %vm1971_vm0 }
 0x48a   :  { %v1245_v9 = vpop.f32.mrf.mxu2  ;;  %v4113_v11 = vsel %vm1982_vm3, %v1963_v7, 0.0  ;;  %v1967_v62 = vsub.f32 1.0, %v1966_v34 }
 0x48b   :  { %v1246_v13 = vadd.f32 %v3912_v32, %v1245_v9  ;;  %2027 = vadd.xlane.f32.xlu0 %v4113_v11 }
 0x48c   :  { %v1968_v16 = vmul.f32 %v3070_v12, %v1967_v62 }
 0x48d   :  { %v1263_v20 = vmax.f32 %v1246_v13, 0.0 }
 0x48e   :  { %v2000_v55 = vpop.xlane.xlu1 %1999  ;;  %v1969_v59 = vadd.f32 %v3070_v12, %v1968_v16 }
 0x48f   :  { %v1271_v8 = vpack.c.bf16 %v1263_v20, %v1262_v18  ;;  %3071 = vrcp.f32 %v2000_v55  ;;  %v1469_v46 = vpop.f32.mrf.mxu0  ;;  %v2042_v38 = vand.u32 2147483648, %v2000_v55  ;;  %v2040_v60 = vand.u32 2147483647, %v2000_v55 }
 0x490   :  { %v1973_v31 = vsel %vm1972_vm2, %v3070_v12, %v1969_v59  ;;  %v2955_v35 = vpack.c.bf16 %v1469_v46, %v1467_v22 }
 0x491   :  { %1383 = vmatmul.bf16.gmra.mxu3 %v1271_v8  ;;  %v1978_v32 = vsel %vm1975_vm4, %v1977_v26, %v1973_v31  ;;  %v2043_v44 = vor.u32 1.1754944e-38, %v2042_v38  ;;  %vm2041_vm7 = vcmp.eq.f32.partialorder %v2040_v60, 8.507059e+37 }
 0x492   :  { %v4119_v47 = vsel %vm1982_vm3, %v1978_v32, 0.0  ;;  %3008 = vst [vmem:[%s4299_s25 + $0x8] sm:$0xff] %v2955_v35   ;;  %vm2036_vm3 = vweird.f32 %v2000_v55 }
 0x493   :  { %2029 = vadd.xlane.f32.xlu1 %v4119_v47 }
 0x495   :  { %v3072_v25 = vpop.eup %3071 }
 0x496   :  { %v2032_v33 = vmul.f32 %v3072_v25, %v2000_v55  ;;  %v2002_v6 = vpop.xlane.xlu2 %2001  ;;  %vm2037_vm5 = vweird.f32 %v3072_v25 }
 0x497   :  { %3073 = vrcp.f32 %v2002_v6  ;;  %vm2038_vm6 = vmor %vm2036_vm3, %vm2037_vm5  ;;  %v1472_v39 = vpop.f32.mrf.mxu0  ;;  %v2057_v19 = vand.u32 2147483648, %v2002_v6  ;;  %v2055_v58 = vand.u32 2147483647, %v2002_v6  ;;  %vm2051_vm9 = vweird.f32 %v2002_v6 }
 0x498   :  { %v2033_v36 = vsub.f32 1.0, %v2032_v33 }
 0x499   :  { %vm2056_vm11 = vcmp.eq.f32.partialorder %v2055_v58, 8.507059e+37 }
 0x49a   :  { %v2034_v29 = vmul.f32 %v3072_v25, %v2033_v36 }
 0x49c   :  { %v2035_v30 = vadd.f32 %v3072_v25, %v2034_v29 }
 0x49d   :  { %v3074_v42 = vpop.eup %3073 }
 0x49e   :  { %v2039_v40 = vsel %vm2038_vm6, %v3072_v25, %v2035_v30  ;;  %v2047_v48 = vmul.f32 %v3074_v42, %v2002_v6  ;;  %v2004_v52 = vpop.xlane.xlu0 %2003  ;;  %vm2052_vm8 = vweird.f32 %v3074_v42 }
 0x49f   :  { %v2044_v10 = vsel %vm2041_vm7, %v2043_v44, %v2039_v40  ;;  %3075 = vrcp.f32 %v2004_v52  ;;  %vm2053_vm10 = vmor %vm2051_vm9, %vm2052_vm8  ;;  %v1474_v12 = vpop.f32.mrf.mxu0  ;;  %v2072_v13 = vand.u32 2147483648, %v2004_v52  ;;  %v2070_v16 = vand.u32 2147483647, %v2004_v52 }
 0x4a0   :  { %v2045_v53 = vmul.f32 %v2044_v10, %v3922_v45  ;;  %v2048_v15 = vsub.f32 1.0, %v2047_v48  ;;  %v2058_v45 = vor.u32 1.1754944e-38, %v2057_v19  ;;  %v2960_v4 = vpack.c.bf16 %v1474_v12, %v1472_v39 }
 0x4a1   :  { %vm2066_vm13 = vweird.f32 %v2004_v52  ;;  %v2073_v22 = vor.u32 1.1754944e-38, %v2072_v13  ;;  %vm2071_vm15 = vcmp.eq.f32.partialorder %v2070_v16, 8.507059e+37 }
 0x4a2   :  { %2303 = vst [vmem:[%s4300_s21] sm:$0xff] %v2045_v53  ;;  %v2049_v57 = vmul.f32 %v3074_v42, %v2048_v15 }
 0x4a3   :  { %3009 = vst [vmem:[%s4299_s25 + $0x10] sm:$0xff] %v2960_v4  }
 0x4a4   :  { %v2050_v61 = vadd.f32 %v3074_v42, %v2049_v57  ;;  %v1349_v49 = vpop.f32.mrf.mxu3 }
 0x4a5   :  { %v3076_v0 = vpop.eup %3075  ;;  %v1350_v21 = vadd.f32 %v4129_v27, %v1349_v49 }
 0x4a6   :  { %v2054_v50 = vsel %vm2053_vm10, %v3074_v42, %v2050_v61  ;;  %v2062_v24 = vmul.f32 %v3076_v0, %v2004_v52  ;;  %v2006_v34 = vpop.xlane.xlu1 %2005  ;;  %vm2067_vm12 = vweird.f32 %v3076_v0 }
 0x4a7   :  { %v2059_v7 = vsel %vm2056_vm11, %v2058_v45, %v2054_v50  ;;  %2271 = vst [vmem:[%s4301_s19] sm:$0xff] %v1350_v21  ;;  %3077 = vrcp.f32 %v2006_v34  ;;  %vm2068_vm14 = vmor %vm2066_vm13, %vm2067_vm12  ;;  %v1477_v55 = vpop.f32.mrf.mxu0  ;;  %v2087_v46 = vand.u32 2147483648, %v2006_v34  ;;  %v2085_v6 = vand.u32 2147483647, %v2006_v34 }
 0x4a8   :  { %v2060_v9 = vmul.f32 %v2059_v7, %v3936_v5  ;;  %v2063_v62 = vsub.f32 1.0, %v2062_v24  ;;  %vm2081_vm1 = vweird.f32 %v2006_v34 }
 0x4a9   :  { %v2088_v29 = vor.u32 1.1754944e-38, %v2087_v46  ;;  %vm2086_vm4 = vcmp.eq.f32.partialorder %v2085_v6, 8.507059e+37 }
 0x4aa   :  { %2304 = vst [vmem:[%s4300_s21 + $0x8] sm:$0xff] %v2060_v9  ;;  %v2064_v14 = vmul.f32 %v3076_v0, %v2063_v62 }
 0x4ac   :  { %v2065_v17 = vadd.f32 %v3076_v0, %v2064_v14  ;;  %v1351_v18 = vpop.f32.mrf.mxu3 }
 0x4ad   :  { %v3078_v20 = vpop.eup %3077  ;;  %v1352_v5 = vadd.f32 %v4129_v27, %v1351_v18 }
 0x4ae   :  { %v2069_v59 = vsel %vm2068_vm14, %v3076_v0, %v2065_v17  ;;  %v2077_v8 = vmul.f32 %v3078_v20, %v2006_v34  ;;  %v2008_v26 = vpop.xlane.xlu2 %2007  ;;  %vm2082_vm0 = vweird.f32 %v3078_v20 }
 0x4af   :  { %v2074_v31 = vsel %vm2071_vm15, %v2073_v22, %v2069_v59  ;;  %2272 = vst [vmem:[%s4301_s19 + $0x8] sm:$0xff] %v1352_v5  ;;  %3079 = vrcp.f32 %v2008_v26  ;;  %vm2083_vm2 = vmor %vm2081_vm1, %vm2082_vm0  ;;  %v1479_v30 = vpop.f32.mrf.mxu0  ;;  %v2102_v10 = vand.u32 2147483648, %v2008_v26  ;;  %v2100_v15 = vand.u32 2147483647, %v2008_v26 }
 0x4b0   :  { %v2075_v32 = vmul.f32 %v2074_v31, %v3950_v28  ;;  %v2078_v25 = vsub.f32 1.0, %v2077_v8  ;;  %v2965_v39 = vpack.c.bf16 %v1479_v30, %v1477_v55  ;;  %vm2096_vm3 = vweird.f32 %v2008_v26 }
 0x4b1   :  { %v2103_v61 = vor.u32 1.1754944e-38, %v2102_v10  ;;  %vm2101_vm7 = vcmp.eq.f32.partialorder %v2100_v15, 8.507059e+37 }
 0x4b2   :  { %2305 = vst [vmem:[%s4300_s21 + $0x10] sm:$0xff] %v2075_v32  ;;  %v2079_v33 = vmul.f32 %v3078_v20, %v2078_v25 }
 0x4b3   :  { %3010 = vst [vmem:[%s4299_s25 + $0x18] sm:$0xff] %v2965_v39  }
 0x4b4   :  { %v2080_v35 = vadd.f32 %v3078_v20, %v2079_v33  ;;  %v1354_v36 = vpop.f32.mrf.mxu3 }
 0x4b5   :  { %v3080_v38 = vpop.eup %3079  ;;  %v1355_v60 = vadd.f32 %v4129_v27, %v1354_v36 }
 0x4b6   :  { %v2084_v42 = vsel %vm2083_vm2, %v3078_v20, %v2080_v35  ;;  %v2092_v28 = vmul.f32 %v3080_v38, %v2008_v26  ;;  %v2010_v44 = vpop.xlane.xlu0 %2009  ;;  %vm2097_vm5 = vweird.f32 %v3080_v38 }
 0x4b7   :  { %v2089_v40 = vsel %vm2086_vm4, %v2088_v29, %v2084_v42  ;;  %2273 = vst [vmem:[%s4301_s19 + $0x10] sm:$0xff] %v1355_v60  ;;  %3081 = vrcp.f32 %v2010_v44  ;;  %vm2098_vm6 = vmor %vm2096_vm3, %vm2097_vm5  ;;  %v1482_v49 = vpop.f32.mrf.mxu0  ;;  %v2117_v34 = vand.u32 2147483648, %v2010_v44  ;;  %v2115_v7 = vand.u32 2147483647, %v2010_v44 }
 0x4b8   :  { %v2090_v48 = vmul.f32 %v2089_v40, %v3967_v54  ;;  %v2093_v52 = vsub.f32 1.0, %v2092_v28  ;;  %vm2111_vm9 = vweird.f32 %v2010_v44 }
 0x4b9   :  { %v2118_v14 = vor.u32 1.1754944e-38, %v2117_v34  ;;  %vm2116_vm11 = vcmp.eq.f32.partialorder %v2115_v7, 8.507059e+37 }
 0x4ba   :  { %2306 = vst [vmem:[%s4300_s21 + $0x18] sm:$0xff] %v2090_v48  ;;  %v2094_v53 = vmul.f32 %v3080_v38, %v2093_v52 }
 0x4bc   :  { %v2095_v19 = vadd.f32 %v3080_v38, %v2094_v53  ;;  %v1356_v57 = vpop.f32.mrf.mxu3 }
 0x4bd   :  { %v3082_v58 = vpop.eup %3081  ;;  %v1357_v54 = vadd.f32 %v4129_v27, %v1356_v57 }
 0x4be   :  { %v2099_v0 = vsel %vm2098_vm6, %v3080_v38, %v2095_v19  ;;  %v2107_v45 = vmul.f32 %v3082_v58, %v2010_v44  ;;  %v2012_v21 = vpop.xlane.xlu1 %2011  ;;  %vm2112_vm8 = vweird.f32 %v3082_v58 }
 0x4bf   :  { %v2104_v12 = vsel %vm2101_vm7, %v2103_v61, %v2099_v0  ;;  %2274 = vst [vmem:[%s4301_s19 + $0x18] sm:$0xff] %v1357_v54  ;;  %3083 = vrcp.f32 %v2012_v21  ;;  %vm2113_vm10 = vmor %vm2111_vm9, %vm2112_vm8  ;;  %v1484_v17 = vpop.f32.mrf.mxu0  ;;  %v2132_v8 = vand.u32 2147483648, %v2012_v21  ;;  %v2130_v31 = vand.u32 2147483647, %v2012_v21 }
 0x4c0   :  { %v2105_v50 = vmul.f32 %v2104_v12, %v3981_v2  ;;  %v2108_v24 = vsub.f32 1.0, %v2107_v45  ;;  %v2970_v22 = vpack.c.bf16 %v1484_v17, %v1482_v49  ;;  %vm2126_vm13 = vweird.f32 %v2012_v21 }
 0x4c1   :  { %v2133_v33 = vor.u32 1.1754944e-38, %v2132_v8  ;;  %vm2131_vm15 = vcmp.eq.f32.partialorder %v2130_v31, 8.507059e+37 }
 0x4c2   :  { %2307 = vst [vmem:[%s4300_s21 + $0x20] sm:$0xff] %v2105_v50  ;;  %v2109_v4 = vmul.f32 %v3082_v58, %v2108_v24 }
 0x4c3   :  { %3011 = vst [vmem:[%s4299_s25 + $0x20] sm:$0xff] %v2970_v22  }
 0x4c4   :  { %v2110_v9 = vadd.f32 %v3082_v58, %v2109_v4  ;;  %v1359_v62 = vpop.f32.mrf.mxu3 }
 0x4c5   :  { %v3084_v13 = vpop.eup %3083  ;;  %v1360_v16 = vadd.f32 %v4129_v27, %v1359_v62 }
 0x4c6   :  { %v2114_v18 = vsel %vm2113_vm10, %v3082_v58, %v2110_v9  ;;  %v2122_v2 = vmul.f32 %v3084_v13, %v2012_v21  ;;  %v2014_v20 = vpop.xlane.xlu2 %2013  ;;  %vm2127_vm12 = vweird.f32 %v3084_v13 }
 0x4c7   :  { %v2119_v5 = vsel %vm2116_vm11, %v2118_v14, %v2114_v18  ;;  %2275 = vst [vmem:[%s4301_s19 + $0x20] sm:$0xff] %v1360_v16  ;;  %3085 = vrcp.f32 %v2014_v20  ;;  %vm2128_vm14 = vmor %vm2126_vm13, %vm2127_vm12  ;;  %v1487_v6 = vpop.f32.mrf.mxu0  ;;  %v2147_v42 = vand.u32 2147483648, %v2014_v20  ;;  %v2145_v44 = vand.u32 2147483647, %v2014_v20 }
 0x4c8   :  { %v2120_v55 = vmul.f32 %v2119_v5, %v3998_v1  ;;  %v2123_v59 = vsub.f32 1.0, %v2122_v2  ;;  %vm2141_vm1 = vweird.f32 %v2014_v20 }
 0x4c9   :  { %v2148_v52 = vor.u32 1.1754944e-38, %v2147_v42  ;;  %vm2146_vm4 = vcmp.eq.f32.partialorder %v2145_v44, 8.507059e+37 }
 0x4ca   :  { %2308 = vst [vmem:[%s4300_s21 + $0x28] sm:$0xff] %v2120_v55  ;;  %v2124_v26 = vmul.f32 %v3084_v13, %v2123_v59 }
 0x4cc   :  { %v2125_v32 = vadd.f32 %v3084_v13, %v2124_v26  ;;  %v1361_v25 = vpop.f32.mrf.mxu3 }
 0x4cd   :  { %v3086_v46 = vpop.eup %3085  ;;  %v1362_v1 = vadd.f32 %v4129_v27, %v1361_v25 }
 0x4ce   :  { %v2129_v35 = vsel %vm2128_vm14, %v3084_v13, %v2125_v32  ;;  %v2137_v36 = vmul.f32 %v3086_v46, %v2014_v20  ;;  %v2016_v38 = vpop.xlane.xlu0 %2015  ;;  %vm2142_vm0 = vweird.f32 %v3086_v46 }
 0x4cf   :  { %v2134_v29 = vsel %vm2131_vm15, %v2133_v33, %v2129_v35  ;;  %2276 = vst [vmem:[%s4301_s19 + $0x28] sm:$0xff] %v1362_v1  ;;  %3087 = vrcp.f32 %v2016_v38  ;;  %vm2143_vm2 = vmor %vm2141_vm1, %vm2142_vm0  ;;  %v1489_v53 = vpop.f32.mrf.mxu0  ;;  %v2162_v49 = vand.u32 2147483648, %v2016_v38  ;;  %v2160_v45 = vand.u32 2147483647, %v2016_v38 }
 0x4d0   :  { %v2135_v60 = vmul.f32 %v2134_v29, %v4012_v63  ;;  %v2138_v30 = vsub.f32 1.0, %v2137_v36  ;;  %v2975_v57 = vpack.c.bf16 %v1489_v53, %v1487_v6  ;;  %vm2156_vm3 = vweird.f32 %v2016_v38 }
 0x4d1   :  { %v2163_v24 = vor.u32 1.1754944e-38, %v2162_v49  ;;  %vm2161_vm7 = vcmp.eq.f32.partialorder %v2160_v45, 8.507059e+37 }
 0x4d2   :  { %2309 = vst [vmem:[%s4300_s21 + $0x30] sm:$0xff] %v2135_v60  ;;  %v2139_v28 = vmul.f32 %v3086_v46, %v2138_v30 }
 0x4d3   :  { %3012 = vst [vmem:[%s4299_s25 + $0x28] sm:$0xff] %v2975_v57  }
 0x4d4   :  { %v2140_v39 = vadd.f32 %v3086_v46, %v2139_v28  ;;  %v1364_v40 = vpop.f32.mrf.mxu3 }
 0x4d5   :  { %v3088_v48 = vpop.eup %3087  ;;  %v1365_v10 = vadd.f32 %v4129_v27, %v1364_v40 }
 0x4d6   :  { %v2144_v15 = vsel %vm2143_vm2, %v3086_v46, %v2140_v39  ;;  %v2152_v63 = vmul.f32 %v3088_v48, %v2016_v38  ;;  %v2018_v19 = vpop.xlane.xlu1 %2017  ;;  %vm2157_vm5 = vweird.f32 %v3088_v48 }
 0x4d7   :  { %v2149_v58 = vsel %vm2146_vm4, %v2148_v52, %v2144_v15  ;;  %2277 = vst [vmem:[%s4301_s19 + $0x30] sm:$0xff] %v1365_v10  ;;  %3089 = vrcp.f32 %v2018_v19  ;;  %vm2158_vm6 = vmor %vm2156_vm3, %vm2157_vm5  ;;  %v1492_v34 = vpop.f32.mrf.mxu0  ;;  %v2177_v16 = vand.u32 2147483648, %v2018_v19  ;;  %v2175_v18 = vand.u32 2147483647, %v2018_v19 }
 0x4d8   :  { %v2150_v61 = vmul.f32 %v2149_v58, %v4029_v23  ;;  %v2153_v54 = vsub.f32 1.0, %v2152_v63  ;;  %vm2171_vm9 = vweird.f32 %v2018_v19 }
 0x4d9   :  { %v2178_v5 = vor.u32 1.1754944e-38, %v2177_v16  ;;  %vm2176_vm11 = vcmp.eq.f32.partialorder %v2175_v18, 8.507059e+37 }
 0x4da   :  { %2310 = vst [vmem:[%s4300_s21 + $0x38] sm:$0xff] %v2150_v61  ;;  %v2154_v0 = vmul.f32 %v3088_v48, %v2153_v54 }
 0x4dc   :  { %v2155_v21 = vadd.f32 %v3088_v48, %v2154_v0  ;;  %v1366_v12 = vpop.f32.mrf.mxu3 }
 0x4dd   :  { %v3090_v50 = vpop.eup %3089  ;;  %v1367_v23 = vadd.f32 %v4129_v27, %v1366_v12 }
 0x4de   :  { %v2159_v4 = vsel %vm2158_vm6, %v3088_v48, %v2155_v21  ;;  %v2167_v7 = vmul.f32 %v3090_v50, %v2018_v19  ;;  %v2020_v9 = vpop.xlane.xlu2 %2019  ;;  %vm2172_vm8 = vweird.f32 %v3090_v50 }
 0x4df   :  { %v2164_v62 = vsel %vm2161_vm7, %v2163_v24, %v2159_v4  ;;  %2278 = vst [vmem:[%s4301_s19 + $0x38] sm:$0xff] %v1367_v23  ;;  %3091 = vrcp.f32 %v2020_v9  ;;  %vm2173_vm10 = vmor %vm2171_vm9, %vm2172_vm8  ;;  %v1494_v59 = vpop.f32.mrf.mxu0  ;;  %v2192_v33 = vand.u32 2147483648, %v2020_v9  ;;  %v2190_v6 = vand.u32 2147483647, %v2020_v9 }
 0x4e0   :  { %v2165_v13 = vmul.f32 %v2164_v62, %v4043_v43  ;;  %v2168_v14 = vsub.f32 1.0, %v2167_v7  ;;  %v2980_v31 = vpack.c.bf16 %v1494_v59, %v1492_v34  ;;  %vm2186_vm13 = vweird.f32 %v2020_v9 }
 0x4e1   :  { %v2193_v29 = vor.u32 1.1754944e-38, %v2192_v33  ;;  %vm2191_vm15 = vcmp.eq.f32.partialorder %v2190_v6, 8.507059e+37 }
 0x4e2   :  { %2311 = vst [vmem:[%s4300_s21 + $0x40] sm:$0xff] %v2165_v13  ;;  %v2169_v17 = vmul.f32 %v3090_v50, %v2168_v14 }
 0x4e3   :  { %3013 = vst [vmem:[%s4299_s25 + $0x30] sm:$0xff] %v2980_v31  }
 0x4e4   :  { %v2170_v2 = vadd.f32 %v3090_v50, %v2169_v17  ;;  %v1369_v20 = vpop.f32.mrf.mxu3 }
 0x4e5   :  { %v3092_v22 = vpop.eup %3091  ;;  %v1370_v55 = vadd.f32 %v4129_v27, %v1369_v20 }
 0x4e6   :  { %v2174_v8 = vsel %vm2173_vm10, %v3090_v50, %v2170_v2  ;;  %v2182_v43 = vmul.f32 %v3092_v22, %v2020_v9  ;;  %v2022_v26 = vpop.xlane.xlu0 %2021  ;;  %vm2187_vm12 = vweird.f32 %v3092_v22 }
 0x4e7   :  { %v2179_v32 = vsel %vm2176_vm11, %v2178_v5, %v2174_v8  ;;  %2279 = vst [vmem:[%s4301_s19 + $0x40] sm:$0xff] %v1370_v55  ;;  %3093 = vrcp.f32 %v2022_v26  ;;  %vm2188_vm14 = vmor %vm2186_vm13, %vm2187_vm12  ;;  %v1497_v60 = vpop.f32.mrf.mxu0  ;;  %v2207_v48 = vand.u32 2147483648, %v2022_v26  ;;  %v2205_v10 = vand.u32 2147483647, %v2022_v26 }
 0x4e8   :  { %v2180_v25 = vmul.f32 %v2179_v32, %v4060_v41  ;;  %v2183_v46 = vsub.f32 1.0, %v2182_v43  ;;  %vm2201_vm1 = vweird.f32 %v2022_v26 }
 0x4e9   :  { %v2208_v19 = vor.u32 1.1754944e-38, %v2207_v48  ;;  %vm2206_vm4 = vcmp.eq.f32.partialorder %v2205_v10, 8.507059e+37 }
 0x4ea   :  { %2312 = vst [vmem:[%s4300_s21 + $0x48] sm:$0xff] %v2180_v25  ;;  %v2184_v1 = vmul.f32 %v3092_v22, %v2183_v46 }
 0x4ec   :  { %v2185_v35 = vadd.f32 %v3092_v22, %v2184_v1  ;;  %v1371_v36 = vpop.f32.mrf.mxu3 }
 0x4ed   :  { %v3094_v38 = vpop.eup %3093  ;;  %v1372_v41 = vadd.f32 %v4129_v27, %v1371_v36 }
 0x4ee   :  { %v2189_v30 = vsel %vm2188_vm14, %v3092_v22, %v2185_v35  ;;  %v2197_v42 = vmul.f32 %v3094_v38, %v2022_v26  ;;  %v2024_v28 = vpop.xlane.xlu1 %2023  ;;  %vm2202_vm0 = vweird.f32 %v3094_v38 }
 0x4ef   :  { %v2194_v44 = vsel %vm2191_vm15, %v2193_v29, %v2189_v30  ;;  %2280 = vst [vmem:[%s4301_s19 + $0x48] sm:$0xff] %v1372_v41  ;;  %3095 = vrcp.f32 %v2024_v28  ;;  %vm2203_vm2 = vmor %vm2201_vm1, %vm2202_vm0  ;;  %v1499_v58 = vpop.f32.mrf.mxu0  ;;  %v2222_v12 = vand.u32 2147483648, %v2024_v28  ;;  %v2220_v24 = vand.u32 2147483647, %v2024_v28 }
 0x4f0   :  { %v2195_v39 = vmul.f32 %v2194_v44, %v4074_v37  ;;  %v2198_v40 = vsub.f32 1.0, %v2197_v42  ;;  %v2985_v49 = vpack.c.bf16 %v1499_v58, %v1497_v60  ;;  %vm2216_vm3 = vweird.f32 %v2024_v28 }
 0x4f1   :  { %v2223_v7 = vor.u32 1.1754944e-38, %v2222_v12  ;;  %vm2221_vm7 = vcmp.eq.f32.partialorder %v2220_v24, 8.507059e+37 }
 0x4f2   :  { %2313 = vst [vmem:[%s4300_s21 + $0x50] sm:$0xff] %v2195_v39  ;;  %v2199_v52 = vmul.f32 %v3094_v38, %v2198_v40 }
 0x4f3   :  { %3014 = vst [vmem:[%s4299_s25 + $0x38] sm:$0xff] %v2985_v49  }
 0x4f4   :  { %v2200_v53 = vadd.f32 %v3094_v38, %v2199_v52  ;;  %v1374_v15 = vpop.f32.mrf.mxu3 }
 0x4f5   :  { %v3096_v63 = vpop.eup %3095  ;;  %v1375_v57 = vadd.f32 %v4129_v27, %v1374_v15 }
 0x4f6   :  { %v2204_v61 = vsel %vm2203_vm2, %v3094_v38, %v2200_v53  ;;  %v2212_v37 = vmul.f32 %v3096_v63, %v2024_v28  ;;  %v2026_v54 = vpop.xlane.xlu2 %2025  ;;  %vm2217_vm5 = vweird.f32 %v3096_v63 }
 0x4f7   :  { %v2209_v0 = vsel %vm2206_vm4, %v2208_v19, %v2204_v61  ;;  %2281 = vst [vmem:[%s4301_s19 + $0x50] sm:$0xff] %v1375_v57  ;;  %3097 = vrcp.f32 %v2026_v54  ;;  %vm2218_vm6 = vmor %vm2216_vm3, %vm2217_vm5  ;;  %v2237_v18 = vand.u32 2147483648, %v2026_v54  ;;  %v2235_v20 = vand.u32 2147483647, %v2026_v54 }
 0x4f8   :  { %v2210_v45 = vmul.f32 %v2209_v0, %v4088_v3  ;;  %v2213_v21 = vsub.f32 1.0, %v2212_v37  ;;  %vm2231_vm9 = vweird.f32 %v2026_v54 }
 0x4f9   :  { %v2238_v59 = vor.u32 1.1754944e-38, %v2237_v18  ;;  %vm2236_vm11 = vcmp.eq.f32.partialorder %v2235_v20, 8.507059e+37 }
 0x4fa   :  { %2314 = vst [vmem:[%s4300_s21 + $0x58] sm:$0xff] %v2210_v45  ;;  %v2214_v50 = vmul.f32 %v3096_v63, %v2213_v21 }
 0x4fc   :  { %v2215_v23 = vadd.f32 %v3096_v63, %v2214_v50  ;;  %v1376_v34 = vpop.f32.mrf.mxu3 }
 0x4fd   :  { %v3098_v4 = vpop.eup %3097  ;;  %v1377_v3 = vadd.f32 %v4129_v27, %v1376_v34 }
 0x4fe   :  { %v2219_v9 = vsel %vm2218_vm6, %v3096_v63, %v2215_v23  ;;  %v2227_v62 = vmul.f32 %v3098_v4, %v2026_v54  ;;  %v2028_v13 = vpop.xlane.xlu0 %2027  ;;  %vm2232_vm8 = vweird.f32 %v3098_v4 }
 0x4ff   :  { %v2224_v14 = vsel %vm2221_vm7, %v2223_v7, %v2219_v9  ;;  %2282 = vst [vmem:[%s4301_s19 + $0x58] sm:$0xff] %v1377_v3  ;;  %3099 = vrcp.f32 %v2028_v13  ;;  %vm2233_vm10 = vmor %vm2231_vm9, %vm2232_vm8  ;;  %v2252_v46 = vand.u32 2147483648, %v2028_v13  ;;  %v2250_v1 = vand.u32 2147483647, %v2028_v13 }
 0x500   :  { %v2225_v16 = vmul.f32 %v2224_v14, %v4098_v51  ;;  %v2228_v17 = vsub.f32 1.0, %v2227_v62  ;;  %vm2246_vm13 = vweird.f32 %v2028_v13 }
 0x501   :  { %v2253_v38 = vor.u32 1.1754944e-38, %v2252_v46  ;;  %vm2251_vm15 = vcmp.eq.f32.partialorder %v2250_v1, 8.507059e+37 }
 0x502   :  { %2315 = vst [vmem:[%s4300_s21 + $0x60] sm:$0xff] %v2225_v16  ;;  %v2229_v2 = vmul.f32 %v3098_v4, %v2228_v17 }
 0x504   :  { %v2230_v22 = vadd.f32 %v3098_v4, %v2229_v2  ;;  %v1379_v5 = vpop.f32.mrf.mxu3 }
 0x505   :  { %v3100_v55 = vpop.eup %3099  ;;  %v1380_v8 = vadd.f32 %v4129_v27, %v1379_v5 }
 0x506   :  { %v2234_v43 = vsel %vm2233_vm10, %v3098_v4, %v2230_v22  ;;  %v2242_v51 = vmul.f32 %v3100_v55, %v2028_v13  ;;  %v2030_v26 = vpop.xlane.xlu1 %2029  ;;  %vm2247_vm12 = vweird.f32 %v3100_v55 }
 0x507   :  { %v2239_v31 = vsel %vm2236_vm11, %v2238_v59, %v2234_v43  ;;  %2283 = vst [vmem:[%s4301_s19 + $0x60] sm:$0xff] %v1380_v8  ;;  %3101 = vrcp.f32 %v2030_v26  ;;  %vm2248_vm14 = vmor %vm2246_vm13, %vm2247_vm12  ;;  %v2267_v28 = vand.u32 2147483648, %v2030_v26  ;;  %v2265_v39 = vand.u32 2147483647, %v2030_v26 }
 0x508   :  { %v2240_v32 = vmul.f32 %v2239_v31, %v4104_v56  ;;  %v2243_v25 = vsub.f32 1.0, %v2242_v51  ;;  %vm2261_vm1 = vweird.f32 %v2030_v26 }
 0x509   :  { %v2268_v52 = vor.u32 1.1754944e-38, %v2267_v28  ;;  %vm2266_vm4 = vcmp.eq.f32.partialorder %v2265_v39, 8.507059e+37 }
 0x50a   :  { %2316 = vst [vmem:[%s4300_s21 + $0x68] sm:$0xff] %v2240_v32  ;;  %v2244_v33 = vmul.f32 %v3100_v55, %v2243_v25 }
 0x50c   :  { %v2245_v6 = vadd.f32 %v3100_v55, %v2244_v33  ;;  %v1381_v35 = vpop.f32.mrf.mxu3 }
 0x50d   :  { %v3102_v36 = vpop.eup %3101  ;;  %v1382_v29 = vadd.f32 %v4129_v27, %v1381_v35 }
 0x50e   :  { %v2249_v41 = vsel %vm2248_vm14, %v3100_v55, %v2245_v6  ;;  %v2257_v56 = vmul.f32 %v3102_v36, %v2030_v26  ;;  %vm2262_vm0 = vweird.f32 %v3102_v36 }
 0x50f   :  { %v2254_v60 = vsel %vm2251_vm15, %v2253_v38, %v2249_v41  ;;  %2284 = vst [vmem:[%s4301_s19 + $0x68] sm:$0xff] %v1382_v29  ;;  %vm2263_vm2 = vmor %vm2261_vm1, %vm2262_vm0 }
 0x510   :  { %v2255_v30 = vmul.f32 %v2254_v60, %v4113_v11  ;;  %v2258_v42 = vsub.f32 1.0, %v2257_v56 }
 0x512   :  { %2317 = vst [vmem:[%s4300_s21 + $0x70] sm:$0xff] %v2255_v30  ;;  %v2259_v44 = vmul.f32 %v3102_v36, %v2258_v42 }
 0x514   :  { %v2260_v40 = vadd.f32 %v3102_v36, %v2259_v44  ;;  %v1384_v48 = vpop.f32.mrf.mxu3 }
 0x515   :  { %v1385_v10 = vadd.f32 %v4129_v27, %v1384_v48 }
 0x516   :  { %v2264_v53 = vsel %vm2263_vm2, %v3102_v36, %v2260_v40 }
 0x517   :  { %v2269_v15 = vsel %vm2266_vm4, %v2268_v52, %v2264_v53  ;;  %2285 = vst [vmem:[%s4301_s19 + $0x70] sm:$0xff] %v1385_v10 }
 0x518   :  { %v2270_v11 = vmul.f32 %v2269_v15, %v4119_v47 }
 0x51a   :  { %2318 = vst [vmem:[%s4300_s21 + $0x78] sm:$0xff] %v2270_v11 }
 0x51c   :  { %v1386_v63 = vpop.f32.mrf.mxu3 }
 0x51d   :  { %v1387_v19 = vadd.f32 %v4129_v27, %v1386_v63 }
 0x51f   :  { %2286 = vst [vmem:[%s4301_s19 + $0x78] sm:$0xff] %v1387_v19 }

</bundles_post_ra>
